<compile_context>
chip_gen: v6e
topology: v6e:2x2x1
jax: 0.10.0
libtpu: 0.0.40
codegen_flags: <defaults>
</compile_context>

<pallas_src>
import math

import jax
import jax.numpy as jnp
import numpy as np
from jax import lax
from jax.experimental import pallas as pl
from jax.experimental.pallas import tpu as pltpu

# ---- config consistent with the module (CONFIG: hidden=256, inter=1024, heads=4) ----
BATCH = 2
SEQ = 8
HIDDEN = 256
NUM_HEADS = 4
HEAD_DIM = HIDDEN // NUM_HEADS          # 64
INTER = 4 * HIDDEN                      # 1024 (intermediate_size)
EPS = 1e-6


def _rmsnorm(x, g):
    # x: (S, H), g: (1, H) -- all f32 (VPU/EUP path)
    ms = jnp.mean(x * x, axis=-1, keepdims=True)
    return x * lax.rsqrt(ms + EPS) * g


def transformer_block_kernel(
    x_ref,        # (S, H)   f32   one batch element's tokens (grid axis = batch)
    g_attn_ref,   # (1, H)   f32
    wqkv_ref,     # (H, 3H)  bf16  [Wq*scale | Wk | Wv]   (y = x @ W layout)
    bqkv_ref,     # (1, 3H)  f32   [bq*scale | bk | bv]
    wo_ref,       # (H, H)   bf16
    bo_ref,       # (1, H)   f32
    g_ffn_ref,    # (1, H)   f32
    w13_ref,      # (H, 2I)  bf16  [W1 | W3]
    w2_ref,       # (I, H)   bf16
    o_ref,        # (S, H)   f32
):
    x = x_ref[...]                                   # (S, H) f32

    # --- RMSNorm (attn), f32 ---------------------------------------------------
    xn = _rmsnorm(x, g_attn_ref[...])

    # --- fused QKV projection: bf16 MXU operands, f32 accumulation + f32 bias ---
    qkv = jnp.dot(xn.astype(jnp.bfloat16), wqkv_ref[...],
                  preferred_element_type=jnp.float32) + bqkv_ref[...]   # (S, 3H)

    # --- multi-head attention within this sequence (no mask: grid = batch) ------
    # attn @ Wo == sum_h (attn_h @ Wo[h*D:(h+1)*D, :]); accumulate per head, wo is
    # sliced from the Ref per head (never materialized as a full 64-vreg value).
    acc = jnp.zeros_like(x)                          # (S, H) f32 accumulator
    qkt_dims = (((1,), (1,)), ((), ()))              # contract minor dims: q @ k^T
    # TODO(synk): HEAD_DIM=64 value slices land at lane offsets 64/192 (not 128
    #   aligned) -> one small relayout each.  Fixing it needs head_dim padding to
    #   128 (2x weight bytes) or a 3-D batched dot_general; left as-is because the
    #   kernel is HBM-bound at this size and the relayout hides under DMA slack.
    for h in range(NUM_HEADS):
        lo = h * HEAD_DIM
        hi = lo + HEAD_DIM
        qh = qkv[:, lo:hi]                           # softmax scale already folded
        kh = qkv[:, HIDDEN + lo:HIDDEN + hi]
        vh = qkv[:, 2 * HIDDEN + lo:2 * HIDDEN + hi]
        s = lax.dot_general(qh.astype(jnp.bfloat16), kh.astype(jnp.bfloat16),
                            qkt_dims, preferred_element_type=jnp.float32)  # (S, S)
        s = s - jnp.max(s, axis=-1, keepdims=True)   # f32 softmax
        p = jnp.exp(s)
        p = p * pl.reciprocal(jnp.sum(p, axis=-1, keepdims=True), approx=True)
        oh = jnp.dot(p.astype(jnp.bfloat16), vh.astype(jnp.bfloat16),
                     preferred_element_type=jnp.float32)                   # (S, D)
        acc = acc + jnp.dot(oh.astype(jnp.bfloat16), wo_ref[lo:hi, :],
                            preferred_element_type=jnp.float32)            # (S, H)

    # --- residual ---------------------------------------------------------------
    h1 = x + acc + bo_ref[...]

    # --- RMSNorm (ffn) + SwiGLU FeedForward (fused W1|W3 matmul) -----------------
    hn = _rmsnorm(h1, g_ffn_ref[...])
    ab = jnp.dot(hn.astype(jnp.bfloat16), w13_ref[...],
                 preferred_element_type=jnp.float32)                       # (S, 2I)
    a = ab[:, :INTER]
    b = ab[:, INTER:]
    g = a * jax.nn.sigmoid(a) * b                                          # f32 silu
    ffn = jnp.dot(g.astype(jnp.bfloat16), w2_ref[...],
                  preferred_element_type=jnp.float32)                      # (S, H)

    # lane-dense store (H = 256 = 2 x 128 lanes)
    o_ref[...] = h1 + ffn


def prepare_params(p):
    """One-time parameter conversion (NOT in the per-step path): fuse QKV and W1|W3,
    fold the 1/sqrt(head_dim) softmax scale into Wq/bq (exact: scale is a power of
    two), and cast the matmul weights to bf16."""
    scale = 1.0 / math.sqrt(HEAD_DIM)
    wqkv = jnp.concatenate([p["wq"] * scale, p["wk"], p["wv"]], axis=1)
    bqkv = jnp.concatenate([p["bq"] * scale, p["bk"], p["bv"]], axis=1)
    w13 = jnp.concatenate([p["w1"], p["w3"]], axis=1)
    return {
        "g_attn": p["g_attn"].astype(jnp.float32),
        "g_ffn": p["g_ffn"].astype(jnp.float32),
        "wqkv": wqkv.astype(jnp.bfloat16),
        "bqkv": bqkv.astype(jnp.float32),
        "wo": p["wo"].astype(jnp.bfloat16),
        "bo": p["bo"].astype(jnp.float32),
        "w13": w13.astype(jnp.bfloat16),
        "w2": p["w2"].astype(jnp.bfloat16),
    }


@jax.jit
def transformer_block(x, fused, aux_loss_sum):
    """x: (B, S, H) float32; fused = prepare_params(params). Returns (out, aux_loss_sum)."""
    B, S, H = x.shape
    assert H == HIDDEN
    N = B * S
    x2 = x.reshape(N, H)                       # lane-dense token slab

    # Advisory cost estimate (helps XLA overlap neighbors with this mem-bound call).
    flops = (2 * N * H * 3 * H                              # QKV
             + 2 * B * NUM_HEADS * S * S * HEAD_DIM * 2     # QK^T + PV
             + 2 * N * H * H                                # output projection
             + 2 * N * H * 2 * INTER                        # W1 | W3
             + 2 * N * INTER * H)                           # W2
    transcendentals = B * NUM_HEADS * S * S + N * INTER + 2 * N + B * NUM_HEADS * S
    weight_bytes = 2 * (H * 3 * H + H * H + H * 2 * INTER + INTER * H)   # bf16
    bytes_accessed = weight_bytes + 2 * N * H * 4 + 7 * H * 4
    cost = pl.CostEstimate(flops=flops, transcendentals=transcendentals,
                           bytes_accessed=bytes_accessed)

    out = pl.pallas_call(
        transformer_block_kernel,
        out_shape=jax.ShapeDtypeStruct((N, H), jnp.float32),
        grid=(B,),                              # one sequence per grid step
        in_specs=[
            pl.BlockSpec((S, H), lambda b: (b, 0)),            # x (per batch)
            pl.BlockSpec((1, H), lambda b: (0, 0)),            # g_attn
            pl.BlockSpec((H, 3 * H), lambda b: (0, 0)),        # wqkv (bf16)
            pl.BlockSpec((1, 3 * H), lambda b: (0, 0)),        # bqkv
            pl.BlockSpec((H, H), lambda b: (0, 0)),            # wo (bf16)
            pl.BlockSpec((1, H), lambda b: (0, 0)),            # bo
            pl.BlockSpec((1, H), lambda b: (0, 0)),            # g_ffn
            pl.BlockSpec((H, 2 * INTER), lambda b: (0, 0)),    # w13 (bf16)
            pl.BlockSpec((INTER, H), lambda b: (0, 0)),        # w2 (bf16)
        ],
        out_specs=pl.BlockSpec((S, H), lambda b: (b, 0)),
        compiler_params=pltpu.CompilerParams(
            dimension_semantics=("parallel",)),                # v7x: both TCs
        cost_estimate=cost,
    )(x2, fused["g_attn"], fused["wqkv"], fused["bqkv"], fused["wo"],
      fused["bo"], fused["g_ffn"], fused["w13"], fused["w2"])
    return out.reshape(B, S, H), aux_loss_sum   # no MoE -> aux_loss_sum unchanged


# ---- pure-JAX f32 reference for a sanity check --------------------------------
def reference_block(x, p):
    def rmsnorm(t, g):
        ms = jnp.mean(t * t, axis=-1, keepdims=True)
        return t * lax.rsqrt(ms + EPS) * g[0]

    xn = rmsnorm(x, p["g_attn"])
    q = xn @ p["wq"] + p["bq"][0]
    k = xn @ p["wk"] + p["bk"][0]
    v = xn @ p["wv"] + p["bv"][0]
    B, S, H = x.shape
    qh = q.reshape(B, S, NUM_HEADS, HEAD_DIM).transpose(0, 2, 1, 3)
    kh = k.reshape(B, S, NUM_HEADS, HEAD_DIM).transpose(0, 2, 1, 3)
    vh = v.reshape(B, S, NUM_HEADS, HEAD_DIM).transpose(0, 2, 1, 3)
    s = jnp.einsum("bhqd,bhkd->bhqk", qh, kh) / math.sqrt(HEAD_DIM)
    pm = jax.nn.softmax(s, axis=-1)
    o = jnp.einsum("bhqk,bhkd->bhqd", pm, vh)
    o = o.transpose(0, 2, 1, 3).reshape(B, S, H)
    attn = o @ p["wo"] + p["bo"][0]
    h1 = x + attn
    hn = rmsnorm(h1, p["g_ffn"])
    a = hn @ p["w1"]
    b = hn @ p["w3"]
    return h1 + (jax.nn.silu(a) * b) @ p["w2"]


if __name__ == "__main__":
    key = jax.random.PRNGKey(0)
    keys = jax.random.split(key, 16)

    def init(k, shape, scale=0.05):
        return scale * jax.random.normal(k, shape, dtype=jnp.float32)

    params = {
        "g_attn": jnp.ones((1, HIDDEN), jnp.float32),   # RMSNorm weight (init ones)
        "g_ffn": jnp.ones((1, HIDDEN), jnp.float32),
        "wq": init(keys[0], (HIDDEN, HIDDEN)),
        "wk": init(keys[1], (HIDDEN, HIDDEN)),
        "wv": init(keys[2], (HIDDEN, HIDDEN)),
        "bq": init(keys[3], (1, HIDDEN)),
        "bk": init(keys[4], (1, HIDDEN)),
        "bv": init(keys[5], (1, HIDDEN)),
        "wo": init(keys[6], (HIDDEN, HIDDEN)),
        "bo": init(keys[7], (1, HIDDEN)),
        "w1": init(keys[8], (HIDDEN, INTER)),
        "w3": init(keys[9], (HIDDEN, INTER)),
        "w2": init(keys[10], (INTER, HIDDEN)),
    }

    # One-time fusion / bf16 conversion (outside the jitted per-step forward).
    fused = prepare_params(params)
    fused = jax.tree_util.tree_map(jax.block_until_ready, fused)

    x = jax.random.normal(keys[11], (BATCH, SEQ, HIDDEN), dtype=jnp.float32)
    aux_loss_sum = jnp.float32(0.0)

    out, aux = transformer_block(x, fused, aux_loss_sum)
    out = jax.block_until_ready(out)

    ref = reference_block(x, params)
    # 2e-2 tolerance covers the bf16 MXU operands (f32 accumulation) and the
    # approximate EUP reciprocal used for the softmax normalization.
    np.testing.assert_allclose(np.asarray(out), np.asarray(ref), rtol=2e-2, atol=2e-2)
    assert float(aux) == 0.0

    print("KERNEL_OK")
</pallas_src>

<mosaic_0001>
module attributes {stable_mosaic.version = 11 : i64} {
  func.func @transformer_block_kernel(%arg0: i32, %arg1: memref<8x256xf32, #tpu.memory_space<vmem>>, %arg2: memref<1x256xf32, #tpu.memory_space<vmem>>, %arg3: memref<256x768xbf16, #tpu.memory_space<vmem>>, %arg4: memref<1x768xf32, #tpu.memory_space<vmem>>, %arg5: memref<256x256xbf16, #tpu.memory_space<vmem>>, %arg6: memref<1x256xf32, #tpu.memory_space<vmem>>, %arg7: memref<1x256xf32, #tpu.memory_space<vmem>>, %arg8: memref<256x2048xbf16, #tpu.memory_space<vmem>>, %arg9: memref<1024x256xbf16, #tpu.memory_space<vmem>>, %arg10: memref<8x256xf32, #tpu.memory_space<vmem>>) attributes {dimension_semantics = [#tpu.dimension_semantics<parallel>], iteration_bounds = array<i64: 2>, scalar_prefetch = 0 : i64, scratch_operands = 0 : i64, tpu.core_type = #tpu.core_type<tc>, window_params = [{transform_indices = @transform_0, window_bounds = array<i64: 8, 256>}, {pipeline_mode = #tpu.pipeline_mode<synchronous>, transform_indices = @transform_1, window_bounds = array<i64: 1, 256>}, {pipeline_mode = #tpu.pipeline_mode<synchronous>, transform_indices = @transform_2, window_bounds = array<i64: 256, 768>}, {pipeline_mode = #tpu.pipeline_mode<synchronous>, transform_indices = @transform_3, window_bounds = array<i64: 1, 768>}, {pipeline_mode = #tpu.pipeline_mode<synchronous>, transform_indices = @transform_4, window_bounds = array<i64: 256, 256>}, {pipeline_mode = #tpu.pipeline_mode<synchronous>, transform_indices = @transform_5, window_bounds = array<i64: 1, 256>}, {pipeline_mode = #tpu.pipeline_mode<synchronous>, transform_indices = @transform_6, window_bounds = array<i64: 1, 256>}, {pipeline_mode = #tpu.pipeline_mode<synchronous>, transform_indices = @transform_7, window_bounds = array<i64: 256, 2048>}, {pipeline_mode = #tpu.pipeline_mode<synchronous>, transform_indices = @transform_8, window_bounds = array<i64: 1024, 256>}, {transform_indices = @transform_9, window_bounds = array<i64: 8, 256>}]} {
    %c0 = arith.constant 0 : index
    %c0_0 = arith.constant 0 : index
    %0 = vector.load %arg1[%c0, %c0_0] : memref<8x256xf32, #tpu.memory_space<vmem>>, vector<8x256xf32>
    %c0_1 = arith.constant 0 : index
    %c0_2 = arith.constant 0 : index
    %1 = vector.load %arg2[%c0_1, %c0_2] : memref<1x256xf32, #tpu.memory_space<vmem>>, vector<1x256xf32>
    %2 = arith.mulf %0, %0 : vector<8x256xf32>
    %cst = arith.constant dense<0.000000e+00> : vector<8xf32>
    %3 = vector.multi_reduction <add>, %2, %cst [1] : vector<8x256xf32> to vector<8xf32>
    %4 = vector.shape_cast %3 : vector<8xf32> to vector<8x1xf32>
    %cst_3 = arith.constant 2.560000e+02 : f32
    %5 = vector.broadcast %cst_3 : f32 to vector<8x1xf32>
    %6 = arith.divf %4, %5 : vector<8x1xf32>
    %cst_4 = arith.constant 9.99999997E-7 : f32
    %7 = vector.broadcast %cst_4 : f32 to vector<8x1xf32>
    %8 = arith.addf %6, %7 : vector<8x1xf32>
    %9 = math.rsqrt %8 : vector<8x1xf32>
    %10 = vector.broadcast %9 : vector<8x1xf32> to vector<8x256xf32>
    %11 = arith.mulf %0, %10 : vector<8x256xf32>
    %12 = vector.broadcast %1 : vector<1x256xf32> to vector<8x256xf32>
    %13 = arith.mulf %11, %12 : vector<8x256xf32>
    %14 = arith.truncf %13 : vector<8x256xf32> to vector<8x256xbf16>
    %c0_5 = arith.constant 0 : index
    %c0_6 = arith.constant 0 : index
    %15 = vector.load %arg3[%c0_5, %c0_6] : memref<256x768xbf16, #tpu.memory_space<vmem>>, vector<256x768xbf16>
    %cst_7 = arith.constant dense<0.000000e+00> : vector<8x768xf32>
    %16 = tpu.matmul %14, %15, %cst_7 {dimension_numbers = #tpu.dot_dimension_numbers<[1], [0], [0], [1], [0, 0, 1, 1], [], []>} : vector<8x256xbf16>, vector<256x768xbf16>, vector<8x768xf32> -> vector<8x768xf32>
    %c0_8 = arith.constant 0 : index
    %c0_9 = arith.constant 0 : index
    %17 = vector.load %arg4[%c0_8, %c0_9] : memref<1x768xf32, #tpu.memory_space<vmem>>, vector<1x768xf32>
    %18 = vector.broadcast %17 : vector<1x768xf32> to vector<8x768xf32>
    %19 = arith.addf %16, %18 : vector<8x768xf32>
    %cst_10 = arith.constant 0.000000e+00 : f32
    %20 = vector.broadcast %cst_10 : f32 to vector<8x256xf32>
    %21 = vector.extract_strided_slice %19 {offsets = [0, 0], sizes = [8, 64], strides = [1, 1]} : vector<8x768xf32> to vector<8x64xf32>
    %22 = vector.extract_strided_slice %19 {offsets = [0, 256], sizes = [8, 64], strides = [1, 1]} : vector<8x768xf32> to vector<8x64xf32>
    %23 = vector.extract_strided_slice %19 {offsets = [0, 512], sizes = [8, 64], strides = [1, 1]} : vector<8x768xf32> to vector<8x64xf32>
    %24 = arith.truncf %21 : vector<8x64xf32> to vector<8x64xbf16>
    %25 = arith.truncf %22 : vector<8x64xf32> to vector<8x64xbf16>
    %cst_11 = arith.constant dense<0.000000e+00> : vector<8x8xf32>
    %26 = tpu.matmul %24, %25, %cst_11 {dimension_numbers = #tpu.dot_dimension_numbers<[1], [1], [0], [0], [0, 0, 1, 0], [], []>} : vector<8x64xbf16>, vector<8x64xbf16>, vector<8x8xf32> -> vector<8x8xf32>
    %cst_12 = arith.constant dense<0xFF800000> : vector<8xf32>
    %27 = vector.multi_reduction <maximumf>, %26, %cst_12 [1] : vector<8x8xf32> to vector<8xf32>
    %28 = vector.shape_cast %27 : vector<8xf32> to vector<8x1xf32>
    %29 = vector.broadcast %28 : vector<8x1xf32> to vector<8x8xf32>
    %30 = arith.subf %26, %29 : vector<8x8xf32>
    %31 = math.exp %30 : vector<8x8xf32>
    %cst_13 = arith.constant dense<0.000000e+00> : vector<8xf32>
    %32 = vector.multi_reduction <add>, %31, %cst_13 [1] : vector<8x8xf32> to vector<8xf32>
    %33 = vector.shape_cast %32 : vector<8xf32> to vector<8x1xf32>
    %34 = tpu.reciprocal %33 {approx = true} : vector<8x1xf32> -> vector<8x1xf32>
    %35 = vector.broadcast %34 : vector<8x1xf32> to vector<8x8xf32>
    %36 = arith.mulf %31, %35 : vector<8x8xf32>
    %37 = arith.truncf %36 : vector<8x8xf32> to vector<8x8xbf16>
    %38 = arith.truncf %23 : vector<8x64xf32> to vector<8x64xbf16>
    %cst_14 = arith.constant dense<0.000000e+00> : vector<8x64xf32>
    %39 = tpu.matmul %37, %38, %cst_14 {dimension_numbers = #tpu.dot_dimension_numbers<[1], [0], [0], [1], [0, 0, 1, 1], [], []>} : vector<8x8xbf16>, vector<8x64xbf16>, vector<8x64xf32> -> vector<8x64xf32>
    %40 = arith.truncf %39 : vector<8x64xf32> to vector<8x64xbf16>
    %c0_15 = arith.constant 0 : index
    %c0_16 = arith.constant 0 : index
    %41 = vector.load %arg5[%c0_15, %c0_16] : memref<256x256xbf16, #tpu.memory_space<vmem>>, vector<64x256xbf16>
    %cst_17 = arith.constant dense<0.000000e+00> : vector<8x256xf32>
    %42 = tpu.matmul %40, %41, %cst_17 {dimension_numbers = #tpu.dot_dimension_numbers<[1], [0], [0], [1], [0, 0, 1, 1], [], []>} : vector<8x64xbf16>, vector<64x256xbf16>, vector<8x256xf32> -> vector<8x256xf32>
    %43 = arith.addf %20, %42 : vector<8x256xf32>
    %44 = vector.extract_strided_slice %19 {offsets = [0, 64], sizes = [8, 64], strides = [1, 1]} : vector<8x768xf32> to vector<8x64xf32>
    %45 = vector.extract_strided_slice %19 {offsets = [0, 320], sizes = [8, 64], strides = [1, 1]} : vector<8x768xf32> to vector<8x64xf32>
    %46 = vector.extract_strided_slice %19 {offsets = [0, 576], sizes = [8, 64], strides = [1, 1]} : vector<8x768xf32> to vector<8x64xf32>
    %47 = arith.truncf %44 : vector<8x64xf32> to vector<8x64xbf16>
    %48 = arith.truncf %45 : vector<8x64xf32> to vector<8x64xbf16>
    %cst_18 = arith.constant dense<0.000000e+00> : vector<8x8xf32>
    %49 = tpu.matmul %47, %48, %cst_18 {dimension_numbers = #tpu.dot_dimension_numbers<[1], [1], [0], [0], [0, 0, 1, 0], [], []>} : vector<8x64xbf16>, vector<8x64xbf16>, vector<8x8xf32> -> vector<8x8xf32>
    %cst_19 = arith.constant dense<0xFF800000> : vector<8xf32>
    %50 = vector.multi_reduction <maximumf>, %49, %cst_19 [1] : vector<8x8xf32> to vector<8xf32>
    %51 = vector.shape_cast %50 : vector<8xf32> to vector<8x1xf32>
    %52 = vector.broadcast %51 : vector<8x1xf32> to vector<8x8xf32>
    %53 = arith.subf %49, %52 : vector<8x8xf32>
    %54 = math.exp %53 : vector<8x8xf32>
    %cst_20 = arith.constant dense<0.000000e+00> : vector<8xf32>
    %55 = vector.multi_reduction <add>, %54, %cst_20 [1] : vector<8x8xf32> to vector<8xf32>
    %56 = vector.shape_cast %55 : vector<8xf32> to vector<8x1xf32>
    %57 = tpu.reciprocal %56 {approx = true} : vector<8x1xf32> -> vector<8x1xf32>
    %58 = vector.broadcast %57 : vector<8x1xf32> to vector<8x8xf32>
    %59 = arith.mulf %54, %58 : vector<8x8xf32>
    %60 = arith.truncf %59 : vector<8x8xf32> to vector<8x8xbf16>
    %61 = arith.truncf %46 : vector<8x64xf32> to vector<8x64xbf16>
    %cst_21 = arith.constant dense<0.000000e+00> : vector<8x64xf32>
    %62 = tpu.matmul %60, %61, %cst_21 {dimension_numbers = #tpu.dot_dimension_numbers<[1], [0], [0], [1], [0, 0, 1, 1], [], []>} : vector<8x8xbf16>, vector<8x64xbf16>, vector<8x64xf32> -> vector<8x64xf32>
    %63 = arith.truncf %62 : vector<8x64xf32> to vector<8x64xbf16>
    %c64 = arith.constant 64 : index
    %c0_22 = arith.constant 0 : index
    %64 = vector.load %arg5[%c64, %c0_22] : memref<256x256xbf16, #tpu.memory_space<vmem>>, vector<64x256xbf16>
    %cst_23 = arith.constant dense<0.000000e+00> : vector<8x256xf32>
    %65 = tpu.matmul %63, %64, %cst_23 {dimension_numbers = #tpu.dot_dimension_numbers<[1], [0], [0], [1], [0, 0, 1, 1], [], []>} : vector<8x64xbf16>, vector<64x256xbf16>, vector<8x256xf32> -> vector<8x256xf32>
    %66 = arith.addf %43, %65 : vector<8x256xf32>
    %67 = vector.extract_strided_slice %19 {offsets = [0, 128], sizes = [8, 64], strides = [1, 1]} : vector<8x768xf32> to vector<8x64xf32>
    %68 = vector.extract_strided_slice %19 {offsets = [0, 384], sizes = [8, 64], strides = [1, 1]} : vector<8x768xf32> to vector<8x64xf32>
    %69 = vector.extract_strided_slice %19 {offsets = [0, 640], sizes = [8, 64], strides = [1, 1]} : vector<8x768xf32> to vector<8x64xf32>
    %70 = arith.truncf %67 : vector<8x64xf32> to vector<8x64xbf16>
    %71 = arith.truncf %68 : vector<8x64xf32> to vector<8x64xbf16>
    %cst_24 = arith.constant dense<0.000000e+00> : vector<8x8xf32>
    %72 = tpu.matmul %70, %71, %cst_24 {dimension_numbers = #tpu.dot_dimension_numbers<[1], [1], [0], [0], [0, 0, 1, 0], [], []>} : vector<8x64xbf16>, vector<8x64xbf16>, vector<8x8xf32> -> vector<8x8xf32>
    %cst_25 = arith.constant dense<0xFF800000> : vector<8xf32>
    %73 = vector.multi_reduction <maximumf>, %72, %cst_25 [1] : vector<8x8xf32> to vector<8xf32>
    %74 = vector.shape_cast %73 : vector<8xf32> to vector<8x1xf32>
    %75 = vector.broadcast %74 : vector<8x1xf32> to vector<8x8xf32>
    %76 = arith.subf %72, %75 : vector<8x8xf32>
    %77 = math.exp %76 : vector<8x8xf32>
    %cst_26 = arith.constant dense<0.000000e+00> : vector<8xf32>
    %78 = vector.multi_reduction <add>, %77, %cst_26 [1] : vector<8x8xf32> to vector<8xf32>
    %79 = vector.shape_cast %78 : vector<8xf32> to vector<8x1xf32>
    %80 = tpu.reciprocal %79 {approx = true} : vector<8x1xf32> -> vector<8x1xf32>
    %81 = vector.broadcast %80 : vector<8x1xf32> to vector<8x8xf32>
    %82 = arith.mulf %77, %81 : vector<8x8xf32>
    %83 = arith.truncf %82 : vector<8x8xf32> to vector<8x8xbf16>
    %84 = arith.truncf %69 : vector<8x64xf32> to vector<8x64xbf16>
    %cst_27 = arith.constant dense<0.000000e+00> : vector<8x64xf32>
    %85 = tpu.matmul %83, %84, %cst_27 {dimension_numbers = #tpu.dot_dimension_numbers<[1], [0], [0], [1], [0, 0, 1, 1], [], []>} : vector<8x8xbf16>, vector<8x64xbf16>, vector<8x64xf32> -> vector<8x64xf32>
    %86 = arith.truncf %85 : vector<8x64xf32> to vector<8x64xbf16>
    %c128 = arith.constant 128 : index
    %c0_28 = arith.constant 0 : index
    %87 = vector.load %arg5[%c128, %c0_28] : memref<256x256xbf16, #tpu.memory_space<vmem>>, vector<64x256xbf16>
    %cst_29 = arith.constant dense<0.000000e+00> : vector<8x256xf32>
    %88 = tpu.matmul %86, %87, %cst_29 {dimension_numbers = #tpu.dot_dimension_numbers<[1], [0], [0], [1], [0, 0, 1, 1], [], []>} : vector<8x64xbf16>, vector<64x256xbf16>, vector<8x256xf32> -> vector<8x256xf32>
    %89 = arith.addf %66, %88 : vector<8x256xf32>
    %90 = vector.extract_strided_slice %19 {offsets = [0, 192], sizes = [8, 64], strides = [1, 1]} : vector<8x768xf32> to vector<8x64xf32>
    %91 = vector.extract_strided_slice %19 {offsets = [0, 448], sizes = [8, 64], strides = [1, 1]} : vector<8x768xf32> to vector<8x64xf32>
    %92 = vector.extract_strided_slice %19 {offsets = [0, 704], sizes = [8, 64], strides = [1, 1]} : vector<8x768xf32> to vector<8x64xf32>
    %93 = arith.truncf %90 : vector<8x64xf32> to vector<8x64xbf16>
    %94 = arith.truncf %91 : vector<8x64xf32> to vector<8x64xbf16>
    %cst_30 = arith.constant dense<0.000000e+00> : vector<8x8xf32>
    %95 = tpu.matmul %93, %94, %cst_30 {dimension_numbers = #tpu.dot_dimension_numbers<[1], [1], [0], [0], [0, 0, 1, 0], [], []>} : vector<8x64xbf16>, vector<8x64xbf16>, vector<8x8xf32> -> vector<8x8xf32>
    %cst_31 = arith.constant dense<0xFF800000> : vector<8xf32>
    %96 = vector.multi_reduction <maximumf>, %95, %cst_31 [1] : vector<8x8xf32> to vector<8xf32>
    %97 = vector.shape_cast %96 : vector<8xf32> to vector<8x1xf32>
    %98 = vector.broadcast %97 : vector<8x1xf32> to vector<8x8xf32>
    %99 = arith.subf %95, %98 : vector<8x8xf32>
    %100 = math.exp %99 : vector<8x8xf32>
    %cst_32 = arith.constant dense<0.000000e+00> : vector<8xf32>
    %101 = vector.multi_reduction <add>, %100, %cst_32 [1] : vector<8x8xf32> to vector<8xf32>
    %102 = vector.shape_cast %101 : vector<8xf32> to vector<8x1xf32>
    %103 = tpu.reciprocal %102 {approx = true} : vector<8x1xf32> -> vector<8x1xf32>
    %104 = vector.broadcast %103 : vector<8x1xf32> to vector<8x8xf32>
    %105 = arith.mulf %100, %104 : vector<8x8xf32>
    %106 = arith.truncf %105 : vector<8x8xf32> to vector<8x8xbf16>
    %107 = arith.truncf %92 : vector<8x64xf32> to vector<8x64xbf16>
    %cst_33 = arith.constant dense<0.000000e+00> : vector<8x64xf32>
    %108 = tpu.matmul %106, %107, %cst_33 {dimension_numbers = #tpu.dot_dimension_numbers<[1], [0], [0], [1], [0, 0, 1, 1], [], []>} : vector<8x8xbf16>, vector<8x64xbf16>, vector<8x64xf32> -> vector<8x64xf32>
    %109 = arith.truncf %108 : vector<8x64xf32> to vector<8x64xbf16>
    %c192 = arith.constant 192 : index
    %c0_34 = arith.constant 0 : index
    %110 = vector.load %arg5[%c192, %c0_34] : memref<256x256xbf16, #tpu.memory_space<vmem>>, vector<64x256xbf16>
    %cst_35 = arith.constant dense<0.000000e+00> : vector<8x256xf32>
    %111 = tpu.matmul %109, %110, %cst_35 {dimension_numbers = #tpu.dot_dimension_numbers<[1], [0], [0], [1], [0, 0, 1, 1], [], []>} : vector<8x64xbf16>, vector<64x256xbf16>, vector<8x256xf32> -> vector<8x256xf32>
    %112 = arith.addf %89, %111 : vector<8x256xf32>
    %113 = arith.addf %0, %112 : vector<8x256xf32>
    %c0_36 = arith.constant 0 : index
    %c0_37 = arith.constant 0 : index
    %114 = vector.load %arg6[%c0_36, %c0_37] : memref<1x256xf32, #tpu.memory_space<vmem>>, vector<1x256xf32>
    %115 = vector.broadcast %114 : vector<1x256xf32> to vector<8x256xf32>
    %116 = arith.addf %113, %115 : vector<8x256xf32>
    %c0_38 = arith.constant 0 : index
    %c0_39 = arith.constant 0 : index
    %117 = vector.load %arg7[%c0_38, %c0_39] : memref<1x256xf32, #tpu.memory_space<vmem>>, vector<1x256xf32>
    %118 = arith.mulf %116, %116 : vector<8x256xf32>
    %cst_40 = arith.constant dense<0.000000e+00> : vector<8xf32>
    %119 = vector.multi_reduction <add>, %118, %cst_40 [1] : vector<8x256xf32> to vector<8xf32>
    %120 = vector.shape_cast %119 : vector<8xf32> to vector<8x1xf32>
    %cst_41 = arith.constant 2.560000e+02 : f32
    %121 = vector.broadcast %cst_41 : f32 to vector<8x1xf32>
    %122 = arith.divf %120, %121 : vector<8x1xf32>
    %cst_42 = arith.constant 9.99999997E-7 : f32
    %123 = vector.broadcast %cst_42 : f32 to vector<8x1xf32>
    %124 = arith.addf %122, %123 : vector<8x1xf32>
    %125 = math.rsqrt %124 : vector<8x1xf32>
    %126 = vector.broadcast %125 : vector<8x1xf32> to vector<8x256xf32>
    %127 = arith.mulf %116, %126 : vector<8x256xf32>
    %128 = vector.broadcast %117 : vector<1x256xf32> to vector<8x256xf32>
    %129 = arith.mulf %127, %128 : vector<8x256xf32>
    %130 = arith.truncf %129 : vector<8x256xf32> to vector<8x256xbf16>
    %c0_43 = arith.constant 0 : index
    %c0_44 = arith.constant 0 : index
    %131 = vector.load %arg8[%c0_43, %c0_44] : memref<256x2048xbf16, #tpu.memory_space<vmem>>, vector<256x2048xbf16>
    %cst_45 = arith.constant dense<0.000000e+00> : vector<8x2048xf32>
    %132 = tpu.matmul %130, %131, %cst_45 {dimension_numbers = #tpu.dot_dimension_numbers<[1], [0], [0], [1], [0, 0, 1, 1], [], []>} : vector<8x256xbf16>, vector<256x2048xbf16>, vector<8x2048xf32> -> vector<8x2048xf32>
    %133 = vector.extract_strided_slice %132 {offsets = [0, 0], sizes = [8, 1024], strides = [1, 1]} : vector<8x2048xf32> to vector<8x1024xf32>
    %134 = vector.extract_strided_slice %132 {offsets = [0, 1024], sizes = [8, 1024], strides = [1, 1]} : vector<8x2048xf32> to vector<8x1024xf32>
    %135 = arith.negf %133 : vector<8x1024xf32>
    %136 = math.exp %135 : vector<8x1024xf32>
    %cst_46 = arith.constant 1.000000e+00 : f32
    %137 = vector.broadcast %cst_46 : f32 to vector<8x1024xf32>
    %138 = arith.addf %137, %136 : vector<8x1024xf32>
    %139 = arith.divf %137, %138 : vector<8x1024xf32>
    %140 = arith.mulf %133, %139 : vector<8x1024xf32>
    %141 = arith.mulf %140, %134 : vector<8x1024xf32>
    %142 = arith.truncf %141 : vector<8x1024xf32> to vector<8x1024xbf16>
    %c0_47 = arith.constant 0 : index
    %c0_48 = arith.constant 0 : index
    %143 = vector.load %arg9[%c0_47, %c0_48] : memref<1024x256xbf16, #tpu.memory_space<vmem>>, vector<1024x256xbf16>
    %cst_49 = arith.constant dense<0.000000e+00> : vector<8x256xf32>
    %144 = tpu.matmul %142, %143, %cst_49 {dimension_numbers = #tpu.dot_dimension_numbers<[1], [0], [0], [1], [0, 0, 1, 1], [], []>} : vector<8x1024xbf16>, vector<1024x256xbf16>, vector<8x256xf32> -> vector<8x256xf32>
    %145 = arith.addf %116, %144 : vector<8x256xf32>
    %c0_50 = arith.constant 0 : index
    %c0_51 = arith.constant 0 : index
    %146 = vector.load %arg10[%c0_50, %c0_51] : memref<8x256xf32, #tpu.memory_space<vmem>>, vector<8x256xf32>
    tpu.vector_store %arg10[%c0_50, %c0_51], %145 {strides = array<i32>} : memref<8x256xf32, #tpu.memory_space<vmem>>, vector<8x256xf32>,
    return
  }
  func.func @transform_0(%arg0: i32) -> (i32, i32) {
    %c0_i32 = arith.constant 0 : i32
    %c0_i32_0 = arith.constant 0 : i32
    return %arg0, %c0_i32 : i32, i32
  }
  func.func @transform_1(%arg0: i32) -> (i32, i32) {
    %c0_i32 = arith.constant 0 : i32
    %c0_i32_0 = arith.constant 0 : i32
    %c0_i32_1 = arith.constant 0 : i32
    return %c0_i32, %c0_i32_0 : i32, i32
  }
  func.func @transform_2(%arg0: i32) -> (i32, i32) {
    %c0_i32 = arith.constant 0 : i32
    %c0_i32_0 = arith.constant 0 : i32
    %c0_i32_1 = arith.constant 0 : i32
    return %c0_i32, %c0_i32_0 : i32, i32
  }
  func.func @transform_3(%arg0: i32) -> (i32, i32) {
    %c0_i32 = arith.constant 0 : i32
    %c0_i32_0 = arith.constant 0 : i32
    %c0_i32_1 = arith.constant 0 : i32
    return %c0_i32, %c0_i32_0 : i32, i32
  }
  func.func @transform_4(%arg0: i32) -> (i32, i32) {
    %c0_i32 = arith.constant 0 : i32
    %c0_i32_0 = arith.constant 0 : i32
    %c0_i32_1 = arith.constant 0 : i32
    return %c0_i32, %c0_i32_0 : i32, i32
  }
  func.func @transform_5(%arg0: i32) -> (i32, i32) {
    %c0_i32 = arith.constant 0 : i32
    %c0_i32_0 = arith.constant 0 : i32
    %c0_i32_1 = arith.constant 0 : i32
    return %c0_i32, %c0_i32_0 : i32, i32
  }
  func.func @transform_6(%arg0: i32) -> (i32, i32) {
    %c0_i32 = arith.constant 0 : i32
    %c0_i32_0 = arith.constant 0 : i32
    %c0_i32_1 = arith.constant 0 : i32
    return %c0_i32, %c0_i32_0 : i32, i32
  }
  func.func @transform_7(%arg0: i32) -> (i32, i32) {
    %c0_i32 = arith.constant 0 : i32
    %c0_i32_0 = arith.constant 0 : i32
    %c0_i32_1 = arith.constant 0 : i32
    return %c0_i32, %c0_i32_0 : i32, i32
  }
  func.func @transform_8(%arg0: i32) -> (i32, i32) {
    %c0_i32 = arith.constant 0 : i32
    %c0_i32_0 = arith.constant 0 : i32
    %c0_i32_1 = arith.constant 0 : i32
    return %c0_i32, %c0_i32_0 : i32, i32
  }
  func.func @transform_9(%arg0: i32) -> (i32, i32) {
    %c0_i32 = arith.constant 0 : i32
    %c0_i32_0 = arith.constant 0 : i32
    return %arg0, %c0_i32 : i32, i32
  }
}

</mosaic_0001>

<bundles_post_ra>
// kernel: transformer_block.1
= control target key start
LH: loop header
LB: loop body
LE: loop exit
PB: predicated region body
PF: predicated region fallthrough
CT: control target
= control target key end

     0   :  { %s6945_s0 = inlined_call_operand.hbm [shape: f32[16,256], index: 0, kind: input, shape index: {}]   ;;  %s6946_s1 = inlined_call_operand.vmem [shape: f32[1,256], index: 1, kind: input, shape index: {}]   ;;  %s6947_s2 = inlined_call_operand.hbm [shape: bf16[256,768], index: 2, kind: input, shape index: {}]   ;;  %s6948_s3 = inlined_call_operand.vmem [shape: f32[1,768], index: 3, kind: input, shape index: {}]   ;;  %s6949_s4 = inlined_call_operand.hbm [shape: bf16[256,256], index: 4, kind: input, shape index: {}]   ;;  %s6950_s5 = inlined_call_operand.hbm [shape: f32[1,256], index: 5, kind: input, shape index: {}]   ;;  %s6951_s6 = inlined_call_operand.vmem [shape: f32[1,256], index: 6, kind: input, shape index: {}]   ;;  %s6952_s7 = inlined_call_operand.hbm [shape: bf16[256,2048], index: 7, kind: input, shape index: {}]   ;;  %s6953_s8 = inlined_call_operand.hbm [shape: bf16[1024,256], index: 8, kind: input, shape index: {}]   ;;  %s6954_s9 = inlined_call_operand.hbm [shape: f32[16,256], index: 9, kind: output, shape index: {}]  }
   0x1   :  { %6959 = sst [smem:[#allocation19_spill]] %s6947_s2 }
   0x2   :  { %6960 = sst [smem:[#allocation20_spill]] %s6949_s4 }
   0x3   :  { %6961 = sst [smem:[#allocation21_spill]] %s6950_s5 }
   0x4   :  { %6962 = sst [smem:[#allocation22_spill]] %s6952_s7 }
   0x5   :  { %14 = vsyncpa [#allocation3], 0 }
   0x6   :  { %16 = vsyncpa [#allocation3 + $0x1], 0 }
   0x7   :  { %17 = vsyncpa [#allocation6], 0 }
   0x8   :  { %18 = vsyncpa [#allocation9], 0 }
   0x9   :  { %19 = vsyncpa [#allocation12], 0 }
   0xa   :  { %20 = vsyncpa [#allocation4], 0 }
   0xb   :  { %22 = vsyncpa [#allocation4 + $0x1], 0  ;;  %s6517_s30 = smov 0   ;;  %s6519_s10 = smov 0  }
   0xc   :  { %s6521_s11 = smov 0   ;;  %s6523_s12 = smov 0  }
   0xd LB: > { %s6450_s13 = smov [#allocation5]   ;;  %s6538_s15 = sadd.s32 4294967295, %s6448_s12   ;;  %s6448_s12 = sphi %s6523_s12, %s6989_s12   ;;  %s6444_s11 = sphi %s6521_s11, %s6988_s11   ;;  %s6440_s10 = sphi %s6519_s10, %s6987_s10   ;;  %s6436_s30 = sphi %s6517_s30, %s6986_s30  }
   0xe   : > { %s268_s14 = sshll.u32 %s6450_s13, 4  ;;  %p5048_p0 = scmp.ge.s32.totalorder %s6448_s12, 1  ;;  %s269_s14 = int_to_ptr.vmem [resolvable:$true] %s268_s14 }
   0xf   : > { %p6955_p1 = scmp.eq.s32.totalorder %s6538_s15, 0  ;;  %p253_p2 = scmp.lt.s32.totalorder %s6448_s12, 3 }
  0x10   : > { %s6451_s17 = smov [#allocation8]   ;;  %s6452_s20 = smov [#allocation7]  }
  0x11   : > { %p6543_p3 = pnand %p5048_p0, %p253_p2  ;;  %s298_s18 = sshll.u32 %s6451_s17, 4  ;;  %s299_s18 = int_to_ptr.vmem [resolvable:$true] %s298_s18 }
  0x12   : > { %s284_s21 = sshll.u32 %s6452_s20, 4  ;;  %s6225_s23 = scalar_lea.vmem %s269_s14, 12288  ;;  %s6556_s21 = int_to_ptr.vmem [resolvable:$true] %s284_s21 }
  0x13   : > { %s6963_s16 = scalar_select %p6543_p3, 1, 0 }
  0x14   : > { %p5693_p5 = pneg %p6543_p3  ;;  %p6226_p8 = scmp.ne.s32.totalorder %s269_s14, %s6225_s23 }
  0x15   : > { %p6233_p11 = scmp.lt.s32.totalorder %s269_s14, %s269_s14  ;;  %p6234_p12 = scmp.lt.s32.totalorder %s6225_s23, %s6225_s23 }
  0x16   : > { %p6552_p6 = pnand %p5693_p5, %p6955_p1 }
  0x17   : > { %p6235_p13 = por %p6234_p12, %p6233_p11 }
  0x18   : > { %p6560_p7 = pneg %p6552_p6 }
  0x1a   : > { %p6228_p9 = pnand %p6226_p8, %p6560_p7 }
  0x1c   : > { %p6229_p10 = pneg %p6228_p9 }
  0x1e   : > { %p6236_p0 = pnand %p6235_p13, %p6229_p10 }
  0x20   : > { %6239 = shalt.err (!%p6236_p0)
}
  0x21   : > { %s6453_s24 = smov 384   ;;  %s6454_s25 = smov 24  }
  0x22   : > { %s6966_s2 = sld [smem:[#allocation19_spill]]  ;;  %s6251_s28 = scalar_lea.vmem %s299_s18, 32 }
  0x23   : > { %p6252_p2 = scmp.ne.s32.totalorder %s299_s18, %s6251_s28  ;;  %p6259_p9 = scmp.lt.s32.totalorder %s299_s18, %s299_s18 }
  0x24   : > { %p6260_p4 = scmp.lt.s32.totalorder %s6251_s28, %s6251_s28 }
  0x25   : > { %p6254_p5 = pnand %p6252_p2, %p6560_p7 }
  0x26   : > { %p6261_p1 = por %p6260_p4, %p6259_p9 }
  0x27   : > { %p6255_p8 = pneg %p6254_p5 }
  0x28   : > { %5696 = dma.hbm_to_vmem [thread:$0]  (!%p6552_p6), %s6966_s2, 12288, %s269_s14, [#allocation6], %s6453_s24, %s6453_s24, %s6454_s25  }
  0x29   : > { %p6262_p11 = pnand %p6261_p1, %p6255_p8 }
  0x2b   : > { %6265 = shalt.err (!%p6262_p11)
}
  0x2c   : > { %s6967_s5 = sld [smem:[#allocation21_spill]]  ;;  %s6277_s14 = scalar_lea.vmem %s6556_s21, 4096 }
  0x2d   : > { %p6278_p10 = scmp.ne.s32.totalorder %s6556_s21, %s6277_s14  ;;  %p6285_p0 = scmp.lt.s32.totalorder %s6556_s21, %s6556_s21 }
  0x2e   : > { %p6286_p4 = scmp.lt.s32.totalorder %s6277_s14, %s6277_s14 }
  0x2f   : > { %p6280_p12 = pnand %p6278_p10, %p6560_p7 }
  0x30   : > { %p6287_p1 = por %p6286_p4, %p6285_p0 }
  0x31   : > { %p6281_p13 = pneg %p6280_p12 }
  0x32   : > { %5702 = dma.hbm_to_vmem [thread:$0]  (!%p6552_p6), %s6967_s5, 32, %s299_s18, [#allocation9]  }
  0x33   : > { %p6288_p2 = pnand %p6287_p1, %p6281_p13 }
  0x35   : > { %6291 = shalt.err (!%p6288_p2)
}
  0x36   : > { %s6455_s17 = smov 128   ;;  %s6456_s20 = smov 8  }
  0x37   : > { %s6968_s4 = sld [smem:[#allocation20_spill]]  ;;  %s6457_s24 = smov [#allocation10]  }
  0x38   : > { %s311_s25 = sshll.u32 %s6457_s24, 4  ;;  %s312_s25 = int_to_ptr.vmem [resolvable:$true] %s311_s25 }
  0x39   : > { %s6303_s26 = scalar_lea.vmem %s312_s25, 32768  ;;  %p6311_p11 = scmp.lt.s32.totalorder %s312_s25, %s312_s25 }
  0x3a   : > { %p6304_p5 = scmp.ne.s32.totalorder %s312_s25, %s6303_s26  ;;  %p6312_p10 = scmp.lt.s32.totalorder %s6303_s26, %s6303_s26 }
  0x3c   : > { %p6306_p8 = pnand %p6304_p5, %p6560_p7  ;;  %p6313_p12 = por %p6312_p10, %p6311_p11 }
  0x3d   : > { %5699 = dma.hbm_to_vmem [thread:$0]  (!%p6552_p6), %s6968_s4, 4096, %s6556_s21, [#allocation6], %s6455_s17, %s6455_s17, %s6456_s20  }
  0x3e   : > { %p6307_p9 = pneg %p6306_p8 }
  0x40   : > { %p6314_p13 = pnand %p6313_p12, %p6307_p9 }
  0x42   : > { %6317 = shalt.err (!%p6314_p13)
}
  0x43   : > { %s6458_s27 = smov 1024   ;;  %s6459_s28 = smov 64  }
  0x44   : > { %s6969_s7 = sld [smem:[#allocation22_spill]]  ;;  %s6460_s13 = smov [#allocation11]  }
  0x45   : > { %s324_s14 = sshll.u32 %s6460_s13, 4  ;;  %s325_s14 = int_to_ptr.vmem [resolvable:$true] %s324_s14 }
  0x46   : > { %s6329_s18 = scalar_lea.vmem %s325_s14, 16384  ;;  %p6337_p2 = scmp.lt.s32.totalorder %s325_s14, %s325_s14 }
  0x47   : > { %p6330_p0 = scmp.ne.s32.totalorder %s325_s14, %s6329_s18  ;;  %p6338_p5 = scmp.lt.s32.totalorder %s6329_s18, %s6329_s18 }
  0x49   : > { %p6332_p4 = pnand %p6330_p0, %p6560_p7  ;;  %p6339_p8 = por %p6338_p5, %p6337_p2 }
  0x4a   : > { %5705 = dma.hbm_to_vmem [thread:$0]  (!%p6552_p6), %s6969_s7, 32768, %s312_s25, [#allocation9], %s6458_s27, %s6458_s27, %s6459_s28  }
  0x4b   : > { %p6333_p1 = pneg %p6332_p4 }
  0x4d   : > { %p6340_p9 = pnand %p6339_p8, %p6333_p1 }
  0x4f   : > { %6343 = shalt.err (!%p6340_p9)
}
  0x50   : > { %5708 = dma.hbm_to_vmem [thread:$0]  (!%p6552_p6), %s6953_s8, 16384, %s325_s14, [#allocation12], %s6455_s17, %s6455_s17, %s6456_s20  }
  0x51   : > { %s5047_s19 = sadd.s32 4294967294, %s6448_s12   ;;  %s6612_s22 = sadd.s32 1, %s6448_s12  }
  0x52   : > { %s35_s25 = sadd.s32 1, %s6444_s11  ;;  %s32_s26 = ssub.s32 %s6448_s12, %s6612_s22 }
  0x53   : > { %p42_p7 = scmp.ne.s32.totalorder %s6444_s11, %s6440_s10  ;;  %p33_p11 = scmp.eq.s32.totalorder %s32_s26, 0 }
  0x54   : > { %p43_p10 = scmp.eq.s32.totalorder %s6448_s12, 0  ;;  %p48_p12 = scmp.ne.s32.totalorder %s6440_s10, %s6436_s30 }
  0x55   : > { %p240_p13 = scmp.eq.s32.totalorder %s6538_s15, 1  ;;  %p6970_p4 = scmp.eq.s32.totalorder %s6538_s15, 0 }
  0x56   : > { %s6624_s27 = scalar_select %p33_p11, %s6444_s11, %s35_s25  }
  0x57   : > { %p44_p0 = por %p43_p10, %p42_p7  ;;  %p6628_p1 = por %p6970_p4, %p48_p12 }
  0x58   : > { %p6632_p6 = por %p240_p13, %p42_p7  ;;  %p246_p2 = scmp.eq.s32.totalorder %s5047_s19, 1 }
  0x59   : > { %s6971_s28 = scalar_select %p6628_p1, 1, 0 }
  0x5a   : > { %s6972_s17 = scalar_select %p6632_p6, 1, 0 }
  0x5b   : > { %p5722_p5 = scmp.lt.s32.totalorder %s6448_s12, 2  ;;  %s338_s20 = sand.u32 1, %s6444_s11  }
  0x5c   : > { %p6638_p8 = por %p246_p2, %p48_p12  ;;  %s5055_s21 = sshll.u32 %s338_s20, 4 }
  0x5d   : > { %s5603_s13 = sshll.u32 %s6448_s12, 8  ;;  %s342_s24 = scalar_lea.vmem [#allocation2], %s5055_s21 }
  0x5e   : > { %s6973_s29 = scalar_select %p6638_p8, 1, 0 }
  0x5f   : > { %s6646_s23 = scalar_lea.hbm %s6945_s0, %s5603_s13  ;;  %s350_s25 = sshll.u32 %s342_s24, 4  ;;  %s351_s25 = int_to_ptr.vmem [resolvable:$true] %s350_s25 }
  0x60   : > { %p6648_p9 = pnand %p5722_p5, %p44_p0  ;;  %s339_s26 = scalar_lea.sflag [#allocation3], %s338_s20 }
  0x61   : > { %s6344_s2 = scalar_lea.hbm %s6646_s23, 256  ;;  %s6349_s18 = scalar_lea.hbm %s6945_s0, 512 }
  0x62   : > { %p6345_p7 = scmp.ne.s32.totalorder %s6646_s23, %s6344_s2  ;;  %p6346_p11 = pneg %p6648_p9 }
  0x63   : > { %p6350_p13 = scmp.lt.s32.totalorder %s6646_s23, %s6945_s0  ;;  %p6351_p0 = scmp.lt.s32.totalorder %s6349_s18, %s6344_s2 }
  0x64   : > { %p6347_p10 = pnand %p6346_p11, %p6345_p7 }
  0x65   : > { %p6352_p4 = por %p6351_p0, %p6350_p13 }
  0x66   : > { %p6348_p12 = pneg %p6347_p10 }
  0x68   : > { %p6353_p2 = pnand %p6352_p4, %p6348_p12 }
  0x6a   : > { %6356 = shalt.err (!%p6353_p2)
}
  0x6b   : > { %s6357_s24 = scalar_lea.vmem %s351_s25, 256  ;;  %s6461_s20 = smov [#allocation2]  }
  0x6c   : > { %p6358_p5 = scmp.ne.s32.totalorder %s351_s25, %s6357_s24  ;;  %s6362_s5 = sshll.u32 %s6461_s20, 4  ;;  %s6363_s5 = int_to_ptr.vmem [resolvable:$false] %s6362_s5 }
  0x6d   : > { %s6364_s7 = scalar_lea.vmem %s6363_s5, 512  ;;  %p6365_p7 = scmp.lt.s32.totalorder %s351_s25, %s6363_s5 }
  0x6e   : > { %p6360_p8 = pnand %p6358_p5, %p6346_p11  ;;  %p6366_p10 = scmp.lt.s32.totalorder %s6364_s7, %s6357_s24 }
  0x70   : > { %p6361_p6 = pneg %p6360_p8  ;;  %p6367_p1 = por %p6366_p10, %p6365_p7 }
  0x72   : > { %p6368_p3 = pnand %p6367_p1, %p6361_p6 }
  0x74   : > { %6371 = shalt.err (!%p6368_p3)
}
  0x75   : > { %5712 = dma.hbm_to_vmem [thread:$0]  (!%p6648_p9), %s6646_s23, 256, %s351_s25, %s339_s26  }
  0x76   : > { %p6975_p12 = scmp.ne.s32.totalorder %s6963_s16, 0 }
  0x77   : > { %s6669_s2 = sand.u32 (!%p6975_p12), 1, %s6440_s10   ;;  %p6976_p3 = scmp.ne.s32.totalorder (!%p6975_p12), %s6971_s28, 0 }
  0x78   : > { %359 = sbr.rel (%p6975_p12) target bundleno = 3940 (0xf64), region = 56  ;;  %s5059_s4 = sshll.u32 (!%p6975_p12), %s6669_s2, 4 }
  0x79   : > { %s362_s5 = scalar_lea.sflag (!%p6975_p12), [#allocation3], %s6669_s2  ;;  %s6675_s7 = scalar_lea.vmem (!%p6975_p12), [#allocation2], %s5059_s4 }
  0x7d   : > { %6415 = dma.done.wait (%p6976_p3), %s362_s5, 256  }
  0x7e   : > { %6417 = vsyncadd (%p6976_p3), %s362_s5, 4294967040  ;;  %p6977_p1 = scmp.eq.s32.totalorder %s6538_s15, 0 }
  0x80   : > { %6419 = dma.done.wait (%p6977_p1), [#allocation6], 16384   ;;  %p6978_p6 = pmov %p6977_p1 }
  0x81   : > { %p6979_p8 = pmov %p6977_p1 }
  0x82   : > { %6421 = vsyncadd (%p6978_p6), [#allocation6], 4294950912 }
  0x83   : > { %6423 = dma.done.wait (%p6979_p8), [#allocation9], 32800   ;;  %p6980_p9 = pmov %p6977_p1 }
  0x84   : > { %p6981_p11 = pmov %p6977_p1 }
  0x85   : > { %6425 = vsyncadd (%p6980_p9), [#allocation9], 4294934496 }
  0x86   : > { %6427 = dma.done.wait (%p6981_p11), [#allocation12], 16384   ;;  %p6982_p13 = pmov %p6977_p1 }
  0x87   : > { %v6694_v0 = vld [vmem:[%s6675_s7] sm:$0xff]  ;;  %v6697_v1 = vld [vmem:[%s6675_s7 + $0x8] sm:$0xff]  ;;  %vm6463_vm0 = vmmov 0   ;;  %vm1183_vm1 = vcmask 523264   ;;  %vm1247_vm2 = vcmask 1043456   ;;  %vm1230_vm3 = vcmask 64512  }
  0x88   : > { %6429 = vsyncadd (%p6982_p13), [#allocation12], 4294950912  ;;  %v424_v2 = vmul.f32 %v6694_v0, %v6694_v0  ;;  %v425_v3 = vmul.f32 %v6697_v1, %v6697_v1  ;;  %v5776_v4 = vld [vmem:[#allocation5 + $0x154] ss:$24 sps:$4 sm:$0xff]   ;;  %v5778_v5 = vld [vmem:[#allocation5 + $0x150] ss:$24 sps:$4 sm:$0xff]  }
  0x89   : > { %v5779_v6 = vld [vmem:[#allocation5 + $0x15c] ss:$24 sps:$4 sm:$0xff]   ;;  %1058 = vmatprep.subr.bf16.mxu0 %v5776_v4  ;;  %v5781_v8 = vld [vmem:[#allocation5 + $0x158] ss:$24 sps:$4 sm:$0xff]   ;;  %v5785_v11 = vld [vmem:[#allocation5 + $0x12c] ss:$24 sps:$4 sm:$0xff]  }
  0x8a   : > { %v426_v7 = vadd.f32 %v425_v3, %v424_v2  ;;  %1059 = vmatpush1.bf16.msra.mxu0 %v5778_v5  ;;  %1099 = vmatprep.subr.bf16.mxu1 %v5779_v6  ;;  %v5782_v9 = vld [vmem:[#allocation5 + $0x124] ss:$24 sps:$4 sm:$0xff]   ;;  %v5784_v10 = vld [vmem:[#allocation5 + $0x120] ss:$24 sps:$4 sm:$0xff]   ;;  %v5788_v13 = vld [vmem:[#allocation5 + $0xf4] ss:$24 sps:$4 sm:$0xff]  }
  0x8b   : > { %1100 = vmatpush1.bf16.msra.mxu1 %v5781_v8  ;;  %v5787_v12 = vld [vmem:[#allocation5 + $0x128] ss:$24 sps:$4 sm:$0xff]   ;;  %1060 = vmatprep.subr.bf16.mxu0 %v5782_v9  ;;  %v5791_v15 = vld [vmem:[#allocation5 + $0xfc] ss:$24 sps:$4 sm:$0xff]   ;;  %v5793_v16 = vld [vmem:[#allocation5 + $0xf8] ss:$24 sps:$4 sm:$0xff]  }
  0x8c   : > { %427 = vadd.xlane.f32.xlu0 %v426_v7  ;;  %1101 = vmatprep.subr.bf16.mxu1 %v5785_v11  ;;  %v5790_v14 = vld [vmem:[#allocation5 + $0xf0] ss:$24 sps:$4 sm:$0xff]   ;;  %v5794_v17 = vld [vmem:[#allocation5 + $0xc4] ss:$24 sps:$4 sm:$0xff]   ;;  %v5796_v19 = vld [vmem:[#allocation5 + $0xc0] ss:$24 sps:$4 sm:$0xff]   ;;  %v436_v11 = vlaneseq }
  0x8d   : > { %v5797_v18 = vld [vmem:[#allocation5 + $0xcc] ss:$24 sps:$4 sm:$0xff]   ;;  %v5799_v20 = vld [vmem:[#allocation5 + $0xc8] ss:$24 sps:$4 sm:$0xff]   ;;  %v5803_v22 = vld [vmem:[#allocation5 + $0x9c] ss:$24 sps:$4 sm:$0xff]  }
  0x8e   : > { %1061 = vmatpush1.bf16.msra.mxu0 %v5784_v10  ;;  %v5800_v21 = vld [vmem:[#allocation5 + $0x94] ss:$24 sps:$4 sm:$0xff]   ;;  %v5802_v23 = vld [vmem:[#allocation5 + $0x90] ss:$24 sps:$4 sm:$0xff]   ;;  %v5806_v25 = vld [vmem:[#allocation5 + $0x64] ss:$24 sps:$4 sm:$0xff]  }
  0x8f   : > { %1102 = vmatpush1.bf16.msra.mxu1 %v5787_v12  ;;  %1062 = vmatprep.subr.bf16.mxu0 %v5788_v13  ;;  %v5805_v24 = vld [vmem:[#allocation5 + $0x98] ss:$24 sps:$4 sm:$0xff]   ;;  %v5809_v26 = vld [vmem:[#allocation5 + $0x6c] ss:$24 sps:$4 sm:$0xff]   ;;  %v5811_v28 = vld [vmem:[#allocation5 + $0x68] ss:$24 sps:$4 sm:$0xff]  }
  0x90   : > { %1103 = vmatprep.subr.bf16.mxu1 %v5791_v15  ;;  %v5808_v27 = vld [vmem:[#allocation5 + $0x60] ss:$24 sps:$4 sm:$0xff]   ;;  %v5812_v29 = vld [vmem:[#allocation5 + $0x34] ss:$24 sps:$4 sm:$0xff]   ;;  %v5814_v31 = vld [vmem:[#allocation5 + $0x30] ss:$24 sps:$4 sm:$0xff]  }
  0x91   : > { %v5815_v30 = vld [vmem:[#allocation5 + $0x3c] ss:$24 sps:$4 sm:$0xff]   ;;  %v5817_v32 = vld [vmem:[#allocation5 + $0x38] ss:$24 sps:$4 sm:$0xff]   ;;  %v5821_v34 = vld [vmem:[#allocation5 + $0xc] ss:$24 sps:$4 sm:$0xff]  }
  0x92   : > { %1063 = vmatpush1.bf16.msra.mxu0 %v5790_v14  ;;  %v5818_v33 = vld [vmem:[#allocation5 + $0x4] ss:$24 sps:$4 sm:$0xff]   ;;  %v5820_v35 = vld [vmem:[#allocation5] ss:$24 sps:$4 sm:$0xff]   ;;  %v5824_v37 = vld [vmem:[#allocation5 + $0x2d4] ss:$24 sps:$4 sm:$0xff]  }
  0x93   : > { %1104 = vmatpush1.bf16.msra.mxu1 %v5793_v16  ;;  %1064 = vmatprep.subr.bf16.mxu0 %v5794_v17  ;;  %v5823_v36 = vld [vmem:[#allocation5 + $0x8] ss:$24 sps:$4 sm:$0xff]   ;;  %v5827_v38 = vld [vmem:[#allocation5 + $0x2dc] ss:$24 sps:$4 sm:$0xff]   ;;  %v5829_v40 = vld [vmem:[#allocation5 + $0x2d8] ss:$24 sps:$4 sm:$0xff]  }
  0x94   : > { %1105 = vmatprep.subr.bf16.mxu1 %v5797_v18  ;;  %v5826_v39 = vld [vmem:[#allocation5 + $0x2d0] ss:$24 sps:$4 sm:$0xff]   ;;  %v5830_v41 = vld [vmem:[#allocation5 + $0x2a4] ss:$24 sps:$4 sm:$0xff]   ;;  %v5832_v43 = vld [vmem:[#allocation5 + $0x2a0] ss:$24 sps:$4 sm:$0xff]  }
  0x95   : > { %v5833_v42 = vld [vmem:[#allocation5 + $0x2ac] ss:$24 sps:$4 sm:$0xff]   ;;  %v5835_v44 = vld [vmem:[#allocation5 + $0x2a8] ss:$24 sps:$4 sm:$0xff]   ;;  %v5839_v46 = vld [vmem:[#allocation5 + $0x27c] ss:$24 sps:$4 sm:$0xff]  }
  0x96   : > { %1065 = vmatpush1.bf16.msra.mxu0 %v5796_v19  ;;  %v5836_v45 = vld [vmem:[#allocation5 + $0x274] ss:$24 sps:$4 sm:$0xff]   ;;  %v5838_v47 = vld [vmem:[#allocation5 + $0x270] ss:$24 sps:$4 sm:$0xff]   ;;  %v5842_v49 = vld [vmem:[#allocation5 + $0x244] ss:$24 sps:$4 sm:$0xff]  }
  0x97   : > { %1106 = vmatpush1.bf16.msra.mxu1 %v5799_v20  ;;  %1066 = vmatprep.subr.bf16.mxu0 %v5800_v21  ;;  %v5841_v48 = vld [vmem:[#allocation5 + $0x278] ss:$24 sps:$4 sm:$0xff]   ;;  %v5845_v50 = vld [vmem:[#allocation5 + $0x24c] ss:$24 sps:$4 sm:$0xff]   ;;  %v5847_v52 = vld [vmem:[#allocation5 + $0x248] ss:$24 sps:$4 sm:$0xff]  }
  0x98   : > { %1107 = vmatprep.subr.bf16.mxu1 %v5803_v22  ;;  %v5844_v51 = vld [vmem:[#allocation5 + $0x240] ss:$24 sps:$4 sm:$0xff]   ;;  %v5848_v53 = vld [vmem:[#allocation5 + $0x214] ss:$24 sps:$4 sm:$0xff]   ;;  %v5850_v55 = vld [vmem:[#allocation5 + $0x210] ss:$24 sps:$4 sm:$0xff]  }
  0x99   : > { %v5851_v54 = vld [vmem:[#allocation5 + $0x21c] ss:$24 sps:$4 sm:$0xff]   ;;  %v5853_v56 = vld [vmem:[#allocation5 + $0x218] ss:$24 sps:$4 sm:$0xff]   ;;  %v5857_v58 = vld [vmem:[#allocation5 + $0x1ec] ss:$24 sps:$4 sm:$0xff]  }
  0x9a   : > { %1067 = vmatpush1.bf16.msra.mxu0 %v5802_v23  ;;  %v5854_v57 = vld [vmem:[#allocation5 + $0x1e4] ss:$24 sps:$4 sm:$0xff]   ;;  %v5856_v59 = vld [vmem:[#allocation5 + $0x1e0] ss:$24 sps:$4 sm:$0xff]   ;;  %v5860_v61 = vld [vmem:[#allocation5 + $0x1b4] ss:$24 sps:$4 sm:$0xff]  }
  0x9b   : > { %1108 = vmatpush1.bf16.msra.mxu1 %v5805_v24  ;;  %1068 = vmatprep.subr.bf16.mxu0 %v5806_v25  ;;  %v5859_v60 = vld [vmem:[#allocation5 + $0x1e8] ss:$24 sps:$4 sm:$0xff]   ;;  %v5863_v62 = vld [vmem:[#allocation5 + $0x1bc] ss:$24 sps:$4 sm:$0xff]   ;;  %v5865_v2 = vld [vmem:[#allocation5 + $0x1b8] ss:$24 sps:$4 sm:$0xff]  }
  0x9c   : > { %1109 = vmatprep.subr.bf16.mxu1 %v5809_v26  ;;  %v5862_v63 = vld [vmem:[#allocation5 + $0x1b0] ss:$24 sps:$4 sm:$0xff]   ;;  %v5866_v3 = vld [vmem:[#allocation5 + $0x184] ss:$24 sps:$4 sm:$0xff]   ;;  %v5868_v5 = vld [vmem:[#allocation5 + $0x180] ss:$24 sps:$4 sm:$0xff]  }
  0x9d   : > { %v5869_v4 = vld [vmem:[#allocation5 + $0x18c] ss:$24 sps:$4 sm:$0xff]   ;;  %v5871_v6 = vld [vmem:[#allocation5 + $0x188] ss:$24 sps:$4 sm:$0xff]   ;;  %v6703_v12 = vshrl.u32 %v436_v11, 7  ;;  %s6464_s19 = smov 64  }
  0x9e   : > { %1069 = vmatpush1.bf16.msra.mxu0 %v5808_v27  ;;  %v5874_v7 = vld [vmem:[#allocation5 + $0x164] ss:$24 sps:$4 sm:$0xff]   ;;  %v423_v15 = vld [vmem:[%s6946_s1] sm:$0x3]  ;;  %v5877_v26 = vld [vmem:[#allocation5 + $0x134] ss:$24 sps:$4 sm:$0xff]  }
  0x9f   : > { %1110 = vmatpush1.bf16.msra.mxu1 %v5811_v28  ;;  %1070 = vmatprep.subr.bf16.mxu0 %v5812_v29  ;;  %v6706_v13 = vsub.s32 1, %v6703_v12  ;;  %v6709_v14 = vsub.s32 0, %v6703_v12  ;;  %v5872_v24 = vld [vmem:[#allocation5 + $0x160] ss:$24 sps:$4 sm:$0xff]   ;;  %v5875_v27 = vld [vmem:[#allocation5 + $0x130] ss:$24 sps:$4 sm:$0xff]  }
  0xa0   : > { %1111 = vmatprep.subr.bf16.mxu1 %v5815_v30  ;;  %v5883_v28 = vld [vmem:[#allocation5 + $0xd4] ss:$24 sps:$4 sm:$0xff]   ;;  %v5881_v29 = vld [vmem:[#allocation5 + $0xd0] ss:$24 sps:$4 sm:$0xff]   ;;  %v5886_v30 = vld [vmem:[#allocation5 + $0xa4] ss:$24 sps:$4 sm:$0xff]  }
  0xa1   : > { %v443_v16 = vrot.slane %v423_v15, %v6706_v13  ;;  %v439_v17 = vrot.slane %v423_v15, %v6709_v14  ;;  %s5604_s14 = sshll.u32 %s6538_s15, 8  ;;  %s419_s18 = scalar_lea.vmem [#allocation13], %s5059_s4 }
  0xa2   : > { %1071 = vmatpush1.bf16.msra.mxu0 %v5814_v31  ;;  %v5884_v31 = vld [vmem:[#allocation5 + $0xa0] ss:$24 sps:$4 sm:$0xff]   ;;  %s4929_s21 = sshll.u32 %s419_s18, 4  ;;  %s4927_s5 = scalar_lea.hbm %s6954_s9, %s5604_s14  ;;  %s4930_s21 = int_to_ptr.vmem [resolvable:$true] %s4929_s21 }
  0xa3   : > { %1112 = vmatpush1.bf16.msra.mxu1 %v5817_v32  ;;  %1072 = vmatprep.subr.bf16.mxu0 %v5818_v33  ;;  %v5889_v32 = vld [vmem:[#allocation5 + $0x74] ss:$24 sps:$4 sm:$0xff]   ;;  %v5887_v33 = vld [vmem:[#allocation5 + $0x70] ss:$24 sps:$4 sm:$0xff]   ;;  %s4915_s15 = scalar_lea.sflag [#allocation4], %s6669_s2  ;;  %p6983_p4 = scmp.ne.s32.totalorder %s6972_s17, 0 }
  0xa4   : > { %1113 = vmatprep.subr.bf16.mxu1 %v5821_v34  ;;  %v5892_v34 = vld [vmem:[#allocation5 + $0x44] ss:$24 sps:$4 sm:$0xff]   ;;  %s6466_s4 = smov [#allocation13]  }
  0xa5   : > { %s6376_s16 = sshll.u32 %s6466_s4, 4  ;;  %s6377_s16 = int_to_ptr.vmem [resolvable:$false] %s6376_s16 }
  0xa6   : > { %1073 = vmatpush1.bf16.msra.mxu0 %v5820_v35  ;;  %v5890_v35 = vld [vmem:[#allocation5 + $0x40] ss:$24 sps:$4 sm:$0xff]   ;;  %s6378_s28 = scalar_lea.vmem %s6377_s16, 512  ;;  %p6379_p7 = scmp.lt.s32.totalorder %s4930_s21, %s6377_s16 }
  0xa7   : > { %1114 = vmatpush1.bf16.msra.mxu1 %v5823_v36  ;;  %1074 = vmatprep.subr.bf16.mxu0 %v5824_v37  ;;  %v5895_v36 = vld [vmem:[#allocation5 + $0x14] ss:$24 sps:$4 sm:$0xff]   ;;  %v5893_v37 = vld [vmem:[#allocation5 + $0x10] ss:$24 sps:$4 sm:$0xff]  }
  0xa8   : > { %1115 = vmatprep.subr.bf16.mxu1 %v5827_v38  ;;  %v5898_v38 = vld [vmem:[#allocation5 + $0x2e4] ss:$24 sps:$4 sm:$0xff]  }
  0xaa   : > { %1075 = vmatpush2.bf16.msra.mxu0 %v5826_v39  ;;  %v5896_v39 = vld [vmem:[#allocation5 + $0x2e0] ss:$24 sps:$4 sm:$0xff]  }
  0xab   : > { %1116 = vmatpush2.bf16.msra.mxu1 %v5829_v40  ;;  %1076 = vmatprep.subr.bf16.mxu0 %v5830_v41  ;;  %v5901_v40 = vld [vmem:[#allocation5 + $0x2b4] ss:$24 sps:$4 sm:$0xff]   ;;  %v5899_v41 = vld [vmem:[#allocation5 + $0x2b0] ss:$24 sps:$4 sm:$0xff]  }
  0xac   : > { %1117 = vmatprep.subr.bf16.mxu1 %v5833_v42  ;;  %v5904_v42 = vld [vmem:[#allocation5 + $0x284] ss:$24 sps:$4 sm:$0xff]  }
  0xae   : > { %1077 = vmatpush2.bf16.msra.mxu0 %v5832_v43  ;;  %v5902_v43 = vld [vmem:[#allocation5 + $0x280] ss:$24 sps:$4 sm:$0xff]  }
  0xaf   : > { %1118 = vmatpush2.bf16.msra.mxu1 %v5835_v44  ;;  %1078 = vmatprep.subr.bf16.mxu0 %v5836_v45  ;;  %v5907_v44 = vld [vmem:[#allocation5 + $0x254] ss:$24 sps:$4 sm:$0xff]   ;;  %v5905_v45 = vld [vmem:[#allocation5 + $0x250] ss:$24 sps:$4 sm:$0xff]  }
  0xb0   : > { %1119 = vmatprep.subr.bf16.mxu1 %v5839_v46  ;;  %v5910_v46 = vld [vmem:[#allocation5 + $0x224] ss:$24 sps:$4 sm:$0xff]  }
  0xb2   : > { %1079 = vmatpush2.bf16.msra.mxu0 %v5838_v47  ;;  %v5908_v47 = vld [vmem:[#allocation5 + $0x220] ss:$24 sps:$4 sm:$0xff]  }
  0xb3   : > { %1120 = vmatpush2.bf16.msra.mxu1 %v5841_v48  ;;  %1080 = vmatprep.subr.bf16.mxu0 %v5842_v49  ;;  %v5913_v48 = vld [vmem:[#allocation5 + $0x1f4] ss:$24 sps:$4 sm:$0xff]   ;;  %v5911_v49 = vld [vmem:[#allocation5 + $0x1f0] ss:$24 sps:$4 sm:$0xff]  }
  0xb4   : > { %1121 = vmatprep.subr.bf16.mxu1 %v5845_v50  ;;  %v5916_v50 = vld [vmem:[#allocation5 + $0x1c4] ss:$24 sps:$4 sm:$0xff]  }
  0xb6   : > { %1081 = vmatpush2.bf16.msra.mxu0 %v5844_v51  ;;  %v5914_v51 = vld [vmem:[#allocation5 + $0x1c0] ss:$24 sps:$4 sm:$0xff]  }
  0xb7   : > { %1122 = vmatpush2.bf16.msra.mxu1 %v5847_v52  ;;  %1082 = vmatprep.subr.bf16.mxu0 %v5848_v53  ;;  %v5919_v52 = vld [vmem:[#allocation5 + $0x194] ss:$24 sps:$4 sm:$0xff]   ;;  %v5917_v53 = vld [vmem:[#allocation5 + $0x190] ss:$24 sps:$4 sm:$0xff]  }
  0xb8   : > { %1123 = vmatprep.subr.bf16.mxu1 %v5851_v54  ;;  %v6462_v54 = vmov 0.0  }
  0xba   : > { %1083 = vmatpush2.bf16.msra.mxu0 %v5850_v55  ;;  %v558_v55 = vsub.s32 2, %v6703_v12 }
  0xbb   : > { %1124 = vmatpush2.bf16.msra.mxu1 %v5853_v56  ;;  %1084 = vmatprep.subr.bf16.mxu0 %v5854_v57  ;;  %v6730_v56 = vld [vmem:[%s6948_s3] sm:$0x3f] }
  0xbc   : > { %1125 = vmatprep.subr.bf16.mxu1 %v5857_v58  ;;  %v559_v57 = vrot.slane %v6730_v56, %v558_v55 }
  0xbe   : > { %1085 = vmatpush2.bf16.msra.mxu0 %v5856_v59 }
  0xbf   : > { %1126 = vmatpush2.bf16.msra.mxu1 %v5859_v60  ;;  %1086 = vmatprep.subr.bf16.mxu0 %v5860_v61 }
  0xc0   : > { %1127 = vmatprep.subr.bf16.mxu1 %v5863_v62 }
  0xc2   : > { %1087 = vmatpush2.bf16.msra.mxu0 %v5862_v63  ;;  %v551_v63 = vrot.slane %v6730_v56, %v6709_v14 }
  0xc3   : > { %1128 = vmatpush2.bf16.msra.mxu1 %v5865_v2  ;;  %1088 = vmatprep.subr.bf16.mxu0 %v5866_v3 }
  0xc4   : > { %1129 = vmatprep.subr.bf16.mxu1 %v5869_v4 }
  0xc6   : > { %1089 = vmatpush2.bf16.msra.mxu0 %v5868_v5 }
  0xc7   : > { %1130 = vmatpush2.bf16.msra.mxu1 %v5871_v6  ;;  %1140 = vmatprep.subr.bf16.mxu0 %v5874_v7 }
  0xc8   : > { %5621 = vmatprep.subr.bf16.mxu1 %v6462_v54 }
 0x115   : > { %v428_v8 = vpop.xlane.xlu0 %427 }
 0x116   : > { %v430_v9 = vmul.f32 0.00390625, %v428_v8 }
 0x118   : > { %v431_v10 = vadd.f32 1e-06, %v430_v9 }
 0x11a   : > { %6160 = vrsqrt.f32 %v431_v10  ;;  %v566_v10 = vsub.s32 4, %v6703_v12 }
 0x11c   : > { %v567_v11 = vrot.slane %v6730_v56, %v566_v10  ;;  %v6465_v10 = vmov 0  }
 0x127   : > { %v6161_v18 = vpop.eup %6160 }
 0x128   : > { %v434_v19 = vmul.f32 %v6161_v18, %v6697_v1  ;;  %v433_v20 = vmul.f32 %v6161_v18, %v6694_v0  ;;  %v5880_v1 = vld [vmem:[#allocation5 + $0x104] ss:$24 sps:$4 sm:$0xff]   ;;  %v5878_v0 = vld [vmem:[#allocation5 + $0x100] ss:$24 sps:$4 sm:$0xff]  }
 0x12a   : > { %v447_v21 = vmul.f32 %v443_v16, %v434_v19  ;;  %v446_v22 = vmul.f32 %v439_v17, %v433_v20 }
 0x12c   : > { %v449_v23 = vpack.c.bf16 %v447_v21, %v447_v21  ;;  %v6718_v25 = vpack.c.bf16 %v446_v22, %v446_v22 }
 0x12e   : > { %1090 = vmatprep.mubr.bf16.mxu0 %v449_v23  ;;  %1131 = vmatprep.mubr.bf16.mxu1 %v449_v23 }
 0x12f   : > { %1091 = vmatmul.mubr.bf16.vlgmr.msra.gmra.mxu0 %v6718_v25  ;;  %1132 = vmatmul.mubr.bf16.vlgmr.msra.gmra.mxu1 %v6718_v25 }
 0x130   : > { %1141 = vmatpush1.bf16.msra.mxu0 %v5872_v24  ;;  %1172 = vmatprep.mubr.bf16.mxu0 %v449_v23 }
 0x131   : > { %1142 = vmatprep.subr.bf16.mxu0 %v5877_v26  ;;  %5623 = vmatprep.mubr.msk.bf16.mxu1 %vm6463_vm0, %v6462_v54 }
 0x134   : > { %1143 = vmatpush1.bf16.msra.mxu0 %v5875_v27 }
 0x135   : > { %1144 = vmatprep.subr.bf16.mxu0 %v5880_v1 }
 0x138   : > { %1145 = vmatpush1.bf16.msra.mxu0 %v5878_v0 }
 0x139   : > { %1146 = vmatprep.subr.bf16.mxu0 %v5883_v28 }
 0x13c   : > { %1147 = vmatpush1.bf16.msra.mxu0 %v5881_v29 }
 0x13d   : > { %1148 = vmatprep.subr.bf16.mxu0 %v5886_v30 }
 0x140   : > { %1149 = vmatpush1.bf16.msra.mxu0 %v5884_v31 }
 0x141   : > { %1150 = vmatprep.subr.bf16.mxu0 %v5889_v32 }
 0x144   : > { %1151 = vmatpush1.bf16.msra.mxu0 %v5887_v33 }
 0x145   : > { %1152 = vmatprep.subr.bf16.mxu0 %v5892_v34 }
 0x148   : > { %1153 = vmatpush1.bf16.msra.mxu0 %v5890_v35 }
 0x149   : > { %1154 = vmatprep.subr.bf16.mxu0 %v5895_v36 }
 0x14c   : > { %1155 = vmatpush1.bf16.msra.mxu0 %v5893_v37 }
 0x14d   : > { %1156 = vmatprep.subr.bf16.mxu0 %v5898_v38 }
 0x150   : > { %1157 = vmatpush2.bf16.msra.mxu0 %v5896_v39 }
 0x151   : > { %1158 = vmatprep.subr.bf16.mxu0 %v5901_v40 }
 0x154   : > { %1159 = vmatpush2.bf16.msra.mxu0 %v5899_v41 }
 0x155   : > { %1160 = vmatprep.subr.bf16.mxu0 %v5904_v42 }
 0x158   : > { %1161 = vmatpush2.bf16.msra.mxu0 %v5902_v43 }
 0x159   : > { %1162 = vmatprep.subr.bf16.mxu0 %v5907_v44 }
 0x15c   : > { %1163 = vmatpush2.bf16.msra.mxu0 %v5905_v45 }
 0x15d   : > { %1164 = vmatprep.subr.bf16.mxu0 %v5910_v46  ;;  %v555_v46 = vrot.slane %v6730_v56, %v6706_v13 }
 0x160   : > { %1165 = vmatpush2.bf16.msra.mxu0 %v5908_v47 }
 0x161   : > { %1166 = vmatprep.subr.bf16.mxu0 %v5913_v48 }
 0x164   : > { %1167 = vmatpush2.bf16.msra.mxu0 %v5911_v49 }
 0x165   : > { %1168 = vmatprep.subr.bf16.mxu0 %v5916_v50 }
 0x168   : > { %1169 = vmatpush2.bf16.msra.mxu0 %v5914_v51 }
 0x169   : > { %1170 = vmatprep.subr.bf16.mxu0 %v5919_v52 }
 0x16c   : > { %1171 = vmatpush2.bf16.msra.mxu0 %v5917_v53 }
 0x16f   : > { %1173 = vmatmul.mubr.bf16.vlgmr.msra.gmra.mxu0 %v6718_v25 }
 0x170   : > { %1781 = vmatprep.mubr.bf16.mxu0 %v6465_v10 }
 0x1ef   : > { %v1092_v58 = vpop.f32.mrf.mxu0  ;;  %v1133_v59 = vpop.f32.mrf.mxu1 }
 0x1f0   : > { %v1134_v60 = vadd.f32 %v1133_v59, %v559_v57  ;;  %v1093_v8 = vadd.f32 %v1092_v58, %v551_v63  ;;  %v5922_v58 = vld [vmem:[#allocation7 + $0x74] ss:$8 sps:$4 sm:$0xff]   ;;  %v5920_v63 = vld [vmem:[#allocation7 + $0x70] ss:$8 sps:$4 sm:$0xff]  }
 0x1f1   : > { %v6733_v61 = vpop.f32.mrf.mxu0  ;;  %v6735_v62 = vpop.f32.mrf.mxu1 }
 0x1f2   : > { %v1182_v2 = vpack.c.bf16 %v1134_v60, %v1134_v60  ;;  %v1181_v9 = vpack.c.bf16 %v1093_v8, %v1093_v8  ;;  %v1095_v47 = vadd.f32 %v6733_v61, %v555_v46  ;;  %v5929_v8 = vld [vmem:[#allocation7 + $0x40] ss:$8 sps:$4 sm:$0xff]  }
 0x1f3   : > { %v1096_v3 = vpop.f32.mrf.mxu0  ;;  %v1137_v4 = vpop.f32.mrf.mxu1 }
 0x1f4   : > { %v1188_v5 = vsel %vm1183_vm1, %v1182_v2, 0  ;;  %v6769_v48 = vpack.c.bf16 %v1095_v47, %v1095_v47  ;;  %v5925_v3 = vld [vmem:[#allocation7 + $0x64] ss:$8 sps:$4 sm:$0xff]   ;;  %v5923_v4 = vld [vmem:[#allocation7 + $0x60] ss:$8 sps:$4 sm:$0xff]  }
 0x1f5   : > { %v1097_v6 = vpop.f32.mrf.mxu0  ;;  %v1138_v7 = vpop.f32.mrf.mxu1  ;;  %5622 = vmatpush3.bf16.xpose.msra.mxu1 %v1188_v5  ;;  %v5928_v5 = vld [vmem:[#allocation7 + $0x54] ss:$8 sps:$4 sm:$0xff]  }
 0x1f6   : > { %5627 = vmatprep.subr.bf16.mxu1 %v6462_v54  ;;  %v5926_v6 = vld [vmem:[#allocation7 + $0x50] ss:$8 sps:$4 sm:$0xff]   ;;  %v5931_v7 = vld [vmem:[#allocation7 + $0x44] ss:$8 sps:$4 sm:$0xff]  }
 0x1fc   : > { %5624 = vmatmul.mubr.msk.bf16.vlgmr.msra.gmra.mxu1 %vm1183_vm1, %v1181_v9 }
 0x1fd   : > { %5629 = vmatprep.mubr.msk.bf16.mxu1 %vm6463_vm0, %v6462_v54 }
 0x22f   : > { %v1174_v15 = vpop.f32.mrf.mxu0 }
 0x230   : > { %v1175_v16 = vadd.f32 %v1174_v15, %v567_v11  ;;  %v5932_v15 = vld [vmem:[#allocation7 + $0x30] ss:$8 sps:$4 sm:$0xff]  }
 0x231   : > { %v6746_v17 = vpop.f32.mrf.mxu0 }
 0x232   : > { %v1243_v18 = vpack.c.bf16 %v1175_v16, %v1175_v16 }
 0x233   : > { %v1178_v19 = vpop.f32.mrf.mxu0 }
 0x234   : > { %v1249_v20 = vsel %vm1247_vm2, %v1243_v18, 0 }
 0x235   : > { %v1179_v21 = vpop.f32.mrf.mxu0  ;;  %5628 = vmatpush3.bf16.msra.mxu1 %v1249_v20  ;;  %v562_v20 = vsub.s32 3, %v6703_v12 }
 0x236   : > { %5633 = vmatprep.subr.bf16.mxu1 %v6462_v54 }
 0x2bc   : > { %v1224_v22 = vpop.f32.mrf.mxu1 }
 0x2bd   : > { %v1231_v23 = vsel %vm1230_vm3, %v1224_v22, -inf }
 0x2be   : > { %1232 = vmax.xlane.f32.xlu0 %v1231_v23  ;;  %v5625_v24 = vpop.f32.mrf.mxu1  ;;  %v5940_v23 = vld [vmem:[#allocation7 + $0x14] ss:$8 sps:$4 sm:$0xff]  }
 0x2c0   : > { %v1227_v25 = vpop.f32.mrf.mxu1 }
 0x2c1   : > { %v563_v25 = vrot.slane %v6730_v56, %v562_v20 }
 0x2c2   : > { %v5626_v26 = vpop.f32.mrf.mxu1 }
 0x2c3   : > { %v5938_v26 = vld [vmem:[#allocation7 + $0x10] ss:$8 sps:$4 sm:$0xff]  }
 0x2d4   : > { %1301 = vrot.lane.b32.xlu0 %v1181_v9, %s6464_s19  ;;  %v5934_v9 = vld [vmem:[#allocation7 + $0x34] ss:$8 sps:$4 sm:$0xff]  }
 0x347   : > { %v1233_v27 = vpop.xlane.xlu0 %1232 }
 0x348   : > { %v1234_v1 = vsub.f32 %v1224_v22, %v1233_v27  ;;  %v5935_v22 = vld [vmem:[#allocation7 + $0x20] ss:$8 sps:$4 sm:$0xff]   ;;  %v5943_v27 = vld [vmem:[#allocation7 + $0x4] ss:$8 sps:$4 sm:$0xff]  }
 0x34a   : > { %v1235_v0 = vmul.f32 1.442695, %v1234_v1  ;;  %v1136_v1 = vadd.f32 %v6735_v62, %v563_v25 }
 0x34b   : > { %v1302_v36 = vpop.permute.xlu0 %1301 }
 0x34c   : > { %6162 = vpow2.f32 %v1235_v0  ;;  %v570_v0 = vsub.s32 5, %v6703_v12 }
 0x359   : > { %v6163_v28 = vpop.eup %6162 }
 0x35a   : > { %v1237_v29 = vsel %vm1230_vm3, %v6163_v28, 0.0 }
 0x35b   : > { %1238 = vadd.xlane.f32.xlu1 %v1237_v29  ;;  %v1591_v29 = vpack.c.bf16 %v1136_v1, %v1136_v1 }
 0x36c   : > { %1304 = vrot.lane.b32.xlu1 %v1182_v2, %s6464_s19 }
 0x3e4   : > { %v1239_v30 = vpop.xlane.xlu1 %1238 }
 0x3e5   : > { %6164 = vrcp.f32 %v1239_v30  ;;  %v571_v30 = vrot.slane %v6730_v56, %v570_v0  ;;  %v5956_v0 = vld [vmem:[#allocation7 + $0xf0] ss:$8 sps:$4 sm:$0xff]  }
 0x3e8   : > { %v1305_v33 = vpop.permute.xlu1 %1304 }
 0x3e9   : > { %v1310_v35 = vsel %vm1183_vm1, %v1305_v33, 0  ;;  %v1177_v33 = vadd.f32 %v6746_v17, %v571_v30  ;;  %v5961_v30 = vld [vmem:[#allocation7 + $0xe4] ss:$8 sps:$4 sm:$0xff]  }
 0x3eb   : > { %v6794_v12 = vpack.c.bf16 %v1177_v33, %v1177_v33  ;;  %v5959_v33 = vld [vmem:[#allocation7 + $0xe0] ss:$8 sps:$4 sm:$0xff]  }
 0x3ed   : > { %v1655_v56 = vsel %vm1247_vm2, %v6794_v12, 0 }
 0x3f2   : > { %v6165_v31 = vpop.eup %6164 }
 0x3f3   : > { %v1241_v32 = vmul.f32 %v6165_v31, %v6163_v28  ;;  %v5941_v28 = vld [vmem:[#allocation7] ss:$8 sps:$4 sm:$0xff]  }
 0x3f5   : > { %v1242_v34 = vpack.c.bf16 %v1241_v32, %v1241_v32  ;;  %v1596_v32 = vsel %vm1183_vm1, %v1591_v29, 0 }
 0x3f7   : > { %5630 = vmatmul.mubr.msk.bf16.vlgmr.msra.gmra.mxu1 %vm1230_vm3, %v1242_v34 }
 0x3f8   : > { %5634 = vmatpush3.bf16.xpose.msra.mxu1 %v1310_v35  ;;  %5635 = vmatprep.mubr.msk.bf16.mxu1 %vm6463_vm0, %v6462_v54 }
 0x3f9   : > { %5639 = vmatprep.subr.bf16.mxu1 %v6462_v54 }
 0x3ff   : > { %5636 = vmatmul.mubr.msk.bf16.vlgmr.msra.gmra.mxu1 %vm1183_vm1, %v1302_v36 }
 0x400   : > { %5641 = vmatprep.mubr.msk.bf16.mxu1 %vm6463_vm0, %v6462_v54 }
 0x4b7   : > { %v6762_v37 = vpop.f32.mrf.mxu1 }
 0x4b8   : > { %v1291_v31 = vpack.c.bf16 %v6762_v37, %v6762_v37 }
 0x4b9   : > { %v5631_v38 = vpop.f32.mrf.mxu1 }
 0x4bb   : > { %v1288_v39 = vpop.f32.mrf.mxu1 }
 0x4bd   : > { %v5632_v40 = vpop.f32.mrf.mxu1 }
 0x4bf   : > { %v1346_v41 = vpop.f32.mrf.mxu1 }
 0x4c0   : > { %v1352_v42 = vsel %vm1230_vm3, %v1346_v41, -inf }
 0x4c1   : > { %1353 = vmax.xlane.f32.xlu1 %v1352_v42  ;;  %v5637_v43 = vpop.f32.mrf.mxu1 }
 0x4c3   : > { %v1349_v44 = vpop.f32.mrf.mxu1 }
 0x4c5   : > { %v5638_v45 = vpop.f32.mrf.mxu1 }
 0x4d2   : > { %1365 = vrot.lane.b32.xlu1 %v1243_v18, %s6464_s19  ;;  %v5937_v18 = vld [vmem:[#allocation7 + $0x24] ss:$8 sps:$4 sm:$0xff]  }
 0x4d6   : > { %1793 = vrot.lane.b32.xlu1 %v6769_v48, %s6464_s19 }
 0x54a   : > { %v1354_v49 = vpop.xlane.xlu1 %1353 }
 0x54b   : > { %v1355_v50 = vsub.f32 %v1346_v41, %v1354_v49 }
 0x54d   : > { %v1356_v51 = vmul.f32 1.442695, %v1355_v50 }
 0x54e   : > { %v1366_v52 = vpop.permute.xlu1 %1365 }
 0x54f   : > { %6166 = vpow2.f32 %v1356_v51  ;;  %v1371_v53 = vsel %vm1247_vm2, %v1366_v52, 0  ;;  %v5944_v52 = vld [vmem:[#allocation7 + $0xb0] ss:$8 sps:$4 sm:$0xff]  }
 0x550   : > { %5640 = vmatpush3.bf16.msra.mxu1 %v1371_v53  ;;  %v5946_v53 = vld [vmem:[#allocation7 + $0xb4] ss:$8 sps:$4 sm:$0xff]  }
 0x551   : > { %1473 = vmatprep.subr.bf16.mxu1 %v5922_v58  ;;  %1757 = vmatprep.subr.bf16.mxu0 %v5946_v53  ;;  %v5952_v58 = vld [vmem:[#allocation7 + $0x94] ss:$8 sps:$4 sm:$0xff]  }
 0x552   : > { %1758 = vmatpush1.bf16.msra.mxu0 %v5944_v52  ;;  %v2146_v52 = vld [vmem:[#allocation10 + $0x340] sm:$0xff] }
 0x55c   : > { %v6167_v55 = vpop.eup %6166 }
 0x55d   : > { %v1358_v57 = vsel %vm1230_vm3, %v6167_v55, 0.0 }
 0x55e   : > { %1359 = vadd.xlane.f32.xlu0 %v1358_v57  ;;  %v5947_v57 = vld [vmem:[#allocation7 + $0xa0] ss:$8 sps:$4 sm:$0xff]  }
 0x5e7   : > { %v1360_v59 = vpop.xlane.xlu0 %1359 }
 0x5e8   : > { %6168 = vrcp.f32 %v1360_v59  ;;  %v5950_v59 = vld [vmem:[#allocation7 + $0x90] ss:$8 sps:$4 sm:$0xff]  }
 0x5f5   : > { %v6169_v60 = vpop.eup %6168 }
 0x5f6   : > { %v1362_v61 = vmul.f32 %v6169_v60, %v6167_v55  ;;  %v5949_v55 = vld [vmem:[#allocation7 + $0xa4] ss:$8 sps:$4 sm:$0xff]  }
 0x5f7   : > { %1759 = vmatprep.subr.bf16.mxu0 %v5949_v55  ;;  %v5955_v60 = vld [vmem:[#allocation7 + $0x84] ss:$8 sps:$4 sm:$0xff]  }
 0x5f8   : > { %v1363_v2 = vpack.c.bf16 %v1362_v61, %v1362_v61  ;;  %1760 = vmatpush1.bf16.msra.mxu0 %v5947_v57  ;;  %v5953_v61 = vld [vmem:[#allocation7 + $0x80] ss:$8 sps:$4 sm:$0xff]  }
 0x5f9   : > { %1761 = vmatprep.subr.bf16.mxu0 %v5952_v58  ;;  %v2139_v58 = vld [vmem:[#allocation10 + $0x308] sm:$0xff] }
 0x5fa   : > { %5642 = vmatmul.mubr.msk.bf16.vlgmr.msra.gmra.mxu1 %vm1230_vm3, %v1363_v2 }
 0x5fb   : > { %1474 = vmatpush1.bf16.msra.mxu1 %v5920_v63  ;;  %1497 = vmatprep.mubr.bf16.mxu1 %v6465_v10 }
 0x5fc   : > { %1475 = vmatprep.subr.bf16.mxu1 %v5925_v3  ;;  %1762 = vmatpush1.bf16.msra.mxu0 %v5950_v59  ;;  %v2147_v59 = vld [vmem:[#allocation10 + $0x348] sm:$0xff] }
 0x5fd   : > { %1763 = vmatprep.subr.bf16.mxu0 %v5955_v60  ;;  %v2122_v60 = vld [vmem:[#allocation10 + $0x280] sm:$0xff] }
 0x5ff   : > { %1476 = vmatpush1.bf16.msra.mxu1 %v5923_v4 }
 0x600   : > { %1477 = vmatprep.subr.bf16.mxu1 %v5928_v5  ;;  %1764 = vmatpush1.bf16.msra.mxu0 %v5953_v61  ;;  %v5305_v61 = vcombine.high %v2139_v58, %v2147_v59 }
 0x603   : > { %1478 = vmatpush1.bf16.msra.mxu1 %v5926_v6 }
 0x604   : > { %1479 = vmatprep.subr.bf16.mxu1 %v5931_v7  ;;  %v1794_v7 = vpop.permute.xlu1 %1793 }
 0x607   : > { %1480 = vmatpush1.bf16.msra.mxu1 %v5929_v8 }
 0x608   : > { %1557 = vmatprep.subr.bf16.mxu1 %v5934_v9 }
 0x6ba   : > { %v1407_v11 = vpop.f32.mrf.mxu1 }
 0x6bb   : > { %v1413_v16 = vpack.c.bf16 %v1407_v11, %v1407_v11 }
 0x6bc   : > { %v5643_v19 = vpop.f32.mrf.mxu1 }
 0x6bd   : > { %5174 = vmatmul.mubr.msk.bf16.vlgmr.msra.gmra.mxu1 %vm1183_vm1, %v1413_v16 }
 0x6be   : > { %1558 = vmatpush1.bf16.msra.mxu1 %v5932_v15  ;;  %v1410_v21 = vpop.f32.mrf.mxu1  ;;  %1581 = vmatprep.mubr.bf16.mxu1 %v6465_v10 }
 0x6bf   : > { %1559 = vmatprep.subr.bf16.mxu1 %v5937_v18 }
 0x6c0   : > { %v5644_v24 = vpop.f32.mrf.mxu1 }
 0x6c2   : > { %1560 = vmatpush1.bf16.msra.mxu1 %v5935_v22 }
 0x6c3   : > { %1561 = vmatprep.subr.bf16.mxu1 %v5940_v23 }
 0x6c6   : > { %1562 = vmatpush1.bf16.msra.mxu1 %v5938_v26 }
 0x6c7   : > { %1563 = vmatprep.subr.bf16.mxu1 %v5943_v27 }
 0x6ca   : > { %1564 = vmatpush1.bf16.msra.mxu1 %v5941_v28  ;;  %v5958_v28 = vld [vmem:[#allocation7 + $0xf4] ss:$8 sps:$4 sm:$0xff]  }
 0x6cb   : > { %5645 = vmatprep.subr.bf16.mxu1 %v6462_v54  ;;  %1965 = vmatprep.subr.bf16.mxu0 %v5958_v28  ;;  %v2083_v28 = vld [vmem:[#allocation10 + $0x148] sm:$0xff] }
 0x6cd   : > { %5183 = vmatmul.mubr.msk.bf16.vlgmr.msra.gmra.mxu1 %vm1183_vm1, %v1291_v31 }
 0x6ce   : > { %5646 = vmatpush3.bf16.xpose.msra.mxu1 %v1596_v32  ;;  %5647 = vmatprep.mubr.msk.bf16.mxu1 %vm6463_vm0, %v6462_v54 }
 0x6cf   : > { %5651 = vmatprep.subr.bf16.mxu1 %v6462_v54 }
 0x6d5   : > { %5648 = vmatmul.mubr.msk.bf16.vlgmr.msra.gmra.mxu1 %vm1183_vm1, %v6769_v48 }
 0x6d6   : > { %5652 = vmatpush3.bf16.msra.mxu1 %v1655_v56  ;;  %5653 = vmatprep.mubr.msk.bf16.mxu1 %vm6463_vm0, %v6462_v54  ;;  %v5964_v56 = vld [vmem:[#allocation7 + $0xd4] ss:$8 sps:$4 sm:$0xff]  }
 0x6d7   : > { %5657 = vmatprep.subr.bf16.mxu1 %v6462_v54 }
 0x77d   : > { %v1499_v62 = vpop.f32.mrf.mxu1 }
 0x77f   : > { %v1501_v17 = vpop.f32.mrf.mxu1 }
 0x781   : > { %v1503_v34 = vpop.f32.mrf.mxu1 }
 0x782   : > { %v5967_v34 = vld [vmem:[#allocation7 + $0xc4] ss:$8 sps:$4 sm:$0xff]  }
 0x783   : > { %v1504_v35 = vpop.f32.mrf.mxu1 }
 0x784   : > { %v5965_v35 = vld [vmem:[#allocation7 + $0xc0] ss:$8 sps:$4 sm:$0xff]  }
 0x78d   : > { %v1583_v36 = vpop.f32.mrf.mxu1 }
 0x78e   : > { %v6803_v37 = vadd.f32 %v1583_v36, %v1499_v62 }
 0x78f   : > { %v1585_v38 = vpop.f32.mrf.mxu1 }
 0x790   : > { %v6805_v39 = vadd.f32 %v1585_v38, %v1501_v17  ;;  %v5962_v17 = vld [vmem:[#allocation7 + $0xd0] ss:$8 sps:$4 sm:$0xff]  }
 0x791   : > { %v1587_v40 = vpop.f32.mrf.mxu1 }
 0x793   : > { %v1588_v41 = vpop.f32.mrf.mxu1 }
 0x795   : > { %v1632_v42 = vpop.f32.mrf.mxu1 }
 0x796   : > { %v1638_v43 = vsel %vm1230_vm3, %v1632_v42, -inf }
 0x797   : > { %1639 = vmax.xlane.f32.xlu0 %v1638_v43  ;;  %v5649_v44 = vpop.f32.mrf.mxu1 }
 0x799   : > { %v1635_v45 = vpop.f32.mrf.mxu1 }
 0x79a   : > { %v2154_v45 = vld [vmem:[#allocation10 + $0x380] sm:$0xff] }
 0x79b   : > { %v5650_v46 = vpop.f32.mrf.mxu1 }
 0x79c   : > { %v2162_v46 = vld [vmem:[#allocation10 + $0x3c0] sm:$0xff] }
 0x820   : > { %v1640_v47 = vpop.xlane.xlu0 %1639 }
 0x821   : > { %v1641_v48 = vsub.f32 %v1632_v42, %v1640_v47  ;;  %v2155_v47 = vld [vmem:[#allocation10 + $0x388] sm:$0xff] }
 0x823   : > { %v1642_v49 = vmul.f32 1.442695, %v1641_v48  ;;  %v5318_v48 = vcombine.low %v2154_v45, %v2162_v46 }
 0x825   : > { %6170 = vpow2.f32 %v1642_v49  ;;  %v5319_v49 = vcombine.high %v2154_v45, %v2162_v46 }
 0x832   : > { %v6171_v50 = vpop.eup %6170 }
 0x833   : > { %v1644_v51 = vsel %vm1230_vm3, %v6171_v50, 0.0 }
 0x834   : > { %1645 = vadd.xlane.f32.xlu0 %v1644_v51  ;;  %v2138_v51 = vld [vmem:[#allocation10 + $0x300] sm:$0xff] }
 0x835   : > { %v5303_v57 = vcombine.high %v2138_v51, %v2146_v52 }
 0x84a   : > { %1796 = vrot.lane.b32.xlu0 %v1591_v29, %s6464_s19 }
 0x8bd   : > { %v1646_v63 = vpop.xlane.xlu0 %1645 }
 0x8be   : > { %6172 = vrcp.f32 %v1646_v63  ;;  %v2130_v63 = vld [vmem:[#allocation10 + $0x2c0] sm:$0xff] }
 0x8c1   : > { %v1797_v4 = vpop.permute.xlu0 %1796 }
 0x8c2   : > { %v1802_v6 = vsel %vm1183_vm1, %v1797_v4, 0  ;;  %v5302_v4 = vcombine.low %v2138_v51, %v2146_v52 }
 0x8cb   : > { %v6173_v2 = vpop.eup %6172 }
 0x8cc   : > { %v1648_v3 = vmul.f32 %v6173_v2, %v6171_v50  ;;  %v2163_v50 = vld [vmem:[#allocation10 + $0x3c8] sm:$0xff] }
 0x8cd   : > { %v5320_v53 = vcombine.low %v2155_v47, %v2163_v50  ;;  %v5321_v55 = vcombine.high %v2155_v47, %v2163_v50  ;;  %v2123_v2 = vld [vmem:[#allocation10 + $0x288] sm:$0xff]  ;;  %v2282_v47 = vld [vmem:[#allocation10 + $0x780] sm:$0xff] }
 0x8ce   : > { %v1649_v5 = vpack.c.bf16 %v1648_v3, %v1648_v3  ;;  %v2131_v3 = vld [vmem:[#allocation10 + $0x2c8] sm:$0xff] }
 0x8cf   : > { %v2291_v50 = vld [vmem:[#allocation10 + $0x7c8] sm:$0xff] }
 0x8d0   : > { %5654 = vmatmul.mubr.msk.bf16.vlgmr.msra.gmra.mxu1 %vm1230_vm3, %v1649_v5  ;;  %v5304_v5 = vcombine.low %v2139_v58, %v2147_v59  ;;  %v2274_v58 = vld [vmem:[#allocation10 + $0x740] sm:$0xff]  ;;  %v2267_v59 = vld [vmem:[#allocation10 + $0x708] sm:$0xff] }
 0x8d1   : > { %5658 = vmatpush3.bf16.xpose.msra.mxu1 %v1802_v6  ;;  %5659 = vmatprep.mubr.msk.bf16.mxu1 %vm6463_vm0, %v6462_v54  ;;  %v5287_v6 = vcombine.high %v2122_v60, %v2130_v63 }
 0x8d2   : > { %5663 = vmatprep.subr.bf16.mxu1 %v6462_v54 }
 0x8d8   : > { %5660 = vmatmul.mubr.msk.bf16.vlgmr.msra.gmra.mxu1 %vm1183_vm1, %v1794_v7  ;;  %v5289_v7 = vcombine.high %v2123_v2, %v2131_v3 }
 0x8d9   : > { %5665 = vmatprep.mubr.msk.bf16.mxu1 %vm6463_vm0, %v6462_v54 }
 0x990   : > { %v1691_v8 = vpop.f32.mrf.mxu1 }
 0x991   : > { %v1697_v9 = vpack.c.bf16 %v1691_v8, %v1691_v8  ;;  %v2106_v8 = vld [vmem:[#allocation10 + $0x200] sm:$0xff] }
 0x992   : > { %v5655_v11 = vpop.f32.mrf.mxu1 }
 0x993   : > { %5194 = vmatmul.mubr.msk.bf16.vlgmr.msra.gmra.mxu0 %vm1183_vm1, %v1697_v9  ;;  %v2114_v9 = vld [vmem:[#allocation10 + $0x240] sm:$0xff]  ;;  %v2107_v11 = vld [vmem:[#allocation10 + $0x208] sm:$0xff] }
 0x994   : > { %v1694_v15 = vpop.f32.mrf.mxu1  ;;  %1989 = vmatprep.mubr.bf16.mxu0 %v6465_v10  ;;  %1966 = vmatpush1.bf16.msra.mxu0 %v5956_v0  ;;  %v2075_v0 = vld [vmem:[#allocation10 + $0x108] sm:$0xff] }
 0x995   : > { %1967 = vmatprep.subr.bf16.mxu0 %v5961_v30  ;;  %v2115_v15 = vld [vmem:[#allocation10 + $0x248] sm:$0xff] }
 0x996   : > { %v5656_v16 = vpop.f32.mrf.mxu1 }
 0x997   : > { %v5286_v16 = vcombine.low %v2122_v60, %v2130_v63  ;;  %v2275_v60 = vld [vmem:[#allocation10 + $0x748] sm:$0xff] }
 0x998   : > { %v1838_v18 = vpop.f32.mrf.mxu1  ;;  %1968 = vmatpush1.bf16.msra.mxu0 %v5959_v33 }
 0x999   : > { %v1844_v19 = vsel %vm1230_vm3, %v1838_v18, -inf  ;;  %1969 = vmatprep.subr.bf16.mxu0 %v5964_v56  ;;  %v2058_v56 = vld [vmem:[#allocation10 + $0x80] sm:$0xff] }
 0x99a   : > { %1845 = vmax.xlane.f32.xlu1 %v1844_v19  ;;  %v5661_v20 = vpop.f32.mrf.mxu1  ;;  %v5271_v19 = vcombine.high %v2106_v8, %v2114_v9 }
 0x99b   : > { %v5273_v20 = vcombine.high %v2107_v11, %v2115_v15 }
 0x99c   : > { %v1841_v21 = vpop.f32.mrf.mxu1  ;;  %1970 = vmatpush1.bf16.msra.mxu0 %v5962_v17  ;;  %v2059_v17 = vld [vmem:[#allocation10 + $0x88] sm:$0xff] }
 0x99d   : > { %1971 = vmatprep.subr.bf16.mxu0 %v5967_v34  ;;  %v2090_v21 = vld [vmem:[#allocation10 + $0x180] sm:$0xff]  ;;  %v2067_v34 = vld [vmem:[#allocation10 + $0xc8] sm:$0xff] }
 0x99e   : > { %v5662_v22 = vpop.f32.mrf.mxu1 }
 0x99f   : > { %v2098_v22 = vld [vmem:[#allocation10 + $0x1c0] sm:$0xff] }
 0x9a0   : > { %1972 = vmatpush1.bf16.msra.mxu0 %v5965_v35  ;;  %v5254_v30 = vcombine.low %v2090_v21, %v2098_v22 }
 0x9a1   : > { %3619 = vmatprep.subr.bf16.mxu0 %v5321_v55 }
 0x9ab   : > { %1857 = vrot.lane.b32.xlu1 %v6794_v12, %s6464_s19 }
 0xa23   : > { %v1846_v54 = vpop.xlane.xlu1 %1845 }
 0xa24   : > { %v1847_v23 = vsub.f32 %v1838_v18, %v1846_v54  ;;  %v5288_v18 = vcombine.low %v2123_v2, %v2131_v3  ;;  %v2091_v54 = vld [vmem:[#allocation10 + $0x188] sm:$0xff]  ;;  %v5433_v3 = vcombine.high %v2267_v59, %v2275_v60 }
 0xa26   : > { %v1848_v24 = vmul.f32 1.442695, %v1847_v23  ;;  %v2099_v23 = vld [vmem:[#allocation10 + $0x1c8] sm:$0xff] }
 0xa27   : > { %v1858_v25 = vpop.permute.xlu1 %1857 }
 0xa28   : > { %6174 = vpow2.f32 %v1848_v24  ;;  %v1863_v26 = vsel %vm1247_vm2, %v1858_v25, 0  ;;  %v5270_v24 = vcombine.low %v2106_v8, %v2114_v9  ;;  %v5272_v25 = vcombine.low %v2107_v11, %v2115_v15  ;;  %v6212_v15 = vld [vmem:[%s6675_s7] sm:$0xff] }
 0xa29   : > { %5664 = vmatpush3.bf16.msra.mxu1 %v1863_v26  ;;  %v5255_v26 = vcombine.high %v2090_v21, %v2098_v22  ;;  %v6213_v22 = vld [vmem:[%s6675_s7 + $0x8] sm:$0xff]  ;;  %s6372_s7 = scalar_lea.vmem %s4930_s21, 256 }
 0xa2a   : > { %3578 = vmatprep.subr.bf16.mxu1 %v5319_v49  ;;  %v2283_v49 = vld [vmem:[#allocation10 + $0x788] sm:$0xff]  ;;  %p6373_p0 = scmp.ne.s32.totalorder %s4930_s21, %s6372_s7  ;;  %p6380_p10 = scmp.lt.s32.totalorder %s6378_s28, %s6372_s7 }
 0xa2b   : > { %v5449_v55 = vcombine.high %v2283_v49, %v2291_v50  ;;  %v5448_v63 = vcombine.low %v2283_v49, %v2291_v50  ;;  %v2211_v49 = vld [vmem:[#allocation10 + $0x548] sm:$0xff] }
 0xa2c   : > { %p6374_p2 = pnand %p6373_p0, %p6983_p4  ;;  %p6381_p12 = por %p6380_p10, %p6379_p7 }
 0xa2e   : > { %p6375_p5 = pneg %p6374_p2 }
 0xa30   : > { %p6382_p3 = pnand %p6381_p12, %p6375_p5 }
 0xa35   : > { %v6175_v10 = vpop.eup %6174 }
 0xa36   : > { %v1850_v27 = vsel %vm1230_vm3, %v6175_v10, 0.0 }
 0xa37   : > { %1851 = vadd.xlane.f32.xlu0 %v1850_v27  ;;  %v2074_v27 = vld [vmem:[#allocation10 + $0x100] sm:$0xff] }
 0xa53   : > { %v1783_v1 = vpop.f32.mrf.mxu0 }
 0xa54   : > { %v6826_v29 = vadd.f32 %v1783_v1, %v6803_v37  ;;  %v2082_v1 = vld [vmem:[#allocation10 + $0x140] sm:$0xff] }
 0xa55   : > { %v1785_v31 = vpop.f32.mrf.mxu0  ;;  %v5239_v33 = vcombine.high %v2074_v27, %v2082_v1  ;;  %v5238_v35 = vcombine.low %v2074_v27, %v2082_v1  ;;  %v2251_v27 = vld [vmem:[#allocation10 + $0x688] sm:$0xff] }
 0xa56   : > { %v6829_v32 = vadd.f32 %v1785_v31, %v6805_v39  ;;  %v5256_v31 = vcombine.low %v2091_v54, %v2099_v23 }
 0xa57   : > { %v1787_v12 = vpop.f32.mrf.mxu0 }
 0xa58   : > { %v5241_v12 = vcombine.high %v2075_v0, %v2083_v28 }
 0xa59   : > { %v1788_v62 = vpop.f32.mrf.mxu0 }
 0xa5a   : > { %v2066_v62 = vld [vmem:[#allocation10 + $0xc0] sm:$0xff] }
 0xac0   : > { %v1852_v36 = vpop.xlane.xlu0 %1851 }
 0xac1   : > { %6176 = vrcp.f32 %v1852_v36  ;;  %v5240_v36 = vcombine.low %v2075_v0, %v2083_v28  ;;  %v2259_v0 = vld [vmem:[#allocation10 + $0x6c8] sm:$0xff] }
 0xace   : > { %v6177_v37 = vpop.eup %6176 }
 0xacf   : > { %v1854_v38 = vmul.f32 %v6177_v37, %v6175_v10  ;;  %v5257_v10 = vcombine.high %v2091_v54, %v2099_v23  ;;  %v5223_v37 = vcombine.high %v2058_v56, %v2066_v62 }
 0xad1   : > { %v1855_v39 = vpack.c.bf16 %v1854_v38, %v1854_v38  ;;  %v5225_v38 = vcombine.high %v2059_v17, %v2067_v34 }
 0xad3   : > { %5666 = vmatmul.mubr.msk.bf16.vlgmr.msra.gmra.mxu1 %vm1230_vm3, %v1855_v39  ;;  %v2042_v39 = vld [vmem:[#allocation10] sm:$0xff] }
 0xad4   : > { %3579 = vmatpush1.bf16.msra.mxu1 %v5318_v48  ;;  %v2290_v48 = vld [vmem:[#allocation10 + $0x7c0] sm:$0xff] }
 0xad5   : > { %3580 = vmatprep.subr.bf16.mxu1 %v5303_v57  ;;  %v2266_v57 = vld [vmem:[#allocation10 + $0x700] sm:$0xff] }
 0xad6   : > { %v5431_v2 = vcombine.high %v2266_v57, %v2274_v58 }
 0xad8   : > { %3581 = vmatpush1.bf16.msra.mxu1 %v5302_v4  ;;  %v5430_v4 = vcombine.low %v2266_v57, %v2274_v58  ;;  %v2187_v57 = vld [vmem:[#allocation10 + $0x488] sm:$0xff] }
 0xad9   : > { %3582 = vmatprep.subr.bf16.mxu1 %v5287_v6  ;;  %v2002_v6 = vld [vmem:[#allocation8] sm:$0x3] }
 0xada   : > { %v2007_v9 = vrot.slane %v2002_v6, %v6709_v14 }
 0xadc   : > { %3583 = vmatpush1.bf16.msra.mxu1 %v5286_v16 }
 0xadd   : > { %3584 = vmatprep.subr.bf16.mxu1 %v5271_v19  ;;  %v2011_v19 = vrot.slane %v2002_v6, %v6706_v13  ;;  %v2179_v6 = vld [vmem:[#allocation10 + $0x448] sm:$0xff] }
 0xae0   : > { %3585 = vmatpush1.bf16.msra.mxu1 %v5270_v24 }
 0xae1   : > { %3586 = vmatprep.subr.bf16.mxu1 %v5255_v26 }
 0xae4   : > { %3587 = vmatpush1.bf16.msra.mxu1 %v5254_v30  ;;  %v5416_v30 = vcombine.low %v2251_v27, %v2259_v0 }
 0xae5   : > { %3588 = vmatprep.subr.bf16.mxu1 %v5239_v33  ;;  %v2234_v33 = vld [vmem:[#allocation10 + $0x600] sm:$0xff] }
 0xae8   : > { %3589 = vmatpush1.bf16.msra.mxu1 %v5238_v35 }
 0xae9   : > { %3590 = vmatprep.subr.bf16.mxu1 %v5223_v37  ;;  %v2218_v37 = vld [vmem:[#allocation10 + $0x580] sm:$0xff] }
 0xb93   : > { %v1899_v40 = vpop.f32.mrf.mxu1 }
 0xb94   : > { %v1905_v41 = vpack.c.bf16 %v1899_v40, %v1899_v40  ;;  %v2050_v40 = vld [vmem:[#allocation10 + $0x40] sm:$0xff] }
 0xb95   : > { %v5667_v42 = vpop.f32.mrf.mxu1  ;;  %v5207_v45 = vcombine.high %v2042_v39, %v2050_v40  ;;  %v5206_v51 = vcombine.low %v2042_v39, %v2050_v40  ;;  %v2219_v39 = vld [vmem:[#allocation10 + $0x588] sm:$0xff] }
 0xb96   : > { %5205 = vmatmul.mubr.msk.bf16.vlgmr.msra.gmra.mxu0 %vm1183_vm1, %v1905_v41  ;;  %v2043_v41 = vld [vmem:[#allocation10 + $0x8] sm:$0xff] }
 0xb97   : > { %v1902_v43 = vpop.f32.mrf.mxu1  ;;  %3620 = vmatpush1.bf16.msra.mxu0 %v5320_v53  ;;  %v2051_v42 = vld [vmem:[#allocation10 + $0x48] sm:$0xff]  ;;  %v5447_v53 = vcombine.high %v2282_v47, %v2290_v48 }
 0xb98   : > { %3621 = vmatprep.subr.bf16.mxu0 %v5305_v61  ;;  %v5222_v43 = vcombine.low %v2058_v56, %v2066_v62  ;;  %v5209_v46 = vcombine.high %v2043_v41, %v2051_v42  ;;  %v5208_v52 = vcombine.low %v2043_v41, %v2051_v42  ;;  %v5446_v61 = vcombine.low %v2282_v47, %v2290_v48  ;;  %v2235_v56 = vld [vmem:[#allocation10 + $0x608] sm:$0xff] }
 0xb99   : > { %v5668_v44 = vpop.f32.mrf.mxu1  ;;  %v2227_v41 = vld [vmem:[#allocation10 + $0x5c8] sm:$0xff] }
 0xb9a   : > { %v5224_v44 = vcombine.low %v2059_v17, %v2067_v34  ;;  %3591 = vmatpush1.bf16.msra.mxu1 %v5222_v43  ;;  %v2243_v17 = vld [vmem:[#allocation10 + $0x648] sm:$0xff]  ;;  %v5384_v43 = vcombine.low %v2219_v39, %v2227_v41 }
 0xb9b   : > { %3622 = vmatpush1.bf16.msra.mxu0 %v5304_v5  ;;  %3592 = vmatprep.subr.bf16.mxu1 %v5207_v45  ;;  %v5432_v5 = vcombine.low %v2267_v59, %v2275_v60  ;;  %v5400_v35 = vcombine.low %v2235_v56, %v2243_v17  ;;  %v2202_v45 = vld [vmem:[#allocation10 + $0x500] sm:$0xff]  ;;  %v2203_v47 = vld [vmem:[#allocation10 + $0x508] sm:$0xff] }
 0xb9c   : > { %3623 = vmatprep.subr.bf16.mxu0 %v5289_v7  ;;  %v2195_v59 = vld [vmem:[#allocation10 + $0x4c8] sm:$0xff] }
 0xb9e   : > { %3593 = vmatpush1.bf16.msra.mxu1 %v5206_v51  ;;  %v5368_v51 = vcombine.low %v2203_v47, %v2211_v49 }
 0xb9f   : > { %3624 = vmatpush1.bf16.msra.mxu0 %v5288_v18  ;;  %3594 = vmatprep.subr.bf16.mxu1 %v5447_v53  ;;  %v2186_v53 = vld [vmem:[#allocation10 + $0x480] sm:$0xff] }
 0xba0   : > { %3625 = vmatprep.subr.bf16.mxu0 %v5273_v20 }
 0xba2   : > { %3595 = vmatpush2.bf16.msra.mxu1 %v5446_v61  ;;  %v5352_v61 = vcombine.low %v2187_v57, %v2195_v59 }
 0xba3   : > { %3626 = vmatpush1.bf16.msra.mxu0 %v5272_v25  ;;  %3596 = vmatprep.subr.bf16.mxu1 %v5431_v2  ;;  %v2170_v2 = vld [vmem:[#allocation10 + $0x400] sm:$0xff] }
 0xba4   : > { %3627 = vmatprep.subr.bf16.mxu0 %v5257_v10  ;;  %v2250_v10 = vld [vmem:[#allocation10 + $0x680] sm:$0xff] }
 0xba6   : > { %3597 = vmatpush2.bf16.msra.mxu1 %v5430_v4  ;;  %v2171_v4 = vld [vmem:[#allocation10 + $0x408] sm:$0xff] }
 0xba7   : > { %3628 = vmatpush1.bf16.msra.mxu0 %v5256_v31  ;;  %v5417_v31 = vcombine.high %v2251_v27, %v2259_v0 }
 0xba8   : > { %3629 = vmatprep.subr.bf16.mxu0 %v5241_v12  ;;  %v2242_v12 = vld [vmem:[#allocation10 + $0x640] sm:$0xff] }
 0xba9   : > { %v5399_v62 = vcombine.high %v2234_v33, %v2242_v12  ;;  %v5398_v34 = vcombine.low %v2234_v33, %v2242_v12  ;;  %v2148_v33 = vld [vmem:[#allocation10 + $0x350] sm:$0xff]  ;;  %v2141_v12 = vld [vmem:[#allocation10 + $0x318] sm:$0xff] }
 0xbab   : > { %3630 = vmatpush1.bf16.msra.mxu0 %v5240_v36  ;;  %v5401_v36 = vcombine.high %v2235_v56, %v2243_v17  ;;  %v2149_v56 = vld [vmem:[#allocation10 + $0x358] sm:$0xff] }
 0xbac   : > { %3631 = vmatprep.subr.bf16.mxu0 %v5225_v38  ;;  %v2226_v38 = vld [vmem:[#allocation10 + $0x5c0] sm:$0xff] }
 0xbad   : > { %v5383_v40 = vcombine.high %v2218_v37, %v2226_v38  ;;  %v5382_v42 = vcombine.low %v2218_v37, %v2226_v38  ;;  %v2133_v37 = vld [vmem:[#allocation10 + $0x2d8] sm:$0xff] }
 0xbaf   : > { %3632 = vmatpush1.bf16.msra.mxu0 %v5224_v44  ;;  %v5385_v44 = vcombine.high %v2219_v39, %v2227_v41  ;;  %v5308_v39 = vcombine.low %v2141_v12, %v2149_v56 }
 0xbb0   : > { %3633 = vmatprep.subr.bf16.mxu0 %v5209_v46  ;;  %v2210_v46 = vld [vmem:[#allocation10 + $0x540] sm:$0xff] }
 0xbb1   : > { %v5367_v48 = vcombine.high %v2202_v45, %v2210_v46  ;;  %v5366_v50 = vcombine.low %v2202_v45, %v2210_v46  ;;  %v2117_v45 = vld [vmem:[#allocation10 + $0x258] sm:$0xff] }
 0xbb3   : > { %3634 = vmatpush1.bf16.msra.mxu0 %v5208_v52  ;;  %v5369_v52 = vcombine.high %v2203_v47, %v2211_v49 }
 0xbb4   : > { %3635 = vmatprep.subr.bf16.mxu0 %v5449_v55  ;;  %v2194_v55 = vld [vmem:[#allocation10 + $0x4c0] sm:$0xff] }
 0xbb5   : > { %v5351_v58 = vcombine.high %v2186_v53, %v2194_v55  ;;  %v5350_v60 = vcombine.low %v2186_v53, %v2194_v55  ;;  %v2101_v53 = vld [vmem:[#allocation10 + $0x1d8] sm:$0xff] }
 0xbb7   : > { %3636 = vmatpush2.bf16.msra.mxu0 %v5448_v63  ;;  %v5353_v63 = vcombine.high %v2187_v57, %v2195_v59 }
 0xbb8   : > { %3637 = vmatprep.subr.bf16.mxu0 %v5433_v3  ;;  %v2178_v3 = vld [vmem:[#allocation10 + $0x440] sm:$0xff] }
 0xbbb   : > { %3638 = vmatpush2.bf16.msra.mxu0 %v5432_v5  ;;  %v5335_v5 = vcombine.high %v2170_v2, %v2178_v3 }
 0xbbc   : > { %3639 = vmatprep.subr.bf16.mxu0 %v5417_v31  ;;  %v2140_v31 = vld [vmem:[#allocation10 + $0x310] sm:$0xff] }
 0xbbd   : > { %v5306_v38 = vcombine.low %v2140_v31, %v2148_v33 }
 0xbbf   : > { %3640 = vmatpush2.bf16.msra.mxu0 %v5416_v30 }
 0xbc0   : > { %3641 = vmatprep.subr.bf16.mxu0 %v5401_v36  ;;  %v2125_v36 = vld [vmem:[#allocation10 + $0x298] sm:$0xff] }
 0xbc1   : > { %v5293_v41 = vcombine.high %v2125_v36, %v2133_v37  ;;  %v5292_v47 = vcombine.low %v2125_v36, %v2133_v37 }
 0xbc3   : > { %3642 = vmatpush2.bf16.msra.mxu0 %v5400_v35  ;;  %v2132_v35 = vld [vmem:[#allocation10 + $0x2d0] sm:$0xff] }
 0xbc4   : > { %3643 = vmatprep.subr.bf16.mxu0 %v5385_v44  ;;  %v2109_v44 = vld [vmem:[#allocation10 + $0x218] sm:$0xff] }
 0xbc5   : > { %v5277_v49 = vcombine.high %v2109_v44, %v2117_v45  ;;  %v5276_v57 = vcombine.low %v2109_v44, %v2117_v45 }
 0xbc7   : > { %3644 = vmatpush2.bf16.msra.mxu0 %v5384_v43  ;;  %v2116_v43 = vld [vmem:[#allocation10 + $0x250] sm:$0xff] }
 0xbc8   : > { %3645 = vmatprep.subr.bf16.mxu0 %v5369_v52  ;;  %v2093_v52 = vld [vmem:[#allocation10 + $0x198] sm:$0xff] }
 0xbc9   : > { %v5261_v59 = vcombine.high %v2093_v52, %v2101_v53 }
 0xbcb   : > { %3646 = vmatpush2.bf16.msra.mxu0 %v5368_v51  ;;  %v2100_v51 = vld [vmem:[#allocation10 + $0x1d0] sm:$0xff] }
 0xbcc   : > { %3647 = vmatprep.subr.bf16.mxu0 %v5353_v63  ;;  %v2077_v63 = vld [vmem:[#allocation10 + $0x118] sm:$0xff] }
 0xbcf   : > { %3648 = vmatpush2.bf16.msra.mxu0 %v5352_v61  ;;  %v2084_v61 = vld [vmem:[#allocation10 + $0x150] sm:$0xff] }
 0xc56   : > { %v1991_v7 = vpop.f32.mrf.mxu0 }
 0xc57   : > { %v1998_v8 = vadd.f32 %v1991_v7, %v6826_v29  ;;  %v5334_v7 = vcombine.low %v2170_v2, %v2178_v3  ;;  %v2085_v2 = vld [vmem:[#allocation10 + $0x158] sm:$0xff] }
 0xc58   : > { %v1993_v11 = vpop.f32.mrf.mxu0 }
 0xc59   : > { %v2000_v16 = vadd.f32 %v6212_v15, %v1998_v8  ;;  %v1999_v18 = vadd.f32 %v1993_v11, %v6829_v32  ;;  %v2258_v32 = vld [vmem:[#allocation10 + $0x6c0] sm:$0xff]  ;;  %v5336_v8 = vcombine.low %v2171_v4, %v2179_v6  ;;  %v2156_v11 = vld [vmem:[#allocation10 + $0x390] sm:$0xff] }
 0xc5a   : > { %v1995_v20 = vpop.f32.mrf.mxu0  ;;  %v5415_v1 = vcombine.high %v2250_v10, %v2258_v32  ;;  %v5414_v28 = vcombine.low %v2250_v10, %v2258_v32  ;;  %v2164_v15 = vld [vmem:[#allocation10 + $0x3d0] sm:$0xff] }
 0xc5b   : > { %v6838_v21 = vadd.f32 %v2007_v9, %v2000_v16  ;;  %v2001_v54 = vadd.f32 %v6213_v22, %v1999_v18  ;;  %v5337_v9 = vcombine.high %v2171_v4, %v2179_v6  ;;  %v2157_v16 = vld [vmem:[#allocation10 + $0x398] sm:$0xff]  ;;  %v5323_v18 = vcombine.high %v2156_v11, %v2164_v15 }
 0xc5c   : > { %v1996_v23 = vpop.f32.mrf.mxu0  ;;  %3598 = vmatprep.subr.bf16.mxu1 %v5415_v1  ;;  %v5322_v20 = vcombine.low %v2156_v11, %v2164_v15  ;;  %v5260_v4 = vcombine.low %v2093_v52, %v2101_v53  ;;  %v5245_v6 = vcombine.high %v2077_v63, %v2085_v2  ;;  %v2069_v11 = vld [vmem:[#allocation10 + $0xd8] sm:$0xff] }
 0xc5d   : > { %v6841_v24 = vadd.f32 %v2011_v19, %v2001_v54  ;;  %v2017_v29 = vmul.f32 %v6838_v21, %v6838_v21  ;;  %3599 = vmatpush2.bf16.msra.mxu1 %v5414_v28  ;;  %3649 = vmatprep.subr.bf16.mxu0 %v5337_v9  ;;  %v2165_v19 = vld [vmem:[#allocation10 + $0x3d8] sm:$0xff] }
 0xc5e   : > { %3600 = vmatprep.subr.bf16.mxu1 %v5399_v62  ;;  %3650 = vmatpush2.bf16.msra.mxu0 %v5336_v8  ;;  %v5324_v22 = vcombine.low %v2157_v16, %v2165_v19  ;;  %v5325_v54 = vcombine.high %v2157_v16, %v2165_v19  ;;  %v2068_v8 = vld [vmem:[#allocation10 + $0xd0] sm:$0xff]  ;;  %v2061_v9 = vld [vmem:[#allocation10 + $0x98] sm:$0xff]  ;;  %v5244_v16 = vcombine.low %v2077_v63, %v2085_v2 }
 0xc5f   : > { %v2018_v25 = vmul.f32 %v6841_v24, %v6841_v24  ;;  %v5229_v19 = vcombine.high %v2061_v9, %v2069_v11 }
 0xc60   : > { %3701 = vmatprep.subr.bf16.mxu0 %v5325_v54  ;;  %v2045_v54 = vld [vmem:[#allocation10 + $0x18] sm:$0xff] }
 0xc61   : > { %v2019_v26 = vadd.f32 %v2018_v25, %v2017_v29  ;;  %3601 = vmatpush2.bf16.msra.mxu1 %v5398_v34  ;;  %v2124_v34 = vld [vmem:[#allocation10 + $0x290] sm:$0xff] }
 0xc62   : > { %3602 = vmatprep.subr.bf16.mxu1 %v5383_v40  ;;  %v5291_v40 = vcombine.high %v2124_v34, %v2132_v35  ;;  %v5290_v46 = vcombine.low %v2124_v34, %v2132_v35  ;;  %v2269_v34 = vld [vmem:[#allocation10 + $0x718] sm:$0xff] }
 0xc63   : > { %2020 = vadd.xlane.f32.xlu0 %v2019_v26  ;;  %v2016_v26 = vld [vmem:[%s6951_s6] sm:$0x3] }
 0xc64   : > { %v2031_v10 = vrot.slane %v2016_v26, %v6709_v14  ;;  %v2035_v32 = vrot.slane %v2016_v26, %v6706_v13  ;;  %v5307_v13 = vcombine.high %v2140_v31, %v2148_v33  ;;  %v5309_v14 = vcombine.high %v2141_v12, %v2149_v56  ;;  %v2268_v12 = vld [vmem:[#allocation10 + $0x710] sm:$0xff] }
 0xc65   : > { %3603 = vmatpush2.bf16.msra.mxu1 %v5382_v42  ;;  %v2108_v42 = vld [vmem:[#allocation10 + $0x210] sm:$0xff] }
 0xc66   : > { %3604 = vmatprep.subr.bf16.mxu1 %v5367_v48  ;;  %v5275_v48 = vcombine.high %v2108_v42, %v2116_v43  ;;  %v5274_v55 = vcombine.low %v2108_v42, %v2116_v43  ;;  %v2276_v56 = vld [vmem:[#allocation10 + $0x750] sm:$0xff] }
 0xc67   : > { %v5435_v36 = vcombine.high %v2268_v12, %v2276_v56  ;;  %v5434_v42 = vcombine.low %v2268_v12, %v2276_v56 }
 0xc69   : > { %3605 = vmatpush2.bf16.msra.mxu1 %v5366_v50  ;;  %v2092_v50 = vld [vmem:[#allocation10 + $0x190] sm:$0xff] }
 0xc6a   : > { %3606 = vmatprep.subr.bf16.mxu1 %v5351_v58  ;;  %v5259_v58 = vcombine.high %v2092_v50, %v2100_v51  ;;  %v5258_v3 = vcombine.low %v2092_v50, %v2100_v51 }
 0xc6d   : > { %3607 = vmatpush2.bf16.msra.mxu1 %v5350_v60  ;;  %v2076_v60 = vld [vmem:[#allocation10 + $0x110] sm:$0xff] }
 0xc6e   : > { %3608 = vmatprep.subr.bf16.mxu1 %v5335_v5  ;;  %v5243_v5 = vcombine.high %v2076_v60, %v2084_v61  ;;  %v5242_v15 = vcombine.low %v2076_v60, %v2084_v61 }
 0xc71   : > { %3609 = vmatpush2.bf16.msra.mxu1 %v5334_v7  ;;  %v2060_v7 = vld [vmem:[#allocation10 + $0x90] sm:$0xff] }
 0xc72   : > { %3660 = vmatprep.subr.bf16.mxu1 %v5323_v18  ;;  %v5227_v18 = vcombine.high %v2060_v7, %v2068_v8 }
 0xcec   : > { %v2021_v23 = vpop.xlane.xlu0 %2020 }
 0xced   : > { %v2022_v29 = vmul.f32 0.00390625, %v2021_v23  ;;  %v2053_v23 = vld [vmem:[#allocation10 + $0x58] sm:$0xff] }
 0xcef   : > { %v2023_v25 = vadd.f32 1e-06, %v2022_v29  ;;  %v5226_v29 = vcombine.low %v2060_v7, %v2068_v8 }
 0xcf1   : > { %6178 = vrsqrt.f32 %v2023_v25  ;;  %v5228_v25 = vcombine.low %v2061_v9, %v2069_v11 }
 0xcfe   : > { %v6179_v27 = vpop.eup %6178 }
 0xcff   : > { %v2025_v1 = vmul.f32 %v6179_v27, %v6838_v21  ;;  %v2026_v0 = vmul.f32 %v6179_v27, %v6841_v24  ;;  %v2292_v27 = vld [vmem:[#allocation10 + $0x7d0] sm:$0xff] }
 0xd01   : > { %v2038_v28 = vmul.f32 %v2031_v10, %v2025_v1  ;;  %v2039_v30 = vmul.f32 %v2035_v32, %v2026_v0  ;;  %v5213_v10 = vcombine.high %v2045_v54, %v2053_v23  ;;  %v2284_v32 = vld [vmem:[#allocation10 + $0x790] sm:$0xff]  ;;  %v2285_v1 = vld [vmem:[#allocation10 + $0x798] sm:$0xff] }
 0xd02   : > { %v2293_v0 = vld [vmem:[#allocation10 + $0x7d8] sm:$0xff]  ;;  %v5451_v31 = vcombine.high %v2284_v32, %v2292_v27 }
 0xd03   : > { %v6854_v62 = vpack.c.bf16 %v2038_v28, %v2038_v28  ;;  %v6856_v17 = vpack.c.bf16 %v2039_v30, %v2039_v30  ;;  %v5212_v30 = vcombine.low %v2045_v54, %v2053_v23  ;;  %v5453_v33 = vcombine.high %v2285_v1, %v2293_v0 }
 0xd04   : > { %v5452_v35 = vcombine.low %v2285_v1, %v2293_v0 }
 0xd05   : > { %3610 = vmatprep.mubr.bf16.mxu1 %v6856_v17  ;;  %3651 = vmatprep.mubr.bf16.mxu0 %v6856_v17 }
 0xd06   : > { %3611 = vmatmul.mubr.bf16.vlgmr.msra.gmra.mxu1 %v6854_v62  ;;  %3652 = vmatmul.mubr.bf16.vlgmr.msra.gmra.mxu0 %v6854_v62 }
 0xd07   : > { %3661 = vmatpush1.bf16.msra.mxu1 %v5322_v20  ;;  %3702 = vmatpush1.bf16.msra.mxu0 %v5324_v22  ;;  %v2044_v20 = vld [vmem:[#allocation10 + $0x10] sm:$0xff] }
 0xd08   : > { %3692 = vmatprep.mubr.bf16.mxu1 %v6856_v17  ;;  %3733 = vmatprep.mubr.bf16.mxu0 %v6856_v17  ;;  %v2052_v22 = vld [vmem:[#allocation10 + $0x50] sm:$0xff] }
 0xd09   : > { %3662 = vmatprep.subr.bf16.mxu1 %v5307_v13  ;;  %3703 = vmatprep.subr.bf16.mxu0 %v5309_v14  ;;  %v5211_v26 = vcombine.high %v2044_v20, %v2052_v22  ;;  %v5210_v28 = vcombine.low %v2044_v20, %v2052_v22  ;;  %v2277_v13 = vld [vmem:[#allocation10 + $0x758] sm:$0xff]  ;;  %v5450_v14 = vcombine.low %v2284_v32, %v2292_v27 }
 0xd0a   : > { %v5437_v37 = vcombine.high %v2269_v34, %v2277_v13  ;;  %v5436_v43 = vcombine.low %v2269_v34, %v2277_v13 }
 0xd0b   : > { %3663 = vmatpush1.bf16.msra.mxu1 %v5306_v38  ;;  %3704 = vmatpush1.bf16.msra.mxu0 %v5308_v39  ;;  %v2252_v38 = vld [vmem:[#allocation10 + $0x690] sm:$0xff] }
 0xd0c   : > { %3664 = vmatprep.subr.bf16.mxu1 %v5291_v40  ;;  %3705 = vmatprep.subr.bf16.mxu0 %v5293_v41  ;;  %v2260_v39 = vld [vmem:[#allocation10 + $0x6d0] sm:$0xff]  ;;  %v2253_v40 = vld [vmem:[#allocation10 + $0x698] sm:$0xff] }
 0xd0d   : > { %v2261_v41 = vld [vmem:[#allocation10 + $0x6d8] sm:$0xff]  ;;  %v5419_v44 = vcombine.high %v2252_v38, %v2260_v39  ;;  %v5418_v50 = vcombine.low %v2252_v38, %v2260_v39 }
 0xd0e   : > { %v5421_v45 = vcombine.high %v2253_v40, %v2261_v41  ;;  %v5420_v51 = vcombine.low %v2253_v40, %v2261_v41 }
 0xd0f   : > { %3665 = vmatpush1.bf16.msra.mxu1 %v5290_v46  ;;  %3706 = vmatpush1.bf16.msra.mxu0 %v5292_v47  ;;  %v2236_v46 = vld [vmem:[#allocation10 + $0x610] sm:$0xff] }
 0xd10   : > { %3666 = vmatprep.subr.bf16.mxu1 %v5275_v48  ;;  %3707 = vmatprep.subr.bf16.mxu0 %v5277_v49  ;;  %v2244_v47 = vld [vmem:[#allocation10 + $0x650] sm:$0xff]  ;;  %v2237_v48 = vld [vmem:[#allocation10 + $0x618] sm:$0xff] }
 0xd11   : > { %v2245_v49 = vld [vmem:[#allocation10 + $0x658] sm:$0xff]  ;;  %v5403_v52 = vcombine.high %v2236_v46, %v2244_v47  ;;  %v5402_v60 = vcombine.low %v2236_v46, %v2244_v47 }
 0xd12   : > { %v5405_v53 = vcombine.high %v2237_v48, %v2245_v49  ;;  %v5404_v61 = vcombine.low %v2237_v48, %v2245_v49 }
 0xd13   : > { %3667 = vmatpush1.bf16.msra.mxu1 %v5274_v55  ;;  %3708 = vmatpush1.bf16.msra.mxu0 %v5276_v57  ;;  %v2220_v55 = vld [vmem:[#allocation10 + $0x590] sm:$0xff] }
 0xd14   : > { %3668 = vmatprep.subr.bf16.mxu1 %v5259_v58  ;;  %3709 = vmatprep.subr.bf16.mxu0 %v5261_v59  ;;  %v2228_v57 = vld [vmem:[#allocation10 + $0x5d0] sm:$0xff]  ;;  %v2221_v58 = vld [vmem:[#allocation10 + $0x598] sm:$0xff] }
 0xd15   : > { %v2229_v59 = vld [vmem:[#allocation10 + $0x5d8] sm:$0xff]  ;;  %v5387_v63 = vcombine.high %v2220_v55, %v2228_v57  ;;  %v5386_v7 = vcombine.low %v2220_v55, %v2228_v57 }
 0xd16   : > { %v5389_v2 = vcombine.high %v2221_v58, %v2229_v59  ;;  %v5388_v8 = vcombine.low %v2221_v58, %v2229_v59 }
 0xd17   : > { %3669 = vmatpush1.bf16.msra.mxu1 %v5258_v3  ;;  %3710 = vmatpush1.bf16.msra.mxu0 %v5260_v4  ;;  %v2204_v3 = vld [vmem:[#allocation10 + $0x510] sm:$0xff] }
 0xd18   : > { %3670 = vmatprep.subr.bf16.mxu1 %v5243_v5  ;;  %3711 = vmatprep.subr.bf16.mxu0 %v5245_v6  ;;  %v2212_v4 = vld [vmem:[#allocation10 + $0x550] sm:$0xff]  ;;  %v2205_v5 = vld [vmem:[#allocation10 + $0x518] sm:$0xff] }
 0xd19   : > { %v2213_v6 = vld [vmem:[#allocation10 + $0x558] sm:$0xff]  ;;  %v5371_v9 = vcombine.high %v2204_v3, %v2212_v4  ;;  %v5370_v20 = vcombine.low %v2204_v3, %v2212_v4 }
 0xd1a   : > { %v5373_v11 = vcombine.high %v2205_v5, %v2213_v6  ;;  %v5372_v22 = vcombine.low %v2205_v5, %v2213_v6 }
 0xd1b   : > { %3671 = vmatpush1.bf16.msra.mxu1 %v5242_v15  ;;  %3712 = vmatpush1.bf16.msra.mxu0 %v5244_v16  ;;  %v2188_v15 = vld [vmem:[#allocation10 + $0x490] sm:$0xff] }
 0xd1c   : > { %3672 = vmatprep.subr.bf16.mxu1 %v5227_v18  ;;  %3713 = vmatprep.subr.bf16.mxu0 %v5229_v19  ;;  %v2196_v16 = vld [vmem:[#allocation10 + $0x4d0] sm:$0xff]  ;;  %v2189_v18 = vld [vmem:[#allocation10 + $0x498] sm:$0xff] }
 0xd1d   : > { %v2197_v19 = vld [vmem:[#allocation10 + $0x4d8] sm:$0xff]  ;;  %v5355_v54 = vcombine.high %v2188_v15, %v2196_v16  ;;  %v5354_v32 = vcombine.low %v2188_v15, %v2196_v16 }
 0xd1e   : > { %v5357_v23 = vcombine.high %v2189_v18, %v2197_v19  ;;  %v5356_v27 = vcombine.low %v2189_v18, %v2197_v19 }
 0xd1f   : > { %3673 = vmatpush1.bf16.msra.mxu1 %v5226_v29  ;;  %3714 = vmatpush1.bf16.msra.mxu0 %v5228_v25  ;;  %v2172_v29 = vld [vmem:[#allocation10 + $0x410] sm:$0xff] }
 0xd20   : > { %3674 = vmatprep.subr.bf16.mxu1 %v5211_v26  ;;  %3715 = vmatprep.subr.bf16.mxu0 %v5213_v10  ;;  %v2180_v25 = vld [vmem:[#allocation10 + $0x450] sm:$0xff]  ;;  %v2173_v26 = vld [vmem:[#allocation10 + $0x418] sm:$0xff] }
 0xd21   : > { %v2181_v10 = vld [vmem:[#allocation10 + $0x458] sm:$0xff]  ;;  %v5339_v1 = vcombine.high %v2172_v29, %v2180_v25  ;;  %v5338_v12 = vcombine.low %v2172_v29, %v2180_v25 }
 0xd22   : > { %v5341_v0 = vcombine.high %v2173_v26, %v2181_v10  ;;  %v5340_v56 = vcombine.low %v2173_v26, %v2181_v10 }
 0xd23   : > { %3675 = vmatpush1.bf16.msra.mxu1 %v5210_v28  ;;  %3716 = vmatpush1.bf16.msra.mxu0 %v5212_v30  ;;  %v2158_v28 = vld [vmem:[#allocation10 + $0x3a0] sm:$0xff] }
 0xd24   : > { %3676 = vmatprep.subr.bf16.mxu1 %v5451_v31  ;;  %3717 = vmatprep.subr.bf16.mxu0 %v5453_v33  ;;  %v2166_v30 = vld [vmem:[#allocation10 + $0x3e0] sm:$0xff]  ;;  %v2159_v31 = vld [vmem:[#allocation10 + $0x3a8] sm:$0xff] }
 0xd25   : > { %v2167_v33 = vld [vmem:[#allocation10 + $0x3e8] sm:$0xff]  ;;  %v5327_v34 = vcombine.high %v2158_v28, %v2166_v30  ;;  %v5326_v38 = vcombine.low %v2158_v28, %v2166_v30 }
 0xd26   : > { %v5329_v13 = vcombine.high %v2159_v31, %v2167_v33  ;;  %v5328_v39 = vcombine.low %v2159_v31, %v2167_v33 }
 0xd27   : > { %3677 = vmatpush2.bf16.msra.mxu1 %v5450_v14  ;;  %3718 = vmatpush2.bf16.msra.mxu0 %v5452_v35  ;;  %v2142_v14 = vld [vmem:[#allocation10 + $0x320] sm:$0xff] }
 0xd28   : > { %3678 = vmatprep.subr.bf16.mxu1 %v5435_v36  ;;  %3719 = vmatprep.subr.bf16.mxu0 %v5437_v37  ;;  %v2150_v35 = vld [vmem:[#allocation10 + $0x360] sm:$0xff]  ;;  %v2143_v36 = vld [vmem:[#allocation10 + $0x328] sm:$0xff] }
 0xd29   : > { %v2151_v37 = vld [vmem:[#allocation10 + $0x368] sm:$0xff]  ;;  %v5311_v40 = vcombine.high %v2142_v14, %v2150_v35  ;;  %v5310_v46 = vcombine.low %v2142_v14, %v2150_v35 }
 0xd2a   : > { %v5313_v41 = vcombine.high %v2143_v36, %v2151_v37  ;;  %v5312_v47 = vcombine.low %v2143_v36, %v2151_v37 }
 0xd2b   : > { %3679 = vmatpush2.bf16.msra.mxu1 %v5434_v42  ;;  %3720 = vmatpush2.bf16.msra.mxu0 %v5436_v43  ;;  %v2126_v42 = vld [vmem:[#allocation10 + $0x2a0] sm:$0xff] }
 0xd2c   : > { %3680 = vmatprep.subr.bf16.mxu1 %v5419_v44  ;;  %3721 = vmatprep.subr.bf16.mxu0 %v5421_v45  ;;  %v2134_v43 = vld [vmem:[#allocation10 + $0x2e0] sm:$0xff]  ;;  %v2127_v44 = vld [vmem:[#allocation10 + $0x2a8] sm:$0xff] }
 0xd2d   : > { %v2135_v45 = vld [vmem:[#allocation10 + $0x2e8] sm:$0xff]  ;;  %v5295_v48 = vcombine.high %v2126_v42, %v2134_v43  ;;  %v5294_v55 = vcombine.low %v2126_v42, %v2134_v43 }
 0xd2e   : > { %v5297_v49 = vcombine.high %v2127_v44, %v2135_v45  ;;  %v5296_v57 = vcombine.low %v2127_v44, %v2135_v45 }
 0xd2f   : > { %3681 = vmatpush2.bf16.msra.mxu1 %v5418_v50  ;;  %3722 = vmatpush2.bf16.msra.mxu0 %v5420_v51  ;;  %v2110_v50 = vld [vmem:[#allocation10 + $0x220] sm:$0xff] }
 0xd30   : > { %3682 = vmatprep.subr.bf16.mxu1 %v5403_v52  ;;  %3723 = vmatprep.subr.bf16.mxu0 %v5405_v53  ;;  %v2118_v51 = vld [vmem:[#allocation10 + $0x260] sm:$0xff]  ;;  %v2111_v52 = vld [vmem:[#allocation10 + $0x228] sm:$0xff] }
 0xd31   : > { %v2119_v53 = vld [vmem:[#allocation10 + $0x268] sm:$0xff]  ;;  %v5279_v58 = vcombine.high %v2110_v50, %v2118_v51  ;;  %v5278_v3 = vcombine.low %v2110_v50, %v2118_v51 }
 0xd32   : > { %v5281_v59 = vcombine.high %v2111_v52, %v2119_v53  ;;  %v5280_v4 = vcombine.low %v2111_v52, %v2119_v53 }
 0xd33   : > { %3683 = vmatpush2.bf16.msra.mxu1 %v5402_v60  ;;  %3724 = vmatpush2.bf16.msra.mxu0 %v5404_v61  ;;  %v2094_v60 = vld [vmem:[#allocation10 + $0x1a0] sm:$0xff] }
 0xd34   : > { %3684 = vmatprep.subr.bf16.mxu1 %v5387_v63  ;;  %3725 = vmatprep.subr.bf16.mxu0 %v5389_v2  ;;  %v2102_v61 = vld [vmem:[#allocation10 + $0x1e0] sm:$0xff]  ;;  %v2095_v63 = vld [vmem:[#allocation10 + $0x1a8] sm:$0xff] }
 0xd35   : > { %v2103_v2 = vld [vmem:[#allocation10 + $0x1e8] sm:$0xff]  ;;  %v5263_v5 = vcombine.high %v2094_v60, %v2102_v61  ;;  %v5262_v15 = vcombine.low %v2094_v60, %v2102_v61 }
 0xd36   : > { %v5265_v6 = vcombine.high %v2095_v63, %v2103_v2  ;;  %v5264_v16 = vcombine.low %v2095_v63, %v2103_v2 }
 0xd37   : > { %3685 = vmatpush2.bf16.msra.mxu1 %v5386_v7  ;;  %3726 = vmatpush2.bf16.msra.mxu0 %v5388_v8  ;;  %v2078_v7 = vld [vmem:[#allocation10 + $0x120] sm:$0xff] }
 0xd38   : > { %3686 = vmatprep.subr.bf16.mxu1 %v5371_v9  ;;  %3727 = vmatprep.subr.bf16.mxu0 %v5373_v11  ;;  %v2086_v8 = vld [vmem:[#allocation10 + $0x160] sm:$0xff]  ;;  %v2079_v9 = vld [vmem:[#allocation10 + $0x128] sm:$0xff] }
 0xd39   : > { %v2087_v11 = vld [vmem:[#allocation10 + $0x168] sm:$0xff]  ;;  %v5247_v18 = vcombine.high %v2078_v7, %v2086_v8  ;;  %v5246_v29 = vcombine.low %v2078_v7, %v2086_v8 }
 0xd3a   : > { %v5249_v19 = vcombine.high %v2079_v9, %v2087_v11  ;;  %v5248_v25 = vcombine.low %v2079_v9, %v2087_v11 }
 0xd3b   : > { %3687 = vmatpush2.bf16.msra.mxu1 %v5370_v20  ;;  %3728 = vmatpush2.bf16.msra.mxu0 %v5372_v22  ;;  %v2062_v20 = vld [vmem:[#allocation10 + $0xa0] sm:$0xff] }
 0xd3c   : > { %3688 = vmatprep.subr.bf16.mxu1 %v5355_v54  ;;  %3729 = vmatprep.subr.bf16.mxu0 %v5357_v23  ;;  %v2070_v22 = vld [vmem:[#allocation10 + $0xe0] sm:$0xff]  ;;  %v2063_v54 = vld [vmem:[#allocation10 + $0xa8] sm:$0xff] }
 0xd3d   : > { %v2071_v23 = vld [vmem:[#allocation10 + $0xe8] sm:$0xff]  ;;  %v5231_v26 = vcombine.high %v2062_v20, %v2070_v22  ;;  %v5230_v28 = vcombine.low %v2062_v20, %v2070_v22 }
 0xd3e   : > { %v5233_v10 = vcombine.high %v2063_v54, %v2071_v23  ;;  %v5232_v30 = vcombine.low %v2063_v54, %v2071_v23 }
 0xd3f   : > { %3689 = vmatpush2.bf16.msra.mxu1 %v5354_v32  ;;  %3730 = vmatpush2.bf16.msra.mxu0 %v5356_v27  ;;  %v2046_v32 = vld [vmem:[#allocation10 + $0x20] sm:$0xff] }
 0xd40   : > { %3690 = vmatprep.subr.bf16.mxu1 %v5339_v1  ;;  %3731 = vmatprep.subr.bf16.mxu0 %v5341_v0  ;;  %v2054_v27 = vld [vmem:[#allocation10 + $0x60] sm:$0xff]  ;;  %v2047_v1 = vld [vmem:[#allocation10 + $0x28] sm:$0xff] }
 0xd41   : > { %v2055_v0 = vld [vmem:[#allocation10 + $0x68] sm:$0xff]  ;;  %v5215_v31 = vcombine.high %v2046_v32, %v2054_v27  ;;  %v5214_v14 = vcombine.low %v2046_v32, %v2054_v27 }
 0xd42   : > { %v5217_v33 = vcombine.high %v2047_v1, %v2055_v0  ;;  %v5216_v35 = vcombine.low %v2047_v1, %v2055_v0 }
 0xd43   : > { %3691 = vmatpush2.bf16.msra.mxu1 %v5338_v12  ;;  %3732 = vmatpush2.bf16.msra.mxu0 %v5340_v56  ;;  %v2286_v12 = vld [vmem:[#allocation10 + $0x7a0] sm:$0xff] }
 0xd44   : > { %3742 = vmatprep.subr.bf16.mxu1 %v5327_v34  ;;  %3783 = vmatprep.subr.bf16.mxu0 %v5329_v13  ;;  %v2294_v56 = vld [vmem:[#allocation10 + $0x7e0] sm:$0xff]  ;;  %v2287_v34 = vld [vmem:[#allocation10 + $0x7a8] sm:$0xff] }
 0xd45   : > { %v2295_v13 = vld [vmem:[#allocation10 + $0x7e8] sm:$0xff]  ;;  %v5455_v36 = vcombine.high %v2286_v12, %v2294_v56  ;;  %v5454_v42 = vcombine.low %v2286_v12, %v2294_v56 }
 0xd46   : > { %3693 = vmatmul.mubr.bf16.vlgmr.msra.gmra.mxu1 %v6854_v62  ;;  %3734 = vmatmul.mubr.bf16.vlgmr.msra.gmra.mxu0 %v6854_v62  ;;  %v5457_v37 = vcombine.high %v2287_v34, %v2295_v13  ;;  %v5456_v43 = vcombine.low %v2287_v34, %v2295_v13 }
 0xd47   : > { %3743 = vmatpush1.bf16.msra.mxu1 %v5326_v38  ;;  %3774 = vmatprep.mubr.bf16.mxu1 %v6856_v17  ;;  %v2270_v38 = vld [vmem:[#allocation10 + $0x720] sm:$0xff] }
 0xd48   : > { %3784 = vmatpush1.bf16.msra.mxu0 %v5328_v39  ;;  %3815 = vmatprep.mubr.bf16.mxu0 %v6856_v17  ;;  %v2278_v39 = vld [vmem:[#allocation10 + $0x760] sm:$0xff] }
 0xd49   : > { %3744 = vmatprep.subr.bf16.mxu1 %v5311_v40  ;;  %3785 = vmatprep.subr.bf16.mxu0 %v5313_v41  ;;  %v2271_v40 = vld [vmem:[#allocation10 + $0x728] sm:$0xff]  ;;  %v5439_v44 = vcombine.high %v2270_v38, %v2278_v39  ;;  %v5438_v50 = vcombine.low %v2270_v38, %v2278_v39 }
 0xd4a   : > { %v2279_v41 = vld [vmem:[#allocation10 + $0x768] sm:$0xff] }
 0xd4b   : > { %3745 = vmatpush1.bf16.msra.mxu1 %v5310_v46  ;;  %v5441_v45 = vcombine.high %v2271_v40, %v2279_v41  ;;  %v2254_v46 = vld [vmem:[#allocation10 + $0x6a0] sm:$0xff]  ;;  %v5440_v51 = vcombine.low %v2271_v40, %v2279_v41 }
 0xd4c   : > { %3786 = vmatpush1.bf16.msra.mxu0 %v5312_v47  ;;  %3746 = vmatprep.subr.bf16.mxu1 %v5295_v48  ;;  %v2262_v47 = vld [vmem:[#allocation10 + $0x6e0] sm:$0xff]  ;;  %v2255_v48 = vld [vmem:[#allocation10 + $0x6a8] sm:$0xff] }
 0xd4d   : > { %3787 = vmatprep.subr.bf16.mxu0 %v5297_v49  ;;  %v2263_v49 = vld [vmem:[#allocation10 + $0x6e8] sm:$0xff]  ;;  %v5423_v52 = vcombine.high %v2254_v46, %v2262_v47  ;;  %v5422_v60 = vcombine.low %v2254_v46, %v2262_v47  ;;  %v2153_v46 = vld [vmem:[#allocation10 + $0x378] sm:$0xff] }
 0xd4e   : > { %v5425_v53 = vcombine.high %v2255_v48, %v2263_v49  ;;  %v5424_v61 = vcombine.low %v2255_v48, %v2263_v49  ;;  %v2128_v49 = vld [vmem:[#allocation10 + $0x2b0] sm:$0xff] }
 0xd4f   : > { %3747 = vmatpush1.bf16.msra.mxu1 %v5294_v55  ;;  %v2238_v55 = vld [vmem:[#allocation10 + $0x620] sm:$0xff] }
 0xd50   : > { %3788 = vmatpush1.bf16.msra.mxu0 %v5296_v57  ;;  %3748 = vmatprep.subr.bf16.mxu1 %v5279_v58  ;;  %v2246_v57 = vld [vmem:[#allocation10 + $0x660] sm:$0xff]  ;;  %v2239_v58 = vld [vmem:[#allocation10 + $0x628] sm:$0xff] }
 0xd51   : > { %3789 = vmatprep.subr.bf16.mxu0 %v5281_v59  ;;  %v2247_v59 = vld [vmem:[#allocation10 + $0x668] sm:$0xff]  ;;  %v5407_v63 = vcombine.high %v2238_v55, %v2246_v57  ;;  %v5406_v7 = vcombine.low %v2238_v55, %v2246_v57 }
 0xd52   : > { %v5409_v2 = vcombine.high %v2239_v58, %v2247_v59  ;;  %v5408_v8 = vcombine.low %v2239_v58, %v2247_v59 }
 0xd53   : > { %3749 = vmatpush1.bf16.msra.mxu1 %v5278_v3  ;;  %v2222_v3 = vld [vmem:[#allocation10 + $0x5a0] sm:$0xff] }
 0xd54   : > { %3790 = vmatpush1.bf16.msra.mxu0 %v5280_v4  ;;  %3750 = vmatprep.subr.bf16.mxu1 %v5263_v5  ;;  %v2230_v4 = vld [vmem:[#allocation10 + $0x5e0] sm:$0xff]  ;;  %v2223_v5 = vld [vmem:[#allocation10 + $0x5a8] sm:$0xff] }
 0xd55   : > { %3791 = vmatprep.subr.bf16.mxu0 %v5265_v6  ;;  %v2231_v6 = vld [vmem:[#allocation10 + $0x5e8] sm:$0xff]  ;;  %v5391_v9 = vcombine.high %v2222_v3, %v2230_v4  ;;  %v5390_v20 = vcombine.low %v2222_v3, %v2230_v4 }
 0xd56   : > { %v5393_v11 = vcombine.high %v2223_v5, %v2231_v6  ;;  %v5392_v22 = vcombine.low %v2223_v5, %v2231_v6 }
 0xd57   : > { %3751 = vmatpush1.bf16.msra.mxu1 %v5262_v15  ;;  %v2206_v15 = vld [vmem:[#allocation10 + $0x520] sm:$0xff] }
 0xd58   : > { %3792 = vmatpush1.bf16.msra.mxu0 %v5264_v16  ;;  %3752 = vmatprep.subr.bf16.mxu1 %v5247_v18  ;;  %v2214_v16 = vld [vmem:[#allocation10 + $0x560] sm:$0xff]  ;;  %v2207_v18 = vld [vmem:[#allocation10 + $0x528] sm:$0xff] }
 0xd59   : > { %3793 = vmatprep.subr.bf16.mxu0 %v5249_v19  ;;  %v2215_v19 = vld [vmem:[#allocation10 + $0x568] sm:$0xff]  ;;  %v5375_v54 = vcombine.high %v2206_v15, %v2214_v16  ;;  %v5374_v32 = vcombine.low %v2206_v15, %v2214_v16 }
 0xd5a   : > { %v5377_v23 = vcombine.high %v2207_v18, %v2215_v19  ;;  %v5376_v27 = vcombine.low %v2207_v18, %v2215_v19  ;;  %v2080_v19 = vld [vmem:[#allocation10 + $0x130] sm:$0xff] }
 0xd5b   : > { %3753 = vmatpush1.bf16.msra.mxu1 %v5246_v29  ;;  %v2190_v29 = vld [vmem:[#allocation10 + $0x4a0] sm:$0xff] }
 0xd5c   : > { %3794 = vmatpush1.bf16.msra.mxu0 %v5248_v25  ;;  %3754 = vmatprep.subr.bf16.mxu1 %v5231_v26  ;;  %v2198_v25 = vld [vmem:[#allocation10 + $0x4e0] sm:$0xff]  ;;  %v2191_v26 = vld [vmem:[#allocation10 + $0x4a8] sm:$0xff] }
 0xd5d   : > { %3795 = vmatprep.subr.bf16.mxu0 %v5233_v10  ;;  %v2199_v10 = vld [vmem:[#allocation10 + $0x4e8] sm:$0xff]  ;;  %v5359_v1 = vcombine.high %v2190_v29, %v2198_v25  ;;  %v5358_v12 = vcombine.low %v2190_v29, %v2198_v25 }
 0xd5e   : > { %v5361_v0 = vcombine.high %v2191_v26, %v2199_v10  ;;  %v5360_v56 = vcombine.low %v2191_v26, %v2199_v10  ;;  %v2064_v10 = vld [vmem:[#allocation10 + $0xb0] sm:$0xff] }
 0xd5f   : > { %3755 = vmatpush1.bf16.msra.mxu1 %v5230_v28  ;;  %v2174_v28 = vld [vmem:[#allocation10 + $0x420] sm:$0xff] }
 0xd60   : > { %3796 = vmatpush1.bf16.msra.mxu0 %v5232_v30  ;;  %3756 = vmatprep.subr.bf16.mxu1 %v5215_v31  ;;  %v2182_v30 = vld [vmem:[#allocation10 + $0x460] sm:$0xff]  ;;  %v2175_v31 = vld [vmem:[#allocation10 + $0x428] sm:$0xff] }
 0xd61   : > { %3797 = vmatprep.subr.bf16.mxu0 %v5217_v33  ;;  %v2183_v33 = vld [vmem:[#allocation10 + $0x468] sm:$0xff]  ;;  %v5343_v34 = vcombine.high %v2174_v28, %v2182_v30  ;;  %v5342_v38 = vcombine.low %v2174_v28, %v2182_v30 }
 0xd62   : > { %v5345_v13 = vcombine.high %v2175_v31, %v2183_v33  ;;  %v5344_v39 = vcombine.low %v2175_v31, %v2183_v33  ;;  %v2048_v33 = vld [vmem:[#allocation10 + $0x30] sm:$0xff] }
 0xd63   : > { %3757 = vmatpush1.bf16.msra.mxu1 %v5214_v14  ;;  %v2160_v14 = vld [vmem:[#allocation10 + $0x3b0] sm:$0xff] }
 0xd64   : > { %3798 = vmatpush1.bf16.msra.mxu0 %v5216_v35  ;;  %3758 = vmatprep.subr.bf16.mxu1 %v5455_v36  ;;  %v2168_v35 = vld [vmem:[#allocation10 + $0x3f0] sm:$0xff]  ;;  %v2161_v36 = vld [vmem:[#allocation10 + $0x3b8] sm:$0xff] }
 0xd65   : > { %3799 = vmatprep.subr.bf16.mxu0 %v5457_v37  ;;  %v2169_v37 = vld [vmem:[#allocation10 + $0x3f8] sm:$0xff]  ;;  %v5331_v40 = vcombine.high %v2160_v14, %v2168_v35 }
 0xd66   : > { %v5333_v41 = vcombine.high %v2161_v36, %v2169_v37  ;;  %v5332_v47 = vcombine.low %v2161_v36, %v2169_v37  ;;  %v2288_v37 = vld [vmem:[#allocation10 + $0x7b0] sm:$0xff] }
 0xd67   : > { %3759 = vmatpush2.bf16.msra.mxu1 %v5454_v42  ;;  %v2144_v42 = vld [vmem:[#allocation10 + $0x330] sm:$0xff] }
 0xd68   : > { %3800 = vmatpush2.bf16.msra.mxu0 %v5456_v43  ;;  %3760 = vmatprep.subr.bf16.mxu1 %v5439_v44  ;;  %v2152_v43 = vld [vmem:[#allocation10 + $0x370] sm:$0xff]  ;;  %v5330_v44 = vcombine.low %v2160_v14, %v2168_v35 }
 0xd69   : > { %3801 = vmatprep.subr.bf16.mxu0 %v5441_v45  ;;  %v2145_v45 = vld [vmem:[#allocation10 + $0x338] sm:$0xff]  ;;  %v5315_v48 = vcombine.high %v2144_v42, %v2152_v43  ;;  %v5314_v55 = vcombine.low %v2144_v42, %v2152_v43 }
 0xd6a   : > { %v5316_v57 = vcombine.low %v2145_v45, %v2153_v46 }
 0xd6b   : > { %3761 = vmatpush2.bf16.msra.mxu1 %v5438_v50  ;;  %v2136_v50 = vld [vmem:[#allocation10 + $0x2f0] sm:$0xff] }
 0xd6c   : > { %3802 = vmatpush2.bf16.msra.mxu0 %v5440_v51  ;;  %3762 = vmatprep.subr.bf16.mxu1 %v5423_v52  ;;  %v5317_v51 = vcombine.high %v2145_v45, %v2153_v46  ;;  %v2129_v52 = vld [vmem:[#allocation10 + $0x2b8] sm:$0xff]  ;;  %v5299_v58 = vcombine.high %v2128_v49, %v2136_v50  ;;  %v5298_v3 = vcombine.low %v2128_v49, %v2136_v50  ;;  %v2272_v45 = vld [vmem:[#allocation10 + $0x730] sm:$0xff] }
 0xd6d   : > { %3803 = vmatprep.subr.bf16.mxu0 %v5425_v53  ;;  %v2137_v53 = vld [vmem:[#allocation10 + $0x2f8] sm:$0xff]  ;;  %v2280_v46 = vld [vmem:[#allocation10 + $0x770] sm:$0xff] }
 0xd6e   : > { %v5301_v59 = vcombine.high %v2129_v52, %v2137_v53  ;;  %v5300_v4 = vcombine.low %v2129_v52, %v2137_v53  ;;  %v2256_v53 = vld [vmem:[#allocation10 + $0x6b0] sm:$0xff] }
 0xd6f   : > { %3763 = vmatpush2.bf16.msra.mxu1 %v5422_v60  ;;  %v2112_v60 = vld [vmem:[#allocation10 + $0x230] sm:$0xff] }
 0xd70   : > { %3804 = vmatpush2.bf16.msra.mxu0 %v5424_v61  ;;  %3764 = vmatprep.subr.bf16.mxu1 %v5407_v63  ;;  %v2120_v61 = vld [vmem:[#allocation10 + $0x270] sm:$0xff]  ;;  %v2113_v63 = vld [vmem:[#allocation10 + $0x238] sm:$0xff] }
 0xd71   : > { %3805 = vmatprep.subr.bf16.mxu0 %v5409_v2  ;;  %v2121_v2 = vld [vmem:[#allocation10 + $0x278] sm:$0xff]  ;;  %v5283_v5 = vcombine.high %v2112_v60, %v2120_v61 }
 0xd72   : > { %v5285_v6 = vcombine.high %v2113_v63, %v2121_v2  ;;  %v5284_v15 = vcombine.low %v2113_v63, %v2121_v2  ;;  %v2240_v2 = vld [vmem:[#allocation10 + $0x630] sm:$0xff] }
 0xd73   : > { %3765 = vmatpush2.bf16.msra.mxu1 %v5406_v7  ;;  %v2096_v7 = vld [vmem:[#allocation10 + $0x1b0] sm:$0xff] }
 0xd74   : > { %3806 = vmatpush2.bf16.msra.mxu0 %v5408_v8  ;;  %3766 = vmatprep.subr.bf16.mxu1 %v5391_v9  ;;  %v2104_v8 = vld [vmem:[#allocation10 + $0x1f0] sm:$0xff]  ;;  %v2097_v9 = vld [vmem:[#allocation10 + $0x1b8] sm:$0xff] }
 0xd75   : > { %3807 = vmatprep.subr.bf16.mxu0 %v5393_v11  ;;  %v2105_v11 = vld [vmem:[#allocation10 + $0x1f8] sm:$0xff]  ;;  %v5267_v16 = vcombine.high %v2096_v7, %v2104_v8 }
 0xd76   : > { %v5269_v18 = vcombine.high %v2097_v9, %v2105_v11  ;;  %v5268_v29 = vcombine.low %v2097_v9, %v2105_v11  ;;  %v2224_v11 = vld [vmem:[#allocation10 + $0x5b0] sm:$0xff] }
 0xd77   : > { %3767 = vmatpush2.bf16.msra.mxu1 %v5390_v20  ;;  %v2088_v20 = vld [vmem:[#allocation10 + $0x170] sm:$0xff] }
 0xd78   : > { %3808 = vmatpush2.bf16.msra.mxu0 %v5392_v22  ;;  %3768 = vmatprep.subr.bf16.mxu1 %v5375_v54  ;;  %v2081_v22 = vld [vmem:[#allocation10 + $0x138] sm:$0xff]  ;;  %v5251_v25 = vcombine.high %v2080_v19, %v2088_v20 }
 0xd79   : > { %3809 = vmatprep.subr.bf16.mxu0 %v5377_v23  ;;  %v2089_v54 = vld [vmem:[#allocation10 + $0x178] sm:$0xff]  ;;  %v5266_v23 = vcombine.low %v2096_v7, %v2104_v8 }
 0xd7a   : > { %v5253_v26 = vcombine.high %v2081_v22, %v2089_v54  ;;  %v5252_v28 = vcombine.low %v2081_v22, %v2089_v54  ;;  %v2208_v54 = vld [vmem:[#allocation10 + $0x530] sm:$0xff] }
 0xd7b   : > { %3769 = vmatpush2.bf16.msra.mxu1 %v5374_v32  ;;  %v2072_v32 = vld [vmem:[#allocation10 + $0xf0] sm:$0xff] }
 0xd7c   : > { %3810 = vmatpush2.bf16.msra.mxu0 %v5376_v27  ;;  %3770 = vmatprep.subr.bf16.mxu1 %v5359_v1  ;;  %v2065_v27 = vld [vmem:[#allocation10 + $0xb8] sm:$0xff]  ;;  %v5235_v30 = vcombine.high %v2064_v10, %v2072_v32 }
 0xd7d   : > { %3811 = vmatprep.subr.bf16.mxu0 %v5361_v0  ;;  %v2073_v1 = vld [vmem:[#allocation10 + $0xf8] sm:$0xff]  ;;  %v5250_v0 = vcombine.low %v2080_v19, %v2088_v20 }
 0xd7e   : > { %v5237_v31 = vcombine.high %v2065_v27, %v2073_v1  ;;  %v5236_v14 = vcombine.low %v2065_v27, %v2073_v1  ;;  %v2192_v1 = vld [vmem:[#allocation10 + $0x4b0] sm:$0xff] }
 0xd7f   : > { %3771 = vmatpush2.bf16.msra.mxu1 %v5358_v12  ;;  %v2056_v12 = vld [vmem:[#allocation10 + $0x70] sm:$0xff] }
 0xd80   : > { %3812 = vmatpush2.bf16.msra.mxu0 %v5360_v56  ;;  %3772 = vmatprep.subr.bf16.mxu1 %v5343_v34  ;;  %v2049_v56 = vld [vmem:[#allocation10 + $0x38] sm:$0xff]  ;;  %v5219_v35 = vcombine.high %v2048_v33, %v2056_v12 }
 0xd81   : > { %3813 = vmatprep.subr.bf16.mxu0 %v5345_v13  ;;  %v2057_v34 = vld [vmem:[#allocation10 + $0x78] sm:$0xff]  ;;  %v5234_v13 = vcombine.low %v2064_v10, %v2072_v32 }
 0xd82   : > { %v5221_v36 = vcombine.high %v2049_v56, %v2057_v34  ;;  %v5220_v42 = vcombine.low %v2049_v56, %v2057_v34  ;;  %v2176_v34 = vld [vmem:[#allocation10 + $0x430] sm:$0xff] }
 0xd83   : > { %3773 = vmatpush2.bf16.msra.mxu1 %v5342_v38  ;;  %v2296_v38 = vld [vmem:[#allocation10 + $0x7f0] sm:$0xff] }
 0xd84   : > { %3814 = vmatpush2.bf16.msra.mxu0 %v5344_v39  ;;  %3824 = vmatprep.subr.bf16.mxu1 %v5331_v40  ;;  %v2289_v39 = vld [vmem:[#allocation10 + $0x7b8] sm:$0xff]  ;;  %v5459_v43 = vcombine.high %v2288_v37, %v2296_v38  ;;  %v5458_v49 = vcombine.low %v2288_v37, %v2296_v38 }
 0xd85   : > { %3865 = vmatprep.subr.bf16.mxu0 %v5333_v41  ;;  %v2297_v40 = vld [vmem:[#allocation10 + $0x7f8] sm:$0xff]  ;;  %v5218_v41 = vcombine.low %v2048_v33, %v2056_v12 }
 0xd86   : > { %3775 = vmatmul.mubr.bf16.vlgmr.msra.gmra.mxu1 %v6854_v62  ;;  %v5460_v50 = vcombine.low %v2289_v39, %v2297_v40 }
 0xd87   : > { %3816 = vmatmul.mubr.bf16.vlgmr.msra.gmra.mxu0 %v6854_v62  ;;  %3825 = vmatpush1.bf16.msra.mxu1 %v5330_v44  ;;  %v5461_v44 = vcombine.high %v2289_v39, %v2297_v40 }
 0xd88   : > { %3856 = vmatprep.mubr.bf16.mxu1 %v6856_v17  ;;  %3866 = vmatpush1.bf16.msra.mxu0 %v5332_v47  ;;  %v2273_v47 = vld [vmem:[#allocation10 + $0x738] sm:$0xff] }
 0xd89   : > { %3897 = vmatprep.mubr.bf16.mxu0 %v6856_v17  ;;  %3826 = vmatprep.subr.bf16.mxu1 %v5315_v48  ;;  %v5282_v17 = vcombine.low %v2112_v60, %v2120_v61  ;;  %v2281_v48 = vld [vmem:[#allocation10 + $0x778] sm:$0xff] }
 0xd8a   : > { %3867 = vmatprep.subr.bf16.mxu0 %v5317_v51  ;;  %v5443_v51 = vcombine.high %v2272_v45, %v2280_v46  ;;  %v5445_v52 = vcombine.high %v2273_v47, %v2281_v48  ;;  %v5444_v60 = vcombine.low %v2273_v47, %v2281_v48  ;;  %v5979_v47 = vld [vmem:[#allocation11 + $0x164] ss:$8 sps:$4 sm:$0xff]  }
 0xd8b   : > { %3827 = vmatpush1.bf16.msra.mxu1 %v5314_v55  ;;  %v2264_v55 = vld [vmem:[#allocation10 + $0x6f0] sm:$0xff] }
 0xd8c   : > { %3868 = vmatpush1.bf16.msra.mxu0 %v5316_v57  ;;  %3828 = vmatprep.subr.bf16.mxu1 %v5299_v58  ;;  %v2257_v57 = vld [vmem:[#allocation10 + $0x6b8] sm:$0xff]  ;;  %v5427_v61 = vcombine.high %v2256_v53, %v2264_v55 }
 0xd8d   : > { %3869 = vmatprep.subr.bf16.mxu0 %v5301_v59  ;;  %v2265_v58 = vld [vmem:[#allocation10 + $0x6f8] sm:$0xff]  ;;  %v5442_v59 = vcombine.low %v2272_v45, %v2280_v46  ;;  %v5976_v46 = vld [vmem:[#allocation11 + $0x64] ss:$8 sps:$4 sm:$0xff]  }
 0xd8e   : > { %v5429_v63 = vcombine.high %v2257_v57, %v2265_v58  ;;  %v5428_v7 = vcombine.low %v2257_v57, %v2265_v58  ;;  %v5971_v45 = vld [vmem:[#allocation11 + $0x170] ss:$8 sps:$4 sm:$0xff]   ;;  %v5985_v57 = vld [vmem:[#allocation11 + $0x154] ss:$8 sps:$4 sm:$0xff]  }
 0xd8f   : > { %3829 = vmatpush1.bf16.msra.mxu1 %v5298_v3  ;;  %v2248_v3 = vld [vmem:[#allocation10 + $0x670] sm:$0xff] }
 0xd90   : > { %3870 = vmatpush1.bf16.msra.mxu0 %v5300_v4  ;;  %3830 = vmatprep.subr.bf16.mxu1 %v5283_v5  ;;  %v2241_v4 = vld [vmem:[#allocation10 + $0x638] sm:$0xff]  ;;  %v5411_v8 = vcombine.high %v2240_v2, %v2248_v3 }
 0xd91   : > { %3871 = vmatprep.subr.bf16.mxu0 %v5285_v6  ;;  %v2249_v5 = vld [vmem:[#allocation10 + $0x678] sm:$0xff]  ;;  %v5426_v6 = vcombine.low %v2256_v53, %v2264_v55  ;;  %v5977_v53 = vld [vmem:[#allocation11 + $0x160] ss:$8 sps:$4 sm:$0xff]  }
 0xd92   : > { %v5413_v9 = vcombine.high %v2241_v4, %v2249_v5  ;;  %v5412_v19 = vcombine.low %v2241_v4, %v2249_v5  ;;  %v5982_v55 = vld [vmem:[#allocation11 + $0x54] ss:$8 sps:$4 sm:$0xff]   ;;  %v5986_v4 = vld [vmem:[#allocation11 + $0x40] ss:$8 sps:$4 sm:$0xff]  }
 0xd93   : > { %3831 = vmatpush1.bf16.msra.mxu1 %v5282_v17  ;;  %v2232_v17 = vld [vmem:[#allocation10 + $0x5f0] sm:$0xff]  ;;  %v5989_v5 = vld [vmem:[#allocation11 + $0x140] ss:$8 sps:$4 sm:$0xff]  }
 0xd94   : > { %3872 = vmatpush1.bf16.msra.mxu0 %v5284_v15  ;;  %3832 = vmatprep.subr.bf16.mxu1 %v5267_v16  ;;  %v2225_v15 = vld [vmem:[#allocation10 + $0x5b8] sm:$0xff]  ;;  %v5395_v20 = vcombine.high %v2224_v11, %v2232_v17 }
 0xd95   : > { %3873 = vmatprep.subr.bf16.mxu0 %v5269_v18  ;;  %v2233_v16 = vld [vmem:[#allocation10 + $0x5f8] sm:$0xff]  ;;  %v5410_v18 = vcombine.low %v2240_v2, %v2248_v3  ;;  %v5988_v2 = vld [vmem:[#allocation11 + $0x44] ss:$8 sps:$4 sm:$0xff]  }
 0xd96   : > { %v5397_v22 = vcombine.high %v2225_v15, %v2233_v16  ;;  %v5396_v10 = vcombine.low %v2225_v15, %v2233_v16  ;;  %v5991_v3 = vld [vmem:[#allocation11 + $0x144] ss:$8 sps:$4 sm:$0xff]   ;;  %v5998_v15 = vld [vmem:[#allocation11 + $0x20] ss:$8 sps:$4 sm:$0xff]  }
 0xd97   : > { %3833 = vmatpush1.bf16.msra.mxu1 %v5266_v23  ;;  %v2216_v23 = vld [vmem:[#allocation10 + $0x570] sm:$0xff]  ;;  %v6001_v16 = vld [vmem:[#allocation11 + $0x120] ss:$8 sps:$4 sm:$0xff]  }
 0xd98   : > { %3874 = vmatpush1.bf16.msra.mxu0 %v5268_v29  ;;  %3834 = vmatprep.subr.bf16.mxu1 %v5251_v25  ;;  %v2209_v29 = vld [vmem:[#allocation10 + $0x538] sm:$0xff]  ;;  %v5379_v32 = vcombine.high %v2208_v54, %v2216_v23 }
 0xd99   : > { %3875 = vmatprep.subr.bf16.mxu0 %v5253_v26  ;;  %v2217_v25 = vld [vmem:[#allocation10 + $0x578] sm:$0xff]  ;;  %v5394_v26 = vcombine.low %v2224_v11, %v2232_v17  ;;  %v6000_v11 = vld [vmem:[#allocation11 + $0x24] ss:$8 sps:$4 sm:$0xff]  }
 0xd9a   : > { %v5381_v27 = vcombine.high %v2209_v29, %v2217_v25  ;;  %v5380_v33 = vcombine.low %v2209_v29, %v2217_v25  ;;  %v6003_v17 = vld [vmem:[#allocation11 + $0x124] ss:$8 sps:$4 sm:$0xff]   ;;  %v6010_v29 = vld [vmem:[#allocation11] ss:$8 sps:$4 sm:$0xff]  }
 0xd9b   : > { %3835 = vmatpush1.bf16.msra.mxu1 %v5250_v0  ;;  %v2200_v0 = vld [vmem:[#allocation10 + $0x4f0] sm:$0xff]  ;;  %v6013_v25 = vld [vmem:[#allocation11 + $0x100] ss:$8 sps:$4 sm:$0xff]  }
 0xd9c   : > { %3876 = vmatpush1.bf16.msra.mxu0 %v5252_v28  ;;  %3836 = vmatprep.subr.bf16.mxu1 %v5235_v30  ;;  %v2193_v28 = vld [vmem:[#allocation10 + $0x4b8] sm:$0xff]  ;;  %v5363_v12 = vcombine.high %v2192_v1, %v2200_v0 }
 0xd9d   : > { %3877 = vmatprep.subr.bf16.mxu0 %v5237_v31  ;;  %v2201_v30 = vld [vmem:[#allocation10 + $0x4f8] sm:$0xff]  ;;  %v5378_v31 = vcombine.low %v2208_v54, %v2216_v23  ;;  %v6012_v54 = vld [vmem:[#allocation11 + $0x4] ss:$8 sps:$4 sm:$0xff]  }
 0xd9e   : > { %v5365_v56 = vcombine.high %v2193_v28, %v2201_v30  ;;  %v5364_v37 = vcombine.low %v2193_v28, %v2201_v30  ;;  %v6015_v23 = vld [vmem:[#allocation11 + $0x104] ss:$8 sps:$4 sm:$0xff]   ;;  %v6022_v28 = vld [vmem:[#allocation11 + $0xe0] ss:$8 sps:$4 sm:$0xff]  }
 0xd9f   : > { %3837 = vmatpush1.bf16.msra.mxu1 %v5234_v13  ;;  %v2184_v13 = vld [vmem:[#allocation10 + $0x470] sm:$0xff]  ;;  %v6025_v30 = vld [vmem:[#allocation11 + $0x1e0] ss:$8 sps:$4 sm:$0xff]  }
 0xda0   : > { %3878 = vmatpush1.bf16.msra.mxu0 %v5236_v14  ;;  %3838 = vmatprep.subr.bf16.mxu1 %v5219_v35  ;;  %v2177_v14 = vld [vmem:[#allocation10 + $0x438] sm:$0xff]  ;;  %v5347_v38 = vcombine.high %v2176_v34, %v2184_v13  ;;  %v5346_v40 = vcombine.low %v2176_v34, %v2184_v13  ;;  %v6036_v34 = vld [vmem:[#allocation11 + $0xc4] ss:$8 sps:$4 sm:$0xff]  }
 0xda1   : > { %3879 = vmatprep.subr.bf16.mxu0 %v5221_v36  ;;  %v2185_v35 = vld [vmem:[#allocation10 + $0x478] sm:$0xff]  ;;  %v5362_v36 = vcombine.low %v2192_v1, %v2200_v0  ;;  %v6024_v1 = vld [vmem:[#allocation11 + $0xe4] ss:$8 sps:$4 sm:$0xff]  }
 0xda2   : > { %v5349_v39 = vcombine.high %v2177_v14, %v2185_v35  ;;  %v6027_v0 = vld [vmem:[#allocation11 + $0x1e4] ss:$8 sps:$4 sm:$0xff]  }
 0xda3   : > { %3839 = vmatpush1.bf16.msra.mxu1 %v5218_v41  ;;  %v5348_v41 = vcombine.low %v2177_v14, %v2185_v35  ;;  %v6039_v13 = vld [vmem:[#allocation11 + $0x1c4] ss:$8 sps:$4 sm:$0xff]   ;;  %v6034_v14 = vld [vmem:[#allocation11 + $0xc0] ss:$8 sps:$4 sm:$0xff]  }
 0xda4   : > { %3880 = vmatpush1.bf16.msra.mxu0 %v5220_v42  ;;  %3840 = vmatprep.subr.bf16.mxu1 %v5459_v43  ;;  %v5970_v42 = vld [vmem:[#allocation11 + $0x74] ss:$8 sps:$4 sm:$0xff]   ;;  %v6037_v35 = vld [vmem:[#allocation11 + $0x1c0] ss:$8 sps:$4 sm:$0xff]  }
 0xda5   : > { %3881 = vmatprep.subr.bf16.mxu0 %v5461_v44  ;;  %v5973_v43 = vld [vmem:[#allocation11 + $0x174] ss:$8 sps:$4 sm:$0xff]   ;;  %v5968_v44 = vld [vmem:[#allocation11 + $0x70] ss:$8 sps:$4 sm:$0xff]  }
 0xda7   : > { %3841 = vmatpush2.bf16.msra.mxu1 %v5458_v49 }
 0xda8   : > { %3882 = vmatpush2.bf16.msra.mxu0 %v5460_v50  ;;  %3842 = vmatprep.subr.bf16.mxu1 %v5443_v51  ;;  %v5974_v50 = vld [vmem:[#allocation11 + $0x60] ss:$8 sps:$4 sm:$0xff]  }
 0xda9   : > { %3883 = vmatprep.subr.bf16.mxu0 %v5445_v52 }
 0xdab   : > { %3843 = vmatpush2.bf16.msra.mxu1 %v5442_v59 }
 0xdac   : > { %3884 = vmatpush2.bf16.msra.mxu0 %v5444_v60  ;;  %3844 = vmatprep.subr.bf16.mxu1 %v5427_v61  ;;  %v5980_v60 = vld [vmem:[#allocation11 + $0x50] ss:$8 sps:$4 sm:$0xff]  }
 0xdad   : > { %3885 = vmatprep.subr.bf16.mxu0 %v5429_v63 }
 0xdaf   : > { %3845 = vmatpush2.bf16.msra.mxu1 %v5426_v6  ;;  %v5994_v6 = vld [vmem:[#allocation11 + $0x34] ss:$8 sps:$4 sm:$0xff]  }
 0xdb0   : > { %3886 = vmatpush2.bf16.msra.mxu0 %v5428_v7  ;;  %3846 = vmatprep.subr.bf16.mxu1 %v5411_v8  ;;  %v5997_v7 = vld [vmem:[#allocation11 + $0x134] ss:$8 sps:$4 sm:$0xff]   ;;  %v5992_v8 = vld [vmem:[#allocation11 + $0x30] ss:$8 sps:$4 sm:$0xff]  }
 0xdb1   : > { %3887 = vmatprep.subr.bf16.mxu0 %v5413_v9  ;;  %v5995_v9 = vld [vmem:[#allocation11 + $0x130] ss:$8 sps:$4 sm:$0xff]  }
 0xdb3   : > { %3847 = vmatpush2.bf16.msra.mxu1 %v5410_v18  ;;  %v6006_v18 = vld [vmem:[#allocation11 + $0x14] ss:$8 sps:$4 sm:$0xff]  }
 0xdb4   : > { %3888 = vmatpush2.bf16.msra.mxu0 %v5412_v19  ;;  %3848 = vmatprep.subr.bf16.mxu1 %v5395_v20  ;;  %v6009_v19 = vld [vmem:[#allocation11 + $0x114] ss:$8 sps:$4 sm:$0xff]   ;;  %v6004_v20 = vld [vmem:[#allocation11 + $0x10] ss:$8 sps:$4 sm:$0xff]  }
 0xdb5   : > { %3889 = vmatprep.subr.bf16.mxu0 %v5397_v22  ;;  %v6007_v22 = vld [vmem:[#allocation11 + $0x110] ss:$8 sps:$4 sm:$0xff]  }
 0xdb7   : > { %3849 = vmatpush2.bf16.msra.mxu1 %v5394_v26  ;;  %v6018_v26 = vld [vmem:[#allocation11 + $0xf4] ss:$8 sps:$4 sm:$0xff]  }
 0xdb8   : > { %3890 = vmatpush2.bf16.msra.mxu0 %v5396_v10  ;;  %3850 = vmatprep.subr.bf16.mxu1 %v5379_v32  ;;  %v6021_v10 = vld [vmem:[#allocation11 + $0x1f4] ss:$8 sps:$4 sm:$0xff]   ;;  %v6016_v32 = vld [vmem:[#allocation11 + $0xf0] ss:$8 sps:$4 sm:$0xff]  }
 0xdb9   : > { %3891 = vmatprep.subr.bf16.mxu0 %v5381_v27  ;;  %v6019_v27 = vld [vmem:[#allocation11 + $0x1f0] ss:$8 sps:$4 sm:$0xff]  }
 0xdbb   : > { %3851 = vmatpush2.bf16.msra.mxu1 %v5378_v31  ;;  %v6030_v31 = vld [vmem:[#allocation11 + $0xd4] ss:$8 sps:$4 sm:$0xff]  }
 0xdbc   : > { %3892 = vmatpush2.bf16.msra.mxu0 %v5380_v33  ;;  %3852 = vmatprep.subr.bf16.mxu1 %v5363_v12  ;;  %v6033_v33 = vld [vmem:[#allocation11 + $0x1d4] ss:$8 sps:$4 sm:$0xff]   ;;  %v6028_v12 = vld [vmem:[#allocation11 + $0xd0] ss:$8 sps:$4 sm:$0xff]  }
 0xdbd   : > { %3893 = vmatprep.subr.bf16.mxu0 %v5365_v56  ;;  %v6031_v56 = vld [vmem:[#allocation11 + $0x1d0] ss:$8 sps:$4 sm:$0xff]  }
 0xdbf   : > { %3853 = vmatpush2.bf16.msra.mxu1 %v5362_v36  ;;  %v6042_v36 = vld [vmem:[#allocation11 + $0xb4] ss:$8 sps:$4 sm:$0xff]  }
 0xdc0   : > { %3894 = vmatpush2.bf16.msra.mxu0 %v5364_v37  ;;  %3854 = vmatprep.subr.bf16.mxu1 %v5347_v38  ;;  %v6045_v37 = vld [vmem:[#allocation11 + $0x1b4] ss:$8 sps:$4 sm:$0xff]   ;;  %v6040_v38 = vld [vmem:[#allocation11 + $0xb0] ss:$8 sps:$4 sm:$0xff]  }
 0xdc1   : > { %3895 = vmatprep.subr.bf16.mxu0 %v5349_v39  ;;  %v6043_v39 = vld [vmem:[#allocation11 + $0x1b0] ss:$8 sps:$4 sm:$0xff]  }
 0xdc3   : > { %3855 = vmatpush2.bf16.msra.mxu1 %v5346_v40  ;;  %v6048_v40 = vld [vmem:[#allocation11 + $0xa4] ss:$8 sps:$4 sm:$0xff]  }
 0xdc4   : > { %3896 = vmatpush2.bf16.msra.mxu0 %v5348_v41  ;;  %4746 = vmatprep.subr.bf16.mxu1 %v5970_v42  ;;  %v6051_v41 = vld [vmem:[#allocation11 + $0x1a4] ss:$8 sps:$4 sm:$0xff]   ;;  %v6046_v42 = vld [vmem:[#allocation11 + $0xa0] ss:$8 sps:$4 sm:$0xff]  }
 0xdc5   : > { %4787 = vmatprep.subr.bf16.mxu0 %v5973_v43  ;;  %v6049_v43 = vld [vmem:[#allocation11 + $0x1a0] ss:$8 sps:$4 sm:$0xff]  }
 0xdc6   : > { %3857 = vmatmul.mubr.bf16.vlgmr.msra.gmra.mxu1 %v6854_v62  ;;  %v6873_v48 = vpop.f32.mrf.mxu1  ;;  %v6875_v49 = vpop.f32.mrf.mxu0 }
 0xdc7   : > { %3898 = vmatmul.mubr.bf16.vlgmr.msra.gmra.mxu0 %v6854_v62  ;;  %4747 = vmatpush1.bf16.msra.mxu1 %v5968_v44  ;;  %v5983_v62 = vld [vmem:[#allocation11 + $0x150] ss:$8 sps:$4 sm:$0xff]   ;;  %v6054_v44 = vld [vmem:[#allocation11 + $0x94] ss:$8 sps:$4 sm:$0xff]  }
 0xdc8   : > { %v6878_v51 = vpop.f32.mrf.mxu1  ;;  %v6880_v52 = vpop.f32.mrf.mxu0  ;;  %4788 = vmatpush1.bf16.msra.mxu0 %v5971_v45  ;;  %4748 = vmatprep.subr.bf16.mxu1 %v5976_v46  ;;  %v6057_v45 = vld [vmem:[#allocation11 + $0x194] ss:$8 sps:$4 sm:$0xff]   ;;  %v6052_v46 = vld [vmem:[#allocation11 + $0x90] ss:$8 sps:$4 sm:$0xff]  }
 0xdc9   : > { %4789 = vmatprep.subr.bf16.mxu0 %v5979_v47  ;;  %v6055_v47 = vld [vmem:[#allocation11 + $0x190] ss:$8 sps:$4 sm:$0xff]  }
 0xdca   : > { %v3616_v58 = vpop.f32.mrf.mxu1  ;;  %v3657_v59 = vpop.f32.mrf.mxu0 }
 0xdcb   : > { %4749 = vmatpush1.bf16.msra.mxu1 %v5974_v50  ;;  %v6060_v50 = vld [vmem:[#allocation11 + $0x84] ss:$8 sps:$4 sm:$0xff]   ;;  %v6066_v58 = vld [vmem:[#allocation11 + $0x274] ss:$8 sps:$4 sm:$0xff]  }
 0xdcc   : > { %v3617_v61 = vpop.f32.mrf.mxu1  ;;  %v3658_v63 = vpop.f32.mrf.mxu0  ;;  %4790 = vmatpush1.bf16.msra.mxu0 %v5977_v53  ;;  %4750 = vmatprep.subr.bf16.mxu1 %v5982_v55  ;;  %v6063_v53 = vld [vmem:[#allocation11 + $0x184] ss:$8 sps:$4 sm:$0xff]   ;;  %v6058_v55 = vld [vmem:[#allocation11 + $0x80] ss:$8 sps:$4 sm:$0xff]   ;;  %v6069_v59 = vld [vmem:[#allocation11 + $0x374] ss:$8 sps:$4 sm:$0xff]  }
 0xdcd   : > { %4791 = vmatprep.subr.bf16.mxu0 %v5985_v57  ;;  %v6061_v57 = vld [vmem:[#allocation11 + $0x180] ss:$8 sps:$4 sm:$0xff]  }
 0xdcf   : > { %4751 = vmatpush1.bf16.msra.mxu1 %v5980_v60 }
 0xdd0   : > { %4792 = vmatpush1.bf16.msra.mxu0 %v5983_v62  ;;  %4752 = vmatprep.subr.bf16.mxu1 %v5988_v2 }
 0xdd1   : > { %4793 = vmatprep.subr.bf16.mxu0 %v5991_v3 }
 0xdd3   : > { %4753 = vmatpush1.bf16.msra.mxu1 %v5986_v4 }
 0xdd4   : > { %4794 = vmatpush1.bf16.msra.mxu0 %v5989_v5  ;;  %4754 = vmatprep.subr.bf16.mxu1 %v5994_v6  ;;  %v5462_v6 = vmul.f32 -1.442695, %v6873_v48 }
 0xdd5   : > { %4795 = vmatprep.subr.bf16.mxu0 %v5997_v7  ;;  %v5464_v7 = vmul.f32 -1.442695, %v6875_v49 }
 0xdd6   : > { %6180 = vpow2.f32 %v5462_v6 }
 0xdd7   : > { %4755 = vmatpush1.bf16.msra.mxu1 %v5992_v8  ;;  %v5463_v8 = vmul.f32 -1.442695, %v6878_v51  ;;  %6182 = vpow2.f32 %v5464_v7  ;;  %v6094_v7 = vld [vmem:[#allocation11 + $0x220] ss:$8 sps:$4 sm:$0xff]  }
 0xdd8   : > { %4796 = vmatpush1.bf16.msra.mxu0 %v5995_v9  ;;  %4756 = vmatprep.subr.bf16.mxu1 %v6000_v11  ;;  %v5465_v9 = vmul.f32 -1.442695, %v6880_v52 }
 0xdd9   : > { %4797 = vmatprep.subr.bf16.mxu0 %v6003_v17  ;;  %6184 = vpow2.f32 %v5463_v8 }
 0xdda   : > { %6186 = vpow2.f32 %v5465_v9  ;;  %v6097_v9 = vld [vmem:[#allocation11 + $0x320] ss:$8 sps:$4 sm:$0xff]  }
 0xddb   : > { %4757 = vmatpush1.bf16.msra.mxu1 %v5998_v15 }
 0xddc   : > { %4798 = vmatpush1.bf16.msra.mxu0 %v6001_v16  ;;  %4758 = vmatprep.subr.bf16.mxu1 %v6006_v18 }
 0xddd   : > { %4799 = vmatprep.subr.bf16.mxu0 %v6009_v19 }
 0xddf   : > { %4759 = vmatpush1.bf16.msra.mxu1 %v6004_v20 }
 0xde0   : > { %4800 = vmatpush1.bf16.msra.mxu0 %v6007_v22  ;;  %4760 = vmatprep.subr.bf16.mxu1 %v6012_v54 }
 0xde1   : > { %4801 = vmatprep.subr.bf16.mxu0 %v6015_v23 }
 0xde3   : > { %4761 = vmatpush1.bf16.msra.mxu1 %v6010_v29  ;;  %v6181_v11 = vpop.eup %6180 }
 0xde4   : > { %4802 = vmatpush1.bf16.msra.mxu0 %v6013_v25  ;;  %4762 = vmatprep.subr.bf16.mxu1 %v6018_v26  ;;  %v6183_v17 = vpop.eup %6182  ;;  %v3930_v18 = vadd.f32 1.0, %v6181_v11  ;;  %v6102_v11 = vld [vmem:[#allocation11 + $0x214] ss:$8 sps:$4 sm:$0xff]  }
 0xde5   : > { %4803 = vmatprep.subr.bf16.mxu0 %v6021_v10  ;;  %v3932_v19 = vadd.f32 1.0, %v6183_v17  ;;  %v6105_v17 = vld [vmem:[#allocation11 + $0x314] ss:$8 sps:$4 sm:$0xff]  }
 0xde6   : > { %v6185_v15 = vpop.eup %6184  ;;  %6188 = vrcp.f32 %v3930_v18  ;;  %v6108_v18 = vld [vmem:[#allocation11 + $0x204] ss:$8 sps:$4 sm:$0xff]  }
 0xde7   : > { %4763 = vmatpush2.bf16.msra.mxu1 %v6016_v32  ;;  %v6187_v16 = vpop.eup %6186  ;;  %v3931_v20 = vadd.f32 1.0, %v6185_v15  ;;  %6190 = vrcp.f32 %v3932_v19  ;;  %v6100_v15 = vld [vmem:[#allocation11 + $0x210] ss:$8 sps:$4 sm:$0xff]   ;;  %v6111_v19 = vld [vmem:[#allocation11 + $0x304] ss:$8 sps:$4 sm:$0xff]  }
 0xde8   : > { %4804 = vmatpush2.bf16.msra.mxu0 %v6019_v27  ;;  %4764 = vmatprep.subr.bf16.mxu1 %v6024_v1  ;;  %v3933_v22 = vadd.f32 1.0, %v6187_v16  ;;  %v6103_v16 = vld [vmem:[#allocation11 + $0x310] ss:$8 sps:$4 sm:$0xff]  }
 0xde9   : > { %4805 = vmatprep.subr.bf16.mxu0 %v6027_v0  ;;  %6192 = vrcp.f32 %v3931_v20  ;;  %v6106_v20 = vld [vmem:[#allocation11 + $0x200] ss:$8 sps:$4 sm:$0xff]  }
 0xdea   : > { %6194 = vrcp.f32 %v3933_v22  ;;  %v6109_v22 = vld [vmem:[#allocation11 + $0x300] ss:$8 sps:$4 sm:$0xff]  }
 0xdeb   : > { %4765 = vmatpush2.bf16.msra.mxu1 %v6022_v28 }
 0xdec   : > { %4806 = vmatpush2.bf16.msra.mxu0 %v6025_v30  ;;  %4766 = vmatprep.subr.bf16.mxu1 %v6030_v31 }
 0xded   : > { %4807 = vmatprep.subr.bf16.mxu0 %v6033_v33 }
 0xdef   : > { %4767 = vmatpush2.bf16.msra.mxu1 %v6028_v12 }
 0xdf0   : > { %4808 = vmatpush2.bf16.msra.mxu0 %v6031_v56  ;;  %4768 = vmatprep.subr.bf16.mxu1 %v6036_v34 }
 0xdf1   : > { %4809 = vmatprep.subr.bf16.mxu0 %v6039_v13 }
 0xdf3   : > { %4769 = vmatpush2.bf16.msra.mxu1 %v6034_v14  ;;  %v6189_v54 = vpop.eup %6188 }
 0xdf4   : > { %4810 = vmatpush2.bf16.msra.mxu0 %v6037_v35  ;;  %4770 = vmatprep.subr.bf16.mxu1 %v6042_v36  ;;  %v6191_v23 = vpop.eup %6190  ;;  %v3954_v26 = vmul.f32 %v6189_v54, %v6873_v48  ;;  %v6064_v35 = vld [vmem:[#allocation11 + $0x270] ss:$8 sps:$4 sm:$0xff]   ;;  %v6114_v54 = vld [vmem:[#allocation11 + $0x2f4] ss:$8 sps:$4 sm:$0xff]  }
 0xdf5   : > { %4811 = vmatprep.subr.bf16.mxu0 %v6045_v37  ;;  %v3956_v32 = vmul.f32 %v6191_v23, %v6875_v49  ;;  %v6072_v49 = vld [vmem:[#allocation11 + $0x264] ss:$8 sps:$4 sm:$0xff]   ;;  %v6117_v23 = vld [vmem:[#allocation11 + $0x3f4] ss:$8 sps:$4 sm:$0xff]  }
 0xdf6   : > { %v6193_v29 = vpop.eup %6192 }
 0xdf7   : > { %4771 = vmatpush2.bf16.msra.mxu1 %v6040_v38  ;;  %v6195_v25 = vpop.eup %6194  ;;  %v3955_v27 = vmul.f32 %v6193_v29, %v6878_v51  ;;  %v6067_v38 = vld [vmem:[#allocation11 + $0x370] ss:$8 sps:$4 sm:$0xff]  }
 0xdf8   : > { %4812 = vmatpush2.bf16.msra.mxu0 %v6043_v39  ;;  %4772 = vmatprep.subr.bf16.mxu1 %v6048_v40  ;;  %v3957_v0 = vmul.f32 %v6195_v25, %v6880_v52  ;;  %v6075_v40 = vld [vmem:[#allocation11 + $0x364] ss:$8 sps:$4 sm:$0xff]   ;;  %v6070_v52 = vld [vmem:[#allocation11 + $0x260] ss:$8 sps:$4 sm:$0xff]   ;;  %v6112_v29 = vld [vmem:[#allocation11 + $0x2f0] ss:$8 sps:$4 sm:$0xff]  }
 0xdf9   : > { %4813 = vmatprep.subr.bf16.mxu0 %v6051_v41  ;;  %v6073_v41 = vld [vmem:[#allocation11 + $0x360] ss:$8 sps:$4 sm:$0xff]   ;;  %v6115_v25 = vld [vmem:[#allocation11 + $0x3f0] ss:$8 sps:$4 sm:$0xff]  }
 0xdfb   : > { %4773 = vmatpush2.bf16.msra.mxu1 %v6046_v42  ;;  %v6078_v42 = vld [vmem:[#allocation11 + $0x254] ss:$8 sps:$4 sm:$0xff]  }
 0xdfc   : > { %4814 = vmatpush2.bf16.msra.mxu0 %v6049_v43  ;;  %4774 = vmatprep.subr.bf16.mxu1 %v6054_v44  ;;  %v6081_v43 = vld [vmem:[#allocation11 + $0x354] ss:$8 sps:$4 sm:$0xff]   ;;  %v6076_v44 = vld [vmem:[#allocation11 + $0x250] ss:$8 sps:$4 sm:$0xff]  }
 0xdfd   : > { %4815 = vmatprep.subr.bf16.mxu0 %v6057_v45  ;;  %v6079_v45 = vld [vmem:[#allocation11 + $0x350] ss:$8 sps:$4 sm:$0xff]  }
 0xdff   : > { %4775 = vmatpush2.bf16.msra.mxu1 %v6052_v46  ;;  %v6084_v46 = vld [vmem:[#allocation11 + $0x244] ss:$8 sps:$4 sm:$0xff]  }
 0xe00   : > { %4816 = vmatpush2.bf16.msra.mxu0 %v6055_v47  ;;  %4776 = vmatprep.subr.bf16.mxu1 %v6060_v50  ;;  %v6087_v47 = vld [vmem:[#allocation11 + $0x344] ss:$8 sps:$4 sm:$0xff]   ;;  %v6082_v50 = vld [vmem:[#allocation11 + $0x240] ss:$8 sps:$4 sm:$0xff]  }
 0xe01   : > { %4817 = vmatprep.subr.bf16.mxu0 %v6063_v53  ;;  %v6085_v53 = vld [vmem:[#allocation11 + $0x340] ss:$8 sps:$4 sm:$0xff]  }
 0xe03   : > { %4777 = vmatpush2.bf16.msra.mxu1 %v6058_v55  ;;  %v6090_v55 = vld [vmem:[#allocation11 + $0x234] ss:$8 sps:$4 sm:$0xff]  }
 0xe04   : > { %4818 = vmatpush2.bf16.msra.mxu0 %v6061_v57  ;;  %4828 = vmatprep.subr.bf16.mxu1 %v6066_v58  ;;  %v6093_v57 = vld [vmem:[#allocation11 + $0x334] ss:$8 sps:$4 sm:$0xff]   ;;  %v6088_v58 = vld [vmem:[#allocation11 + $0x230] ss:$8 sps:$4 sm:$0xff]  }
 0xe05   : > { %4869 = vmatprep.subr.bf16.mxu0 %v6069_v59  ;;  %v6091_v59 = vld [vmem:[#allocation11 + $0x330] ss:$8 sps:$4 sm:$0xff]  }
 0xe06   : > { %v6882_v60 = vpop.f32.mrf.mxu1  ;;  %v6884_v61 = vpop.f32.mrf.mxu0 }
 0xe08   : > { %v6886_v63 = vpop.f32.mrf.mxu1  ;;  %v6888_v62 = vpop.f32.mrf.mxu0 }
 0xe09   : > { %v5467_v6 = vmul.f32 -1.442695, %v6886_v63  ;;  %v5469_v8 = vmul.f32 -1.442695, %v6888_v62 }
 0xe0a   : > { %v3698_v2 = vpop.f32.mrf.mxu1  ;;  %v3739_v3 = vpop.f32.mrf.mxu0 }
 0xe0b   : > { %v6096_v2 = vld [vmem:[#allocation11 + $0x224] ss:$8 sps:$4 sm:$0xff]   ;;  %v5466_v3 = vmul.f32 -1.442695, %v6882_v60 }
 0xe0c   : > { %v3699_v4 = vpop.f32.mrf.mxu1  ;;  %v3740_v5 = vpop.f32.mrf.mxu0 }
 0xe0d   : > { %v6099_v4 = vld [vmem:[#allocation11 + $0x324] ss:$8 sps:$4 sm:$0xff]   ;;  %v5468_v5 = vmul.f32 -1.442695, %v6884_v61  ;;  %6196 = vpow2.f32 %v5466_v3 }
 0xe0f   : > { %6198 = vpow2.f32 %v5468_v5 }
 0xe10   : > { %6200 = vpow2.f32 %v5467_v6 }
 0xe11   : > { %6202 = vpow2.f32 %v5469_v8 }
 0xe46   : > { %v3776_v10 = vpop.f32.mrf.mxu1 }
 0xe47   : > { %v3817_v1 = vpop.f32.mrf.mxu0  ;;  %v3962_v28 = vmul.f32 %v3954_v26, %v3776_v10  ;;  %v6120_v26 = vld [vmem:[#allocation11 + $0x2e4] ss:$8 sps:$4 sm:$0xff]  }
 0xe48   : > { %v3778_v30 = vpop.f32.mrf.mxu1  ;;  %v3964_v31 = vmul.f32 %v3956_v32, %v3817_v1  ;;  %v6123_v10 = vld [vmem:[#allocation11 + $0x3e4] ss:$8 sps:$4 sm:$0xff]   ;;  %v6197_v32 = vpop.eup %6196  ;;  %v6118_v1 = vld [vmem:[#allocation11 + $0x2e0] ss:$8 sps:$4 sm:$0xff]  }
 0xe49   : > { %v3963_v33 = vmul.f32 %v3955_v27, %v3778_v30  ;;  %v3819_v12 = vpop.f32.mrf.mxu0  ;;  %v3970_v36 = vpack.c.bf16 %v3962_v28, %v3962_v28  ;;  %v6199_v27 = vpop.eup %6198  ;;  %v6121_v28 = vld [vmem:[#allocation11 + $0x3e0] ss:$8 sps:$4 sm:$0xff]   ;;  %v6126_v30 = vld [vmem:[#allocation11 + $0x2d4] ss:$8 sps:$4 sm:$0xff]  }
 0xe4a   : > { %v3965_v56 = vmul.f32 %v3957_v0, %v3819_v12  ;;  %v3780_v34 = vpop.f32.mrf.mxu1  ;;  %v3972_v39 = vpack.c.bf16 %v3964_v31, %v3964_v31  ;;  %v6201_v0 = vpop.eup %6200  ;;  %v6129_v12 = vld [vmem:[#allocation11 + $0x3d4] ss:$8 sps:$4 sm:$0xff]  }
 0xe4b   : > { %v3971_v13 = vpack.c.bf16 %v3963_v33, %v3963_v33  ;;  %v3821_v14 = vpop.f32.mrf.mxu0  ;;  %v6203_v31 = vpop.eup %6202  ;;  %v3934_v33 = vadd.f32 1.0, %v6197_v32  ;;  %v3935_v34 = vadd.f32 1.0, %v6201_v0 }
 0xe4c   : > { %v3973_v48 = vpack.c.bf16 %v3965_v56, %v3965_v56  ;;  %v3781_v37 = vpop.f32.mrf.mxu1  ;;  %v3936_v56 = vadd.f32 1.0, %v6199_v27  ;;  %v3937_v14 = vadd.f32 1.0, %v6203_v31 }
 0xe4d   : > { %v3822_v51 = vpop.f32.mrf.mxu0  ;;  %4778 = vmatprep.mubr.bf16.mxu1 %v3971_v13  ;;  %v6124_v13 = vld [vmem:[#allocation11 + $0x2d0] ss:$8 sps:$4 sm:$0xff]   ;;  %6204 = vrcp.f32 %v3934_v33  ;;  %v6130_v37 = vld [vmem:[#allocation11 + $0x2c0] ss:$8 sps:$4 sm:$0xff]  }
 0xe4e   : > { %4819 = vmatprep.mubr.bf16.mxu0 %v3973_v48  ;;  %4779 = vmatmul.mubr.bf16.vlgmr.msra.gmra.mxu1 %v3970_v36  ;;  %v6132_v36 = vld [vmem:[#allocation11 + $0x2c4] ss:$8 sps:$4 sm:$0xff]   ;;  %6206 = vrcp.f32 %v3936_v56  ;;  %v6136_v51 = vld [vmem:[#allocation11 + $0x2b0] ss:$8 sps:$4 sm:$0xff]  }
 0xe4f   : > { %4820 = vmatmul.mubr.bf16.vlgmr.msra.gmra.mxu0 %v3972_v39  ;;  %4829 = vmatpush1.bf16.msra.mxu1 %v6064_v35  ;;  %v6127_v35 = vld [vmem:[#allocation11 + $0x3d0] ss:$8 sps:$4 sm:$0xff]   ;;  %v6135_v48 = vld [vmem:[#allocation11 + $0x3c4] ss:$8 sps:$4 sm:$0xff]   ;;  %6208 = vrcp.f32 %v3935_v34  ;;  %v6141_v39 = vld [vmem:[#allocation11 + $0x3b4] ss:$8 sps:$4 sm:$0xff]  }
 0xe50   : > { %4870 = vmatpush1.bf16.msra.mxu0 %v6067_v38  ;;  %4830 = vmatprep.subr.bf16.mxu1 %v6072_v49  ;;  %6210 = vrcp.f32 %v3937_v14  ;;  %v6133_v38 = vld [vmem:[#allocation11 + $0x3c0] ss:$8 sps:$4 sm:$0xff]   ;;  %v6138_v49 = vld [vmem:[#allocation11 + $0x2b4] ss:$8 sps:$4 sm:$0xff]  }
 0xe51   : > { %4871 = vmatprep.subr.bf16.mxu0 %v6075_v40  ;;  %v6139_v40 = vld [vmem:[#allocation11 + $0x3b0] ss:$8 sps:$4 sm:$0xff]  }
 0xe53   : > { %4831 = vmatpush1.bf16.msra.mxu1 %v6070_v52  ;;  %v6144_v52 = vld [vmem:[#allocation11 + $0x2a4] ss:$8 sps:$4 sm:$0xff]  }
 0xe54   : > { %4872 = vmatpush1.bf16.msra.mxu0 %v6073_v41  ;;  %4832 = vmatprep.subr.bf16.mxu1 %v6078_v42  ;;  %v6147_v41 = vld [vmem:[#allocation11 + $0x3a4] ss:$8 sps:$4 sm:$0xff]   ;;  %v6142_v42 = vld [vmem:[#allocation11 + $0x2a0] ss:$8 sps:$4 sm:$0xff]  }
 0xe55   : > { %4873 = vmatprep.subr.bf16.mxu0 %v6081_v43  ;;  %v6145_v43 = vld [vmem:[#allocation11 + $0x3a0] ss:$8 sps:$4 sm:$0xff]  }
 0xe57   : > { %4833 = vmatpush1.bf16.msra.mxu1 %v6076_v44  ;;  %v6150_v44 = vld [vmem:[#allocation11 + $0x294] ss:$8 sps:$4 sm:$0xff]  }
 0xe58   : > { %4874 = vmatpush1.bf16.msra.mxu0 %v6079_v45  ;;  %4834 = vmatprep.subr.bf16.mxu1 %v6084_v46  ;;  %v6153_v45 = vld [vmem:[#allocation11 + $0x394] ss:$8 sps:$4 sm:$0xff]  }
 0xe59   : > { %4875 = vmatprep.subr.bf16.mxu0 %v6087_v47 }
 0xe5a   : > { %v6205_v46 = vpop.eup %6204 }
 0xe5b   : > { %4835 = vmatpush1.bf16.msra.mxu1 %v6082_v50  ;;  %v6207_v47 = vpop.eup %6206  ;;  %v6148_v50 = vld [vmem:[#allocation11 + $0x290] ss:$8 sps:$4 sm:$0xff]  }
 0xe5c   : > { %4876 = vmatpush1.bf16.msra.mxu0 %v6085_v53  ;;  %4836 = vmatprep.subr.bf16.mxu1 %v6090_v55  ;;  %v6209_v53 = vpop.eup %6208  ;;  %v6151_v55 = vld [vmem:[#allocation11 + $0x390] ss:$8 sps:$4 sm:$0xff]  }
 0xe5d   : > { %4877 = vmatprep.subr.bf16.mxu0 %v6093_v57  ;;  %v6156_v57 = vld [vmem:[#allocation11 + $0x284] ss:$8 sps:$4 sm:$0xff]   ;;  %v3959_v5 = vmul.f32 %v6209_v53, %v6886_v63 }
 0xe5f   : > { %4837 = vmatpush1.bf16.msra.mxu1 %v6088_v58  ;;  %v6211_v58 = vpop.eup %6210 }
 0xe60   : > { %4878 = vmatpush1.bf16.msra.mxu0 %v6091_v59  ;;  %4838 = vmatprep.subr.bf16.mxu1 %v6096_v2  ;;  %v6159_v59 = vld [vmem:[#allocation11 + $0x384] ss:$8 sps:$4 sm:$0xff]   ;;  %v3958_v2 = vmul.f32 %v6205_v46, %v6882_v60  ;;  %v3961_v8 = vmul.f32 %v6211_v58, %v6888_v62 }
 0xe61   : > { %4879 = vmatprep.subr.bf16.mxu0 %v6099_v4  ;;  %v3960_v4 = vmul.f32 %v6207_v47, %v6884_v61 }
 0xe63   : > { %4839 = vmatpush1.bf16.msra.mxu1 %v6094_v7  ;;  %v6154_v7 = vld [vmem:[#allocation11 + $0x280] ss:$8 sps:$4 sm:$0xff]  }
 0xe64   : > { %4880 = vmatpush1.bf16.msra.mxu0 %v6097_v9  ;;  %4840 = vmatprep.subr.bf16.mxu1 %v6102_v11 }
 0xe65   : > { %4881 = vmatprep.subr.bf16.mxu0 %v6105_v17  ;;  %v6157_v17 = vld [vmem:[#allocation11 + $0x380] ss:$8 sps:$4 sm:$0xff]  }
 0xe67   : > { %4841 = vmatpush1.bf16.msra.mxu1 %v6100_v15 }
 0xe68   : > { %4882 = vmatpush1.bf16.msra.mxu0 %v6103_v16  ;;  %4842 = vmatprep.subr.bf16.mxu1 %v6108_v18 }
 0xe69   : > { %4883 = vmatprep.subr.bf16.mxu0 %v6111_v19 }
 0xe6b   : > { %4843 = vmatpush1.bf16.msra.mxu1 %v6106_v20 }
 0xe6c   : > { %4884 = vmatpush1.bf16.msra.mxu0 %v6109_v22  ;;  %4844 = vmatprep.subr.bf16.mxu1 %v6114_v54 }
 0xe6d   : > { %4885 = vmatprep.subr.bf16.mxu0 %v6117_v23 }
 0xe6f   : > { %4845 = vmatpush2.bf16.msra.mxu1 %v6112_v29 }
 0xe70   : > { %4886 = vmatpush2.bf16.msra.mxu0 %v6115_v25  ;;  %4846 = vmatprep.subr.bf16.mxu1 %v6120_v26 }
 0xe71   : > { %4887 = vmatprep.subr.bf16.mxu0 %v6123_v10 }
 0xe73   : > { %4847 = vmatpush2.bf16.msra.mxu1 %v6118_v1 }
 0xe74   : > { %4888 = vmatpush2.bf16.msra.mxu0 %v6121_v28  ;;  %4848 = vmatprep.subr.bf16.mxu1 %v6126_v30 }
 0xe75   : > { %4889 = vmatprep.subr.bf16.mxu0 %v6129_v12 }
 0xe77   : > { %4849 = vmatpush2.bf16.msra.mxu1 %v6124_v13 }
 0xe78   : > { %4890 = vmatpush2.bf16.msra.mxu0 %v6127_v35  ;;  %4850 = vmatprep.subr.bf16.mxu1 %v6132_v36 }
 0xe79   : > { %4891 = vmatprep.subr.bf16.mxu0 %v6135_v48 }
 0xe7b   : > { %4851 = vmatpush2.bf16.msra.mxu1 %v6130_v37 }
 0xe7c   : > { %4892 = vmatpush2.bf16.msra.mxu0 %v6133_v38  ;;  %4852 = vmatprep.subr.bf16.mxu1 %v6138_v49 }
 0xe7d   : > { %4893 = vmatprep.subr.bf16.mxu0 %v6141_v39 }
 0xe7f   : > { %4853 = vmatpush2.bf16.msra.mxu1 %v6136_v51 }
 0xe80   : > { %4894 = vmatpush2.bf16.msra.mxu0 %v6139_v40  ;;  %4854 = vmatprep.subr.bf16.mxu1 %v6144_v52 }
 0xe81   : > { %4895 = vmatprep.subr.bf16.mxu0 %v6147_v41 }
 0xe83   : > { %4855 = vmatpush2.bf16.msra.mxu1 %v6142_v42 }
 0xe84   : > { %4896 = vmatpush2.bf16.msra.mxu0 %v6145_v43  ;;  %4856 = vmatprep.subr.bf16.mxu1 %v6150_v44 }
 0xe85   : > { %4897 = vmatprep.subr.bf16.mxu0 %v6153_v45 }
 0xe86   : > { %v3858_v3 = vpop.f32.mrf.mxu1 }
 0xe87   : > { %v3899_v6 = vpop.f32.mrf.mxu0  ;;  %4857 = vmatpush2.bf16.msra.mxu1 %v6148_v50  ;;  %v3966_v9 = vmul.f32 %v3958_v2, %v3858_v3 }
 0xe88   : > { %4898 = vmatpush2.bf16.msra.mxu0 %v6151_v55  ;;  %v3860_v11 = vpop.f32.mrf.mxu1  ;;  %4858 = vmatprep.subr.bf16.mxu1 %v6156_v57  ;;  %v3968_v15 = vmul.f32 %v3960_v4, %v3899_v6 }
 0xe89   : > { %v3967_v16 = vmul.f32 %v3959_v5, %v3860_v11  ;;  %v3901_v18 = vpop.f32.mrf.mxu0  ;;  %4899 = vmatprep.subr.bf16.mxu0 %v6159_v59  ;;  %v3974_v63 = vpack.c.bf16 %v3966_v9, %v3966_v9 }
 0xe8a   : > { %v3969_v60 = vmul.f32 %v3961_v8, %v3901_v18  ;;  %v3862_v19 = vpop.f32.mrf.mxu1  ;;  %v3976_v23 = vpack.c.bf16 %v3968_v15, %v3968_v15 }
 0xe8b   : > { %v3975_v20 = vpack.c.bf16 %v3967_v16, %v3967_v16  ;;  %v3903_v61 = vpop.f32.mrf.mxu0  ;;  %4859 = vmatpush2.bf16.msra.mxu1 %v6154_v7 }
 0xe8c   : > { %v3977_v22 = vpack.c.bf16 %v3969_v60, %v3969_v60  ;;  %4900 = vmatpush2.bf16.msra.mxu0 %v6157_v17  ;;  %v3863_v54 = vpop.f32.mrf.mxu1 }
 0xe8d   : > { %v3904_v62 = vpop.f32.mrf.mxu0  ;;  %4860 = vmatprep.mubr.bf16.mxu1 %v3975_v20 }
 0xe8e   : > { %4901 = vmatprep.mubr.bf16.mxu0 %v3977_v22  ;;  %4861 = vmatmul.mubr.bf16.vlgmr.msra.gmra.mxu1 %v3974_v63 }
 0xe8f   : > { %4902 = vmatmul.mubr.bf16.vlgmr.msra.gmra.mxu0 %v3976_v23 }
 0xf0e   : > { %v4780_v29 = vpop.f32.mrf.mxu1 }
 0xf0f   : > { %v4821_v25 = vpop.f32.mrf.mxu0 }
 0xf10   : > { %v4782_v26 = vpop.f32.mrf.mxu1  ;;  %v4822_v28 = vadd.f32 %v4821_v25, %v4780_v29 }
 0xf11   : > { %v4823_v10 = vpop.f32.mrf.mxu0 }
 0xf12   : > { %v4784_v32 = vpop.f32.mrf.mxu1  ;;  %v4824_v31 = vadd.f32 %v4823_v10, %v4782_v26 }
 0xf13   : > { %v4825_v27 = vpop.f32.mrf.mxu0 }
 0xf14   : > { %v4785_v1 = vpop.f32.mrf.mxu1 }
 0xf15   : > { %v4826_v0 = vpop.f32.mrf.mxu0 }
 0xf4e   : > { %v4862_v30 = vpop.f32.mrf.mxu1 }
 0xf4f   : > { %v4863_v33 = vadd.f32 %v4862_v30, %v4822_v28  ;;  %v4903_v12 = vpop.f32.mrf.mxu0 }
 0xf50   : > { %v4864_v56 = vpop.f32.mrf.mxu1 }
 0xf51   : > { %v4904_v34 = vadd.f32 %v4903_v12, %v4863_v33  ;;  %v4865_v13 = vadd.f32 %v4864_v56, %v4824_v31  ;;  %v4905_v14 = vpop.f32.mrf.mxu0 }
 0xf52   : > { %v4866_v35 = vpop.f32.mrf.mxu1 }
 0xf53   : > { %v4910_v36 = vadd.f32 %v4904_v34, %v6838_v21  ;;  %v4906_v48 = vadd.f32 %v4905_v14, %v4865_v13  ;;  %v4907_v37 = vpop.f32.mrf.mxu0 }
 0xf54   : > { %v4867_v38 = vpop.f32.mrf.mxu1 }
 0xf55   : > { %4912 = vst [vmem:[%s419_s18] sm:$0xff] %v4910_v36  ;;  %v4911_v49 = vadd.f32 %v4906_v48, %v6841_v24  ;;  %v4908_v39 = vpop.f32.mrf.mxu0 }
 0xf57   : > { %4913 = vst [vmem:[%s419_s18 + $0x8] sm:$0xff] %v4911_v49 }
 0xf58   : > { %6385 = shalt.err (!%p6382_p3)
}
 0xf59   : > { %s6386_s23 = scalar_lea.hbm %s4927_s5, 256  ;;  %s6390_s19 = scalar_lea.hbm %s6954_s9, 512 }
 0xf5a   : > { %p6387_p1 = scmp.ne.s32.totalorder %s4927_s5, %s6386_s23  ;;  %p6391_p9 = scmp.lt.s32.totalorder %s4927_s5, %s6954_s9 }
 0xf5b   : > { %p6392_p11 = scmp.lt.s32.totalorder %s6390_s19, %s6386_s23 }
 0xf5c   : > { %p6388_p6 = pnand %p6387_p1, %p6983_p4 }
 0xf5d   : > { %p6393_p13 = por %p6392_p11, %p6391_p9 }
 0xf5e   : > { %p6389_p8 = pneg %p6388_p6 }
 0xf60   : > { %p6394_p0 = pnand %p6393_p13, %p6389_p8 }
 0xf62   : > { %6397 = shalt.err (!%p6394_p0)
}
 0xf63   : > { %5691 = dma.vmem_to_hbm [thread:$0]  (%p6983_p4), %s4930_s21, 256, %s4927_s5, %s4915_s15  }
 0xf64 PF: > { %s4941_s14 = sand.u32 1, %s6436_s30   ;;  %p6984_p2 = scmp.ne.s32.totalorder %s6973_s29, 0 }
 0xf65   : > { %p6985_p5 = scmp.ge.s32.totalorder %s6448_s12, 2  ;;  %s4942_s18 = scalar_lea.sflag [#allocation4], %s4941_s14 }
 0xf67   : > { %p5714_p7 = pnand %p6985_p5, %p6984_p2 }
 0xf69   : > { %p5715_p10 = pneg %p5714_p7 }
 0xf6b   : > { %6431 = dma.done.wait (%p5715_p10), %s4942_s18, 256  }
 0xf6c   : > { %6433 = vsyncadd (%p5715_p10), %s4942_s18, 4294967040  ;;  %p25_p12 = scmp.ge.s32.totalorder %s6612_s22, 4   ;;  %s6986_s30 = smov %s6440_s10 }
 0xf6d   : > { %s6987_s10 = smov %s6444_s11  ;;  %s6988_s11 = smov %s6624_s27 }
 0xf6e   : > { %s6989_s12 = smov %s6612_s22  ;;  %27 = sbr.rel (!%p25_p12) target bundleno = 13 (0xd), region = 121 }
 0xf73   :  { %4947 = vsyncpa [#allocation3], 1 }
 0xf74   :  { %4949 = vsyncpa [#allocation3 + $0x1], 1 }
 0xf75   :  { %4950 = vsyncpa [#allocation6], 1 }
 0xf76   :  { %4951 = vsyncpa [#allocation9], 1 }
 0xf77   :  { %4952 = vsyncpa [#allocation12], 1 }
 0xf78   :  { %4953 = vsyncpa [#allocation4], 1 }
 0xf79   :  { %4955 = vsyncpa [#allocation4 + $0x1], 1 }

</bundles_post_ra>
